<compile_context>
chip_gen: v7x
topology: tpu7x:2x2x1
jax: 0.10.0
libtpu: 0.0.40
codegen_flags: <defaults>
</compile_context>

<pallas_src>
import functools

import jax
import jax.numpy as jnp
from jax.experimental import pallas as pl
from jax.experimental.pallas import tpu as pltpu


# ---------------------------------------------------------------------------
# Pallas kernels
# ---------------------------------------------------------------------------
def _convT_kernel(w_ref, p_ref, b_ref, o_ref, *, relu):
    """o = W @ P + b   (transposed conv-as-matmul, lane-dense output).

    W: (OC, K), P: (K, M_tile), b: (OC, 1), o: (OC, M_tile).
    bf16 MXU operands, f32 accumulation, f32 epilogue.
    """
    w = w_ref[...].astype(jnp.bfloat16)
    p = p_ref[...].astype(jnp.bfloat16)
    y = jnp.dot(w, p, preferred_element_type=jnp.float32) + b_ref[...]
    if relu:
        y = jnp.maximum(y, 0.0)
    o_ref[...] = y.astype(o_ref.dtype)


def conv_matmul_T(w_flat, patches_T, bias, *, relu, m_tiles=1):
    """(OC, K) @ (K, M) + b  ->  (OC, M), tiled over M for megacore."""
    OC, K = w_flat.shape
    K2, M = patches_T.shape
    assert K == K2
    # Keep each M-tile a multiple of 128 lanes; fall back to 1 tile otherwise.
    if m_tiles > 1 and (M % m_tiles != 0 or (M // m_tiles) % 128 != 0):
        m_tiles = 1
    tm = M // m_tiles
    return pl.pallas_call(
        functools.partial(_convT_kernel, relu=relu),
        grid=(m_tiles,),
        in_specs=[
            pl.BlockSpec((OC, K), lambda i: (0, 0)),
            pl.BlockSpec((K, tm), lambda i: (0, i)),
            pl.BlockSpec((OC, 1), lambda i: (0, 0)),
        ],
        out_specs=pl.BlockSpec((OC, tm), lambda i: (0, i)),
        out_shape=jax.ShapeDtypeStruct((OC, M), jnp.float32),
        compiler_params=pltpu.CompilerParams(
            dimension_semantics=("parallel",)),
    )(w_flat, patches_T, bias.reshape(OC, 1))


def _fc_fused_kernel(x_ref, w1_ref, v1_ref, w2_ref, v2_ref, o_ref, *,
                     eps1, eps2):
    """Fused Linear -> BN(eps1) -> ReLU -> Linear -> BN(eps2) -> ReLU.

    v1/v2 pack (bias, gamma, beta) as rows of a (3, N) array.
    The (B, 32) intermediate never leaves VMEM; the only store is the
    lane-dense (B, down_dim) result.
    """
    x = x_ref[...]
    v1 = v1_ref[...]            # (3, 32)
    v2 = v2_ref[...]            # (3, down_dim)

    # Linear(down_dim, 32)
    y1 = jnp.dot(x.astype(jnp.bfloat16), w1_ref[...].astype(jnp.bfloat16),
                 preferred_element_type=jnp.float32) + v1[0:1, :]
    # BatchNorm1d(32, eps=eps1) training-mode (biased batch stats) + ReLU
    m1 = jnp.mean(y1, axis=0, keepdims=True)
    var1 = jnp.mean((y1 - m1) ** 2, axis=0, keepdims=True)
    h1 = jnp.maximum((y1 - m1) * jax.lax.rsqrt(var1 + eps1) * v1[1:2, :]
                     + v1[2:3, :], 0.0)

    # Linear(32, down_dim)
    y2 = jnp.dot(h1.astype(jnp.bfloat16), w2_ref[...].astype(jnp.bfloat16),
                 preferred_element_type=jnp.float32) + v2[0:1, :]
    # BatchNorm1d(down_dim, eps=eps2) + ReLU
    m2 = jnp.mean(y2, axis=0, keepdims=True)
    var2 = jnp.mean((y2 - m2) ** 2, axis=0, keepdims=True)
    h2 = jnp.maximum((y2 - m2) * jax.lax.rsqrt(var2 + eps2) * v2[1:2, :]
                     + v2[2:3, :], 0.0)

    o_ref[...] = h2.astype(o_ref.dtype)


def fc_fused(x, w1, v1, w2, v2, *, eps1, eps2):
    B, K = x.shape
    K1, N1 = w1.shape            # (down_dim, 32)
    N1b, N2 = w2.shape           # (32, down_dim)
    assert K == K1 and N1 == N1b
    # TODO(synk): for large img_size (down_dim ~ img_size**2) K-tile the fc1
    # contraction / N-tile the fc2 output with a grid axis + f32 accumulator
    # + pl.when, so the full weights never need to be VMEM-resident.
    return pl.pallas_call(
        functools.partial(_fc_fused_kernel, eps1=eps1, eps2=eps2),
        grid=(1,),
        in_specs=[
            pl.BlockSpec((B, K), lambda i: (0, 0)),
            pl.BlockSpec((K, N1), lambda i: (0, 0)),
            pl.BlockSpec((3, N1), lambda i: (0, 0)),
            pl.BlockSpec((N1, N2), lambda i: (0, 0)),
            pl.BlockSpec((3, N2), lambda i: (0, 0)),
        ],
        out_specs=pl.BlockSpec((B, N2), lambda i: (0, 0)),
        out_shape=jax.ShapeDtypeStruct((B, N2), jnp.float32),
        compiler_params=pltpu.CompilerParams(
            dimension_semantics=("arbitrary",),
            vmem_limit_bytes=32 * 1024 * 1024),
    )(x, w1, v1, w2, v2)


# ---------------------------------------------------------------------------
# Glue: transposed im2col (patches laid out (K, M) so conv outputs are
# lane-dense (OC, M) with no in-kernel transpose).
# ---------------------------------------------------------------------------
def _patches_T(x_nchw, kh, kw, stride, pad):
    """P[ic*kh*kw + dy*kw + dx, b*Ho*Wo + y*Wo + x] = xpad[b,ic,s*y+dy,s*x+dx].

    # TODO(synk): move this tap extraction (and the nearest 2x upsample for
    # conv2) into the Pallas kernels via in-kernel shifted-slice accumulation
    # to drop the remaining XLA-side HBM passes.
    """
    B, C, H, W = x_nchw.shape
    xp = jnp.pad(x_nchw, ((0, 0), (0, 0), (pad, pad), (pad, pad)))
    Ho = (H + 2 * pad - kh) // stride + 1
    Wo = (W + 2 * pad - kw) // stride + 1
    taps = []
    for dy in range(kh):
        for dx in range(kw):
            taps.append(xp[:, :, dy:dy + stride * Ho:stride,
                           dx:dx + stride * Wo:stride])
    p = jnp.stack(taps, axis=2)                    # (B, C, kh*kw, Ho, Wo)
    p = p.transpose(1, 2, 0, 3, 4).reshape(C * kh * kw, B * Ho * Wo)
    return p, Ho, Wo


def conv2d_T(x_nchw, w_oihw, b, stride, pad, *, relu, m_tiles=1):
    OC, IC, kh, kw = w_oihw.shape
    p, Ho, Wo = _patches_T(x_nchw, kh, kw, stride, pad)
    w_flat = w_oihw.reshape(OC, IC * kh * kw)           # (OC, K)
    out_T = conv_matmul_T(w_flat, p, b, relu=relu, m_tiles=m_tiles)
    return out_T, Ho, Wo                                 # (OC, B*Ho*Wo)


# ---------------------------------------------------------------------------
# BEGANDiscriminator forward
# ---------------------------------------------------------------------------
def init_params(key, img_size, channels):
    down_size = img_size // 2
    down_dim = 64 * down_size * down_size
    ks = jax.random.split(key, 8)
    s = 0.05
    return dict(
        conv1_w=s * jax.random.normal(ks[0], (64, channels, 3, 3), jnp.float32),
        conv1_b=s * jax.random.normal(ks[1], (64,), jnp.float32),
        fc1_w=s * jax.random.normal(ks[2], (down_dim, 32), jnp.float32),
        fc1_b=s * jax.random.normal(ks[3], (32,), jnp.float32),
        bn1_g=jnp.ones((32,), jnp.float32),
        bn1_b=jnp.zeros((32,), jnp.float32),
        fc2_w=s * jax.random.normal(ks[4], (32, down_dim), jnp.float32),
        fc2_b=s * jax.random.normal(ks[5], (down_dim,), jnp.float32),
        bn2_g=jnp.ones((down_dim,), jnp.float32),
        bn2_b=jnp.zeros((down_dim,), jnp.float32),
        conv2_w=s * jax.random.normal(ks[6], (channels, 64, 3, 3), jnp.float32),
        conv2_b=s * jax.random.normal(ks[7], (channels,), jnp.float32),
    )


def began_discriminator_forward(img, params, img_size, channels):
    B = img.shape[0]
    ds = img_size // 2
    down_dim = 64 * ds * ds

    # down: Conv2d(channels, 64, 3, stride=2, pad=1) + ReLU
    c1T, Ho, Wo = conv2d_T(img, params["conv1_w"], params["conv1_b"],
                           2, 1, relu=True)                       # (64, B*ds*ds)
    # reorder to torch .view flatten order (per batch row: C, H, W)
    flat = c1T.reshape(64, B, ds * ds).transpose(1, 0, 2).reshape(B, down_dim)

    # fc: Linear -> BN(eps=0.8) -> ReLU -> Linear -> BN(eps=1e-5) -> ReLU
    v1 = jnp.stack([params["fc1_b"], params["bn1_g"], params["bn1_b"]], axis=0)
    v2 = jnp.stack([params["fc2_b"], params["bn2_g"], params["bn2_b"]], axis=0)
    h = fc_fused(flat, params["fc1_w"], v1, params["fc2_w"], v2,
                 eps1=0.8, eps2=1e-5)                             # (B, down_dim)

    # up: nearest Upsample(x2) + Conv2d(64, channels, 3, stride=1, pad=1)
    feat = h.reshape(B, 64, ds, ds)
    up = jnp.repeat(jnp.repeat(feat, 2, axis=2), 2, axis=3)       # nearest x2
    c2T, Ho2, Wo2 = conv2d_T(up, params["conv2_w"], params["conv2_b"],
                             1, 1, relu=False, m_tiles=2)         # (C, B*H*W)
    out = c2T.reshape(channels, B, Ho2, Wo2).transpose(1, 0, 2, 3)  # NCHW
    return out


# ---------------------------------------------------------------------------
if __name__ == "__main__":
    img_size = 16
    channels = 4
    batch = 2

    key = jax.random.PRNGKey(0)
    k_img, k_par = jax.random.split(key)
    img = jax.random.normal(k_img, (batch, channels, img_size, img_size),
                            jnp.float32)
    params = init_params(k_par, img_size, channels)

    fwd = jax.jit(functools.partial(began_discriminator_forward,
                                    img_size=img_size, channels=channels))
    out = fwd(img, params)
    out = jax.block_until_ready(out)
    assert out.shape == (batch, channels, img_size, img_size), out.shape
    print("KERNEL_OK")
</pallas_src>

<mosaic_0001>
module attributes {stable_mosaic.version = 11 : i64} {
  func.func @_convT_kernel(%arg0: i32, %arg1: memref<64x36xf32, #tpu.memory_space<vmem>>, %arg2: memref<36x128xf32, #tpu.memory_space<vmem>>, %arg3: memref<64x1xf32, #tpu.memory_space<vmem>>, %arg4: memref<64x128xf32, #tpu.memory_space<vmem>>) attributes {dimension_semantics = [#tpu.dimension_semantics<parallel>], iteration_bounds = array<i64: 1>, scalar_prefetch = 0 : i64, scratch_operands = 0 : i64, tpu.core_type = #tpu.core_type<tc>, window_params = [{pipeline_mode = #tpu.pipeline_mode<synchronous>, transform_indices = @transform_0, window_bounds = array<i64: 64, 36>}, {transform_indices = @transform_1, window_bounds = array<i64: 36, 128>}, {pipeline_mode = #tpu.pipeline_mode<synchronous>, transform_indices = @transform_2, window_bounds = array<i64: 64, 1>}, {transform_indices = @transform_3, window_bounds = array<i64: 64, 128>}]} {
    %c0 = arith.constant 0 : index
    %c0_0 = arith.constant 0 : index
    %0 = vector.load %arg1[%c0, %c0_0] : memref<64x36xf32, #tpu.memory_space<vmem>>, vector<64x36xf32>
    %1 = arith.truncf %0 : vector<64x36xf32> to vector<64x36xbf16>
    %c0_1 = arith.constant 0 : index
    %c0_2 = arith.constant 0 : index
    %2 = vector.load %arg2[%c0_1, %c0_2] : memref<36x128xf32, #tpu.memory_space<vmem>>, vector<36x128xf32>
    %3 = arith.truncf %2 : vector<36x128xf32> to vector<36x128xbf16>
    %cst = arith.constant dense<0.000000e+00> : vector<64x128xf32>
    %4 = tpu.matmul %1, %3, %cst {dimension_numbers = #tpu.dot_dimension_numbers<[1], [0], [0], [1], [0, 0, 1, 1], [], []>} : vector<64x36xbf16>, vector<36x128xbf16>, vector<64x128xf32> -> vector<64x128xf32>
    %c0_3 = arith.constant 0 : index
    %c0_4 = arith.constant 0 : index
    %5 = vector.load %arg3[%c0_3, %c0_4] : memref<64x1xf32, #tpu.memory_space<vmem>>, vector<64x1xf32>
    %6 = vector.broadcast %5 : vector<64x1xf32> to vector<64x128xf32>
    %7 = arith.addf %4, %6 : vector<64x128xf32>
    %cst_5 = arith.constant 0.000000e+00 : f32
    %8 = vector.broadcast %cst_5 : f32 to vector<64x128xf32>
    %9 = arith.maximumf %7, %8 : vector<64x128xf32>
    %c0_6 = arith.constant 0 : index
    %c0_7 = arith.constant 0 : index
    %10 = vector.load %arg4[%c0_6, %c0_7] : memref<64x128xf32, #tpu.memory_space<vmem>>, vector<64x128xf32>
    tpu.vector_store %arg4[%c0_6, %c0_7], %9 {strides = array<i32>} : memref<64x128xf32, #tpu.memory_space<vmem>>, vector<64x128xf32>,
    return
  }
  func.func @transform_0(%arg0: i32) -> (i32, i32) {
    %c0_i32 = arith.constant 0 : i32
    %c0_i32_0 = arith.constant 0 : i32
    %c0_i32_1 = arith.constant 0 : i32
    return %c0_i32, %c0_i32_0 : i32, i32
  }
  func.func @transform_1(%arg0: i32) -> (i32, i32) {
    %c0_i32 = arith.constant 0 : i32
    %c0_i32_0 = arith.constant 0 : i32
    return %c0_i32, %arg0 : i32, i32
  }
  func.func @transform_2(%arg0: i32) -> (i32, i32) {
    %c0_i32 = arith.constant 0 : i32
    %c0_i32_0 = arith.constant 0 : i32
    %c0_i32_1 = arith.constant 0 : i32
    return %c0_i32, %c0_i32_0 : i32, i32
  }
  func.func @transform_3(%arg0: i32) -> (i32, i32) {
    %c0_i32 = arith.constant 0 : i32
    %c0_i32_0 = arith.constant 0 : i32
    return %c0_i32, %arg0 : i32, i32
  }
}

module attributes {stable_mosaic.version = 11 : i64} {
  func.func @_fc_fused_kernel(%arg0: i32, %arg1: memref<2x4096xf32, #tpu.memory_space<vmem>>, %arg2: memref<4096x32xf32, #tpu.memory_space<vmem>>, %arg3: memref<3x32xf32, #tpu.memory_space<vmem>>, %arg4: memref<32x4096xf32, #tpu.memory_space<vmem>>, %arg5: memref<3x4096xf32, #tpu.memory_space<vmem>>, %arg6: memref<2x4096xf32, #tpu.memory_space<vmem>>) attributes {dimension_semantics = [#tpu.dimension_semantics<arbitrary>], iteration_bounds = array<i64: 1>, scalar_prefetch = 0 : i64, scratch_operands = 0 : i64, tpu.core_type = #tpu.core_type<tc>, window_params = [{pipeline_mode = #tpu.pipeline_mode<synchronous>, transform_indices = @transform_0, window_bounds = array<i64: 2, 4096>}, {pipeline_mode = #tpu.pipeline_mode<synchronous>, transform_indices = @transform_1, window_bounds = array<i64: 4096, 32>}, {pipeline_mode = #tpu.pipeline_mode<synchronous>, transform_indices = @transform_2, window_bounds = array<i64: 3, 32>}, {pipeline_mode = #tpu.pipeline_mode<synchronous>, transform_indices = @transform_3, window_bounds = array<i64: 32, 4096>}, {pipeline_mode = #tpu.pipeline_mode<synchronous>, transform_indices = @transform_4, window_bounds = array<i64: 3, 4096>}, {pipeline_mode = #tpu.pipeline_mode<synchronous>, transform_indices = @transform_5, window_bounds = array<i64: 2, 4096>}]} {
    %c0 = arith.constant 0 : index
    %c0_0 = arith.constant 0 : index
    %0 = vector.load %arg1[%c0, %c0_0] : memref<2x4096xf32, #tpu.memory_space<vmem>>, vector<2x4096xf32>
    %c0_1 = arith.constant 0 : index
    %c0_2 = arith.constant 0 : index
    %1 = vector.load %arg3[%c0_1, %c0_2] : memref<3x32xf32, #tpu.memory_space<vmem>>, vector<3x32xf32>
    %c0_3 = arith.constant 0 : index
    %c0_4 = arith.constant 0 : index
    %2 = vector.load %arg5[%c0_3, %c0_4] : memref<3x4096xf32, #tpu.memory_space<vmem>>, vector<3x4096xf32>
    %3 = arith.truncf %0 : vector<2x4096xf32> to vector<2x4096xbf16>
    %c0_5 = arith.constant 0 : index
    %c0_6 = arith.constant 0 : index
    %4 = vector.load %arg2[%c0_5, %c0_6] : memref<4096x32xf32, #tpu.memory_space<vmem>>, vector<4096x32xf32>
    %5 = arith.truncf %4 : vector<4096x32xf32> to vector<4096x32xbf16>
    %cst = arith.constant dense<0.000000e+00> : vector<2x32xf32>
    %6 = tpu.matmul %3, %5, %cst {dimension_numbers = #tpu.dot_dimension_numbers<[1], [0], [0], [1], [0, 0, 1, 1], [], []>} : vector<2x4096xbf16>, vector<4096x32xbf16>, vector<2x32xf32> -> vector<2x32xf32>
    %7 = vector.extract_strided_slice %1 {offsets = [0, 0], sizes = [1, 32], strides = [1, 1]} : vector<3x32xf32> to vector<1x32xf32>
    %8 = vector.broadcast %7 : vector<1x32xf32> to vector<2x32xf32>
    %9 = arith.addf %6, %8 : vector<2x32xf32>
    %cst_7 = arith.constant dense<0.000000e+00> : vector<32xf32>
    %10 = vector.multi_reduction <add>, %9, %cst_7 [0] : vector<2x32xf32> to vector<32xf32>
    %11 = vector.shape_cast %10 : vector<32xf32> to vector<1x32xf32>
    %cst_8 = arith.constant 2.000000e+00 : f32
    %12 = vector.broadcast %cst_8 : f32 to vector<1x32xf32>
    %13 = arith.divf %11, %12 : vector<1x32xf32>
    %14 = vector.broadcast %13 : vector<1x32xf32> to vector<2x32xf32>
    %15 = arith.subf %9, %14 : vector<2x32xf32>
    %16 = arith.mulf %15, %15 : vector<2x32xf32>
    %cst_9 = arith.constant dense<0.000000e+00> : vector<32xf32>
    %17 = vector.multi_reduction <add>, %16, %cst_9 [0] : vector<2x32xf32> to vector<32xf32>
    %18 = vector.shape_cast %17 : vector<32xf32> to vector<1x32xf32>
    %cst_10 = arith.constant 2.000000e+00 : f32
    %19 = vector.broadcast %cst_10 : f32 to vector<1x32xf32>
    %20 = arith.divf %18, %19 : vector<1x32xf32>
    %21 = vector.broadcast %13 : vector<1x32xf32> to vector<2x32xf32>
    %22 = arith.subf %9, %21 : vector<2x32xf32>
    %cst_11 = arith.constant 8.000000e-01 : f32
    %23 = vector.broadcast %cst_11 : f32 to vector<1x32xf32>
    %24 = arith.addf %20, %23 : vector<1x32xf32>
    %25 = math.rsqrt %24 : vector<1x32xf32>
    %26 = vector.broadcast %25 : vector<1x32xf32> to vector<2x32xf32>
    %27 = arith.mulf %22, %26 : vector<2x32xf32>
    %28 = vector.extract_strided_slice %1 {offsets = [1, 0], sizes = [1, 32], strides = [1, 1]} : vector<3x32xf32> to vector<1x32xf32>
    %29 = vector.broadcast %28 : vector<1x32xf32> to vector<2x32xf32>
    %30 = arith.mulf %27, %29 : vector<2x32xf32>
    %31 = vector.extract_strided_slice %1 {offsets = [2, 0], sizes = [1, 32], strides = [1, 1]} : vector<3x32xf32> to vector<1x32xf32>
    %32 = vector.broadcast %31 : vector<1x32xf32> to vector<2x32xf32>
    %33 = arith.addf %30, %32 : vector<2x32xf32>
    %cst_12 = arith.constant 0.000000e+00 : f32
    %34 = vector.broadcast %cst_12 : f32 to vector<2x32xf32>
    %35 = arith.maximumf %33, %34 : vector<2x32xf32>
    %36 = arith.truncf %35 : vector<2x32xf32> to vector<2x32xbf16>
    %c0_13 = arith.constant 0 : index
    %c0_14 = arith.constant 0 : index
    %37 = vector.load %arg4[%c0_13, %c0_14] : memref<32x4096xf32, #tpu.memory_space<vmem>>, vector<32x4096xf32>
    %38 = arith.truncf %37 : vector<32x4096xf32> to vector<32x4096xbf16>
    %cst_15 = arith.constant dense<0.000000e+00> : vector<2x4096xf32>
    %39 = tpu.matmul %36, %38, %cst_15 {dimension_numbers = #tpu.dot_dimension_numbers<[1], [0], [0], [1], [0, 0, 1, 1], [], []>} : vector<2x32xbf16>, vector<32x4096xbf16>, vector<2x4096xf32> -> vector<2x4096xf32>
    %40 = vector.extract_strided_slice %2 {offsets = [0, 0], sizes = [1, 4096], strides = [1, 1]} : vector<3x4096xf32> to vector<1x4096xf32>
    %41 = vector.broadcast %40 : vector<1x4096xf32> to vector<2x4096xf32>
    %42 = arith.addf %39, %41 : vector<2x4096xf32>
    %cst_16 = arith.constant dense<0.000000e+00> : vector<4096xf32>
    %43 = vector.multi_reduction <add>, %42, %cst_16 [0] : vector<2x4096xf32> to vector<4096xf32>
    %44 = vector.shape_cast %43 : vector<4096xf32> to vector<1x4096xf32>
    %cst_17 = arith.constant 2.000000e+00 : f32
    %45 = vector.broadcast %cst_17 : f32 to vector<1x4096xf32>
    %46 = arith.divf %44, %45 : vector<1x4096xf32>
    %47 = vector.broadcast %46 : vector<1x4096xf32> to vector<2x4096xf32>
    %48 = arith.subf %42, %47 : vector<2x4096xf32>
    %49 = arith.mulf %48, %48 : vector<2x4096xf32>
    %cst_18 = arith.constant dense<0.000000e+00> : vector<4096xf32>
    %50 = vector.multi_reduction <add>, %49, %cst_18 [0] : vector<2x4096xf32> to vector<4096xf32>
    %51 = vector.shape_cast %50 : vector<4096xf32> to vector<1x4096xf32>
    %cst_19 = arith.constant 2.000000e+00 : f32
    %52 = vector.broadcast %cst_19 : f32 to vector<1x4096xf32>
    %53 = arith.divf %51, %52 : vector<1x4096xf32>
    %54 = vector.broadcast %46 : vector<1x4096xf32> to vector<2x4096xf32>
    %55 = arith.subf %42, %54 : vector<2x4096xf32>
    %cst_20 = arith.constant 9.99999974E-6 : f32
    %56 = vector.broadcast %cst_20 : f32 to vector<1x4096xf32>
    %57 = arith.addf %53, %56 : vector<1x4096xf32>
    %58 = math.rsqrt %57 : vector<1x4096xf32>
    %59 = vector.broadcast %58 : vector<1x4096xf32> to vector<2x4096xf32>
    %60 = arith.mulf %55, %59 : vector<2x4096xf32>
    %61 = vector.extract_strided_slice %2 {offsets = [1, 0], sizes = [1, 4096], strides = [1, 1]} : vector<3x4096xf32> to vector<1x4096xf32>
    %62 = vector.broadcast %61 : vector<1x4096xf32> to vector<2x4096xf32>
    %63 = arith.mulf %60, %62 : vector<2x4096xf32>
    %64 = vector.extract_strided_slice %2 {offsets = [2, 0], sizes = [1, 4096], strides = [1, 1]} : vector<3x4096xf32> to vector<1x4096xf32>
    %65 = vector.broadcast %64 : vector<1x4096xf32> to vector<2x4096xf32>
    %66 = arith.addf %63, %65 : vector<2x4096xf32>
    %cst_21 = arith.constant 0.000000e+00 : f32
    %67 = vector.broadcast %cst_21 : f32 to vector<2x4096xf32>
    %68 = arith.maximumf %66, %67 : vector<2x4096xf32>
    %c0_22 = arith.constant 0 : index
    %c0_23 = arith.constant 0 : index
    %69 = vector.load %arg6[%c0_22, %c0_23] : memref<2x4096xf32, #tpu.memory_space<vmem>>, vector<2x4096xf32>
    tpu.vector_store %arg6[%c0_22, %c0_23], %68 {strides = array<i32>} : memref<2x4096xf32, #tpu.memory_space<vmem>>, vector<2x4096xf32>,
    return
  }
  func.func @transform_0(%arg0: i32) -> (i32, i32) {
    %c0_i32 = arith.constant 0 : i32
    %c0_i32_0 = arith.constant 0 : i32
    %c0_i32_1 = arith.constant 0 : i32
    return %c0_i32, %c0_i32_0 : i32, i32
  }
  func.func @transform_1(%arg0: i32) -> (i32, i32) {
    %c0_i32 = arith.constant 0 : i32
    %c0_i32_0 = arith.constant 0 : i32
    %c0_i32_1 = arith.constant 0 : i32
    return %c0_i32, %c0_i32_0 : i32, i32
  }
  func.func @transform_2(%arg0: i32) -> (i32, i32) {
    %c0_i32 = arith.constant 0 : i32
    %c0_i32_0 = arith.constant 0 : i32
    %c0_i32_1 = arith.constant 0 : i32
    return %c0_i32, %c0_i32_0 : i32, i32
  }
  func.func @transform_3(%arg0: i32) -> (i32, i32) {
    %c0_i32 = arith.constant 0 : i32
    %c0_i32_0 = arith.constant 0 : i32
    %c0_i32_1 = arith.constant 0 : i32
    return %c0_i32, %c0_i32_0 : i32, i32
  }
  func.func @transform_4(%arg0: i32) -> (i32, i32) {
    %c0_i32 = arith.constant 0 : i32
    %c0_i32_0 = arith.constant 0 : i32
    %c0_i32_1 = arith.constant 0 : i32
    return %c0_i32, %c0_i32_0 : i32, i32
  }
  func.func @transform_5(%arg0: i32) -> (i32, i32) {
    %c0_i32 = arith.constant 0 : i32
    %c0_i32_0 = arith.constant 0 : i32
    %c0_i32_1 = arith.constant 0 : i32
    return %c0_i32, %c0_i32_0 : i32, i32
  }
}

module attributes {stable_mosaic.version = 11 : i64} {
  func.func @_convT_kernel(%arg0: i32, %arg1: memref<4x576xf32, #tpu.memory_space<vmem>>, %arg2: memref<576x256xf32, #tpu.memory_space<vmem>>, %arg3: memref<4x1xf32, #tpu.memory_space<vmem>>, %arg4: memref<4x256xf32, #tpu.memory_space<vmem>>) attributes {dimension_semantics = [#tpu.dimension_semantics<parallel>], iteration_bounds = array<i64: 2>, scalar_prefetch = 0 : i64, scratch_operands = 0 : i64, tpu.core_type = #tpu.core_type<tc>, window_params = [{pipeline_mode = #tpu.pipeline_mode<synchronous>, transform_indices = @transform_0, window_bounds = array<i64: 4, 576>}, {transform_indices = @transform_1, window_bounds = array<i64: 576, 256>}, {pipeline_mode = #tpu.pipeline_mode<synchronous>, transform_indices = @transform_2, window_bounds = array<i64: 4, 1>}, {transform_indices = @transform_3, window_bounds = array<i64: 4, 256>}]} {
    %c0 = arith.constant 0 : index
    %c0_0 = arith.constant 0 : index
    %0 = vector.load %arg1[%c0, %c0_0] : memref<4x576xf32, #tpu.memory_space<vmem>>, vector<4x576xf32>
    %1 = arith.truncf %0 : vector<4x576xf32> to vector<4x576xbf16>
    %c0_1 = arith.constant 0 : index
    %c0_2 = arith.constant 0 : index
    %2 = vector.load %arg2[%c0_1, %c0_2] : memref<576x256xf32, #tpu.memory_space<vmem>>, vector<576x256xf32>
    %3 = arith.truncf %2 : vector<576x256xf32> to vector<576x256xbf16>
    %cst = arith.constant dense<0.000000e+00> : vector<4x256xf32>
    %4 = tpu.matmul %1, %3, %cst {dimension_numbers = #tpu.dot_dimension_numbers<[1], [0], [0], [1], [0, 0, 1, 1], [], []>} : vector<4x576xbf16>, vector<576x256xbf16>, vector<4x256xf32> -> vector<4x256xf32>
    %c0_3 = arith.constant 0 : index
    %c0_4 = arith.constant 0 : index
    %5 = vector.load %arg3[%c0_3, %c0_4] : memref<4x1xf32, #tpu.memory_space<vmem>>, vector<4x1xf32>
    %6 = vector.broadcast %5 : vector<4x1xf32> to vector<4x256xf32>
    %7 = arith.addf %4, %6 : vector<4x256xf32>
    %c0_5 = arith.constant 0 : index
    %c0_6 = arith.constant 0 : index
    %8 = vector.load %arg4[%c0_5, %c0_6] : memref<4x256xf32, #tpu.memory_space<vmem>>, vector<4x256xf32>
    tpu.vector_store %arg4[%c0_5, %c0_6], %7 {strides = array<i32>} : memref<4x256xf32, #tpu.memory_space<vmem>>, vector<4x256xf32>,
    return
  }
  func.func @transform_0(%arg0: i32) -> (i32, i32) {
    %c0_i32 = arith.constant 0 : i32
    %c0_i32_0 = arith.constant 0 : i32
    %c0_i32_1 = arith.constant 0 : i32
    return %c0_i32, %c0_i32_0 : i32, i32
  }
  func.func @transform_1(%arg0: i32) -> (i32, i32) {
    %c0_i32 = arith.constant 0 : i32
    %c0_i32_0 = arith.constant 0 : i32
    return %c0_i32, %arg0 : i32, i32
  }
  func.func @transform_2(%arg0: i32) -> (i32, i32) {
    %c0_i32 = arith.constant 0 : i32
    %c0_i32_0 = arith.constant 0 : i32
    %c0_i32_1 = arith.constant 0 : i32
    return %c0_i32, %c0_i32_0 : i32, i32
  }
  func.func @transform_3(%arg0: i32) -> (i32, i32) {
    %c0_i32 = arith.constant 0 : i32
    %c0_i32_0 = arith.constant 0 : i32
    return %c0_i32, %arg0 : i32, i32
  }
}

</mosaic_0001>

<bundles_post_ra>
// kernel: began_discriminator_forward.3
= control target key start
LH: loop header
LB: loop body
LE: loop exit
PB: predicated region body
PF: predicated region fallthrough
CT: control target
= control target key end

     0   :  { %v221_v3 = vmov 0   ;;  %vm83_vm0 = vcmask 293888   ;;  %vm96_vm1 = vcmask 1041408   ;;  %s333_s1 = inlined_call_operand.vmem [shape: f32[36,128], index: 1, kind: input, shape index: {}]   ;;  %s334_s0 = inlined_call_operand.vmem [shape: f32[64,36], index: 0, kind: input, shape index: {}]   ;;  %s335_s2 = inlined_call_operand.vmem [shape: f32[64,1], index: 2, kind: input, shape index: {}]   ;;  %s336_s3 = inlined_call_operand.vmem [shape: f32[64,128], index: 3, kind: output, shape index: {}]  }
   0x1   :  { %v27_v0 = vld [vmem:[%s333_s1] sm:$0xff]  ;;  %v28_v1 = vld [vmem:[%s333_s1 + $0x8] sm:$0xff]  ;;  %v29_v2 = vld [vmem:[%s333_s1 + $0x10] sm:$0xff]  ;;  %220 = vset.pattern.permute.xlu1 %v221_v3  ;;  %219 = vset.pattern.permute.xlu0 %v221_v3 }
   0x2   :  { %v32_v4 = vpack.c.bf16 %v28_v1, %v27_v0  ;;  %v30_v5 = vld [vmem:[%s333_s1 + $0x18] sm:$0xff]  ;;  %v31_v6 = vld [vmem:[%s333_s1 + $0x20] sm:$0xf]  ;;  %v16_v9 = vld [vmem:[%s334_s0 + $0x8] sm:$0xff] }
   0x3   :  { %v15_v7 = vld [vmem:[%s334_s0] sm:$0xff]  ;;  %v33_v8 = vpack.c.bf16 %v30_v5, %v29_v2  ;;  %v20_v11 = vld [vmem:[%s334_s0 + $0x28] sm:$0xff]  ;;  %v37_v14 = vld [vmem:[%s335_s2 + $0x10] sm:$0xff]  ;;  %v34_v16 = vpack.c.bf16 %v31_v6, %v31_v6 }
   0x4   :  { %v19_v10 = vld [vmem:[%s334_s0 + $0x20] sm:$0xff]  ;;  %196 = vmatprep.subr.bf16.mxu0 %v32_v4  ;;  %210 = vmatprep.subr.bf16.mxu1 %v32_v4  ;;  %v23_v12 = vpack.c.bf16 %v16_v9, %v15_v7  ;;  %v17_v17 = vld [vmem:[%s334_s0 + $0x10] sm:$0xff]  ;;  %v18_v18 = vld [vmem:[%s334_s0 + $0x18] sm:$0xff] }
   0x5   :  { %v25_v13 = vpack.c.bf16 %v20_v11, %v19_v10  ;;  %197 = vmatpush3.bf16.msra.mxu0 %v32_v4  ;;  %213 = vmatpush3.bf16.msra.mxu1 %v32_v4  ;;  %v35_v15 = vld [vmem:[%s335_s2] sm:$0xff]  ;;  %v21_v19 = vld [vmem:[%s334_s0 + $0x30] sm:$0xff]  ;;  %v22_v20 = vld [vmem:[%s334_s0 + $0x38] sm:$0xff]  ;;  %v98_v23 = vsel %vm96_vm1, %v34_v16, 0  ;;  %v24_v24 = vpack.c.bf16 %v18_v18, %v17_v17 }
   0x6   :  { %198 = vmatprep.subr.bf16.mxu0 %v33_v8  ;;  %211 = vmatprep.subr.bf16.mxu1 %v33_v8  ;;  %v38_v21 = vld [vmem:[%s335_s2 + $0x18] sm:$0xff]  ;;  %v36_v22 = vld [vmem:[%s335_s2 + $0x8] sm:$0xff]  ;;  %v26_v25 = vpack.c.bf16 %v22_v20, %v21_v19  ;;  %v39_v27 = vld [vmem:[%s335_s2 + $0x20] sm:$0xff] }
   0x7   :  { %202 = vmatprep.mubr.msk.bf16.mxu0 %vm83_vm0, %v23_v12  ;;  %206 = vmatprep.mubr.msk.bf16.mxu1 %vm83_vm0, %v25_v13  ;;  %v40_v26 = vld [vmem:[%s335_s2 + $0x28] sm:$0xff]  ;;  %v42_v28 = vld [vmem:[%s335_s2 + $0x38] sm:$0xff]  ;;  %v41_v29 = vld [vmem:[%s335_s2 + $0x30] sm:$0xff] }
   0x8   :  { %55 = vperm.xlu1 %220, %v37_v14   ;;  %45 = vperm.xlu0 %219, %v35_v15  }
   0x9   :  { %199 = vmatpush3.bf16.msra.mxu0 %v33_v8  ;;  %214 = vmatpush3.bf16.msra.mxu1 %v33_v8 }
   0xa   :  { %216 = vmatprep.subr.msk.bf16.mxu0 %vm96_vm1, %v34_v16  ;;  %217 = vmatprep.subr.msk.bf16.mxu1 %vm96_vm1, %v34_v16 }
   0xc   :  { %60 = vperm.xlu1 %220, %v38_v21   ;;  %50 = vperm.xlu0 %219, %v36_v22  }
   0xd   :  { %201 = vmatpush3.bf16.msra.mxu0 %v98_v23  ;;  %215 = vmatpush3.bf16.msra.mxu1 %v98_v23 }
  0x10   :  { %203 = vmatmul.mubr.msk.bf16.vlgmr.msra.gmra.mrb[0].mxu0 %vm83_vm0, %v24_v24  ;;  %207 = vmatmul.mubr.msk.bf16.vlgmr.msra.gmra.mrb[0].mxu1 %vm83_vm0, %v26_v25 }
  0x11   :  { %70 = vperm.xlu1 %220, %v40_v26   ;;  %65 = vperm.xlu0 %219, %v39_v27  }
  0x15   :  { %80 = vperm.xlu1 %220, %v42_v28   ;;  %75 = vperm.xlu0 %219, %v41_v29  }
  0x87   :  { %v56_v30 = vpop.permute.xlu1 %55  ;;  %v46_v31 = vpop.permute.xlu0 %45 }
  0x8b   :  { %v61_v32 = vpop.permute.xlu1 %60  ;;  %v51_v33 = vpop.permute.xlu0 %50 }
  0x90   :  { %v71_v34 = vpop.permute.xlu1 %70  ;;  %v66_v35 = vpop.permute.xlu0 %65 }
  0x94   :  { %v81_v36 = vpop.permute.xlu1 %80  ;;  %v76_v37 = vpop.permute.xlu0 %75 }
  0xe3   :  { %v204_v38 = vpop.f32.mrb[0].mxu0  ;;  %v208_v39 = vpop.f32.mrb[0].mxu1 }
  0xe4   :  { %v143_v40 = vadd.f32 %v204_v38, %v56_v30  ;;  %v159_v41 = vadd.f32 %v208_v39, %v76_v37  ;;  %v134_v42 = vpop.f32.mrb[1].mxu0  ;;  %v150_v43 = vpop.f32.mrb[1].mxu1 }
  0xe5   :  { %v135_v44 = vadd.f32 %v134_v42, %v46_v31  ;;  %v151_v45 = vadd.f32 %v150_v43, %v66_v35  ;;  %v205_v46 = vpop.f32.mrb[2].mxu0  ;;  %v209_v47 = vpop.f32.mrb[2].mxu1 }
  0xe6   :  { %v167_v48 = vmax.f32 %v143_v40, 0.0  ;;  %v171_v49 = vmax.f32 %v159_v41, 0.0  ;;  %v146_v50 = vadd.f32 %v205_v46, %v61_v32  ;;  %v162_v51 = vadd.f32 %v209_v47, %v81_v36  ;;  %v137_v52 = vpop.f32.mrb[3].mxu0  ;;  %v153_v53 = vpop.f32.mrb[3].mxu1 }
  0xe7   :  { %v165_v54 = vmax.f32 %v135_v44, 0.0  ;;  %v169_v55 = vmax.f32 %v151_v45, 0.0  ;;  %v138_v56 = vadd.f32 %v137_v52, %v51_v33  ;;  %v154_v57 = vadd.f32 %v153_v53, %v71_v34 }
  0xe8   :  { %175 = vst [vmem:[%s336_s3 + $0x10] sm:$0xff] %v167_v48  ;;  %179 = vst [vmem:[%s336_s3 + $0x30] sm:$0xff] %v171_v49  ;;  %v168_v58 = vmax.f32 %v146_v50, 0.0  ;;  %v172_v59 = vmax.f32 %v162_v51, 0.0 }
  0xe9   :  { %173 = vst [vmem:[%s336_s3] sm:$0xff] %v165_v54  ;;  %177 = vst [vmem:[%s336_s3 + $0x20] sm:$0xff] %v169_v55  ;;  %v166_v60 = vmax.f32 %v138_v56, 0.0  ;;  %v170_v61 = vmax.f32 %v154_v57, 0.0 }
  0xea   :  { %176 = vst [vmem:[%s336_s3 + $0x18] sm:$0xff] %v168_v58  ;;  %180 = vst [vmem:[%s336_s3 + $0x38] sm:$0xff] %v172_v59 }
  0xeb   :  { %174 = vst [vmem:[%s336_s3 + $0x8] sm:$0xff] %v166_v60  ;;  %178 = vst [vmem:[%s336_s3 + $0x28] sm:$0xff] %v170_v61 }

// kernel: began_discriminator_forward.4
= control target key start
LH: loop header
LB: loop body
LE: loop exit
PB: predicated region body
PF: predicated region fallthrough
CT: control target
= control target key end

     0   :  { %v4838_v47 = vmov 1983009808   ;;  %v58_v49 = vlaneseq  ;;  %vm1666_vm0 = vcmask 254976   ;;  %vm2197_vm1 = vcmask 261120   ;;  %s7979_s1 = inlined_call_operand.vmem [shape: f32[4096,32], index: 1, kind: input, shape index: {}]   ;;  %s7980_s0 = inlined_call_operand.vmem [shape: f32[2,4096], index: 0, kind: input, shape index: {}]   ;;  %s7981_s2 = inlined_call_operand.vmem [shape: f32[3,32], index: 2, kind: input, shape index: {}]   ;;  %s7982_s3 = inlined_call_operand.vmem [shape: f32[32,4096], index: 3, kind: input, shape index: {}]   ;;  %s7983_s4 = inlined_call_operand.vmem [shape: f32[3,4096], index: 4, kind: input, shape index: {}]   ;;  %s7984_s5 = inlined_call_operand.vmem [shape: f32[2,4096], index: 5, kind: output, shape index: {}]  }
   0x1   :  { %v270_v0 = vld [vmem:[%s7979_s1 + $0x80] sm:$0xff]  ;;  %v271_v1 = vld [vmem:[%s7979_s1 + $0x88] sm:$0xff]  ;;  %v272_v11 = vld [vmem:[%s7979_s1 + $0x90] sm:$0xff]  ;;  %v56_v48 = vunpack.c.l.s4 %v4838_v47  ;;  %vm2857_vm2 = vcmask 1041408  }
   0x2   :  { %v302_v2 = vld [vmem:[%s7979_s1 + $0x180] sm:$0xff]  ;;  %v774_v3 = vpack.c.bf16 %v271_v1, %v270_v0  ;;  %v303_v4 = vld [vmem:[%s7979_s1 + $0x188] sm:$0xff]  ;;  %v273_v13 = vld [vmem:[%s7979_s1 + $0x98] sm:$0xff]  ;;  %v4996_v0 = vshrl.u32 %v58_v49, 7 }
   0x3   :  { %v254_v5 = vld [vmem:[%s7979_s1] sm:$0xff]  ;;  %v255_v6 = vld [vmem:[%s7979_s1 + $0x8] sm:$0xff]  ;;  %v790_v7 = vpack.c.bf16 %v303_v4, %v302_v2  ;;  %v304_v14 = vld [vmem:[%s7979_s1 + $0x190] sm:$0xff]  ;;  %v775_v16 = vpack.c.bf16 %v273_v13, %v272_v11  ;;  %v57_v63 = vunpack.c.0.s8 %v56_v48 }
   0x4   :  { %v766_v8 = vpack.c.bf16 %v255_v6, %v254_v5  ;;  %v286_v9 = vld [vmem:[%s7979_s1 + $0x100] sm:$0xff]  ;;  %v287_v10 = vld [vmem:[%s7979_s1 + $0x108] sm:$0xff]  ;;  %4406 = vmatprep.subr.bf16.mxu0 %v774_v3  ;;  %v305_v15 = vld [vmem:[%s7979_s1 + $0x198] sm:$0xff] }
   0x5   :  { %v782_v12 = vpack.c.bf16 %v287_v10, %v286_v9  ;;  %4428 = vmatprep.subr.bf16.mxu1 %v790_v7  ;;  %v791_v17 = vpack.c.bf16 %v305_v15, %v304_v14  ;;  %v256_v18 = vld [vmem:[%s7979_s1 + $0x10] sm:$0xff]  ;;  %v257_v19 = vld [vmem:[%s7979_s1 + $0x18] sm:$0xff]  ;;  %v274_v23 = vld [vmem:[%s7979_s1 + $0xa0] sm:$0xff]  ;;  %v5023_v13 = vsub.s32 %v57_v63, %v4996_v0 }
   0x6   :  { %4407 = vmatpush3.bf16.msra.mxu0 %v766_v8  ;;  %v288_v20 = vld [vmem:[%s7979_s1 + $0x110] sm:$0xff]  ;;  %v767_v21 = vpack.c.bf16 %v257_v19, %v256_v18  ;;  %v289_v22 = vld [vmem:[%s7979_s1 + $0x118] sm:$0xff]  ;;  %v275_v24 = vld [vmem:[%s7979_s1 + $0xa8] sm:$0xff] }
   0x7   :  { %4429 = vmatpush3.bf16.msra.mxu1 %v782_v12  ;;  %4408 = vmatprep.subr.bf16.mxu0 %v775_v16  ;;  %v783_v25 = vpack.c.bf16 %v289_v22, %v288_v20  ;;  %v776_v26 = vpack.c.bf16 %v275_v24, %v274_v23  ;;  %v306_v27 = vld [vmem:[%s7979_s1 + $0x1a0] sm:$0xff]  ;;  %v307_v28 = vld [vmem:[%s7979_s1 + $0x1a8] sm:$0xff]  ;;  %v276_v35 = vld [vmem:[%s7979_s1 + $0xb0] sm:$0xff] }
   0x8   :  { %4430 = vmatprep.subr.bf16.mxu1 %v791_v17  ;;  %v258_v29 = vld [vmem:[%s7979_s1 + $0x20] sm:$0xff]  ;;  %v792_v30 = vpack.c.bf16 %v307_v28, %v306_v27  ;;  %v259_v31 = vld [vmem:[%s7979_s1 + $0x28] sm:$0xff]  ;;  %v277_v36 = vld [vmem:[%s7979_s1 + $0xb8] sm:$0xff] }
   0x9   :  { %v290_v32 = vld [vmem:[%s7979_s1 + $0x120] sm:$0xff]  ;;  %v291_v33 = vld [vmem:[%s7979_s1 + $0x128] sm:$0xff]  ;;  %v768_v34 = vpack.c.bf16 %v259_v31, %v258_v29  ;;  %v308_v37 = vld [vmem:[%s7979_s1 + $0x1b0] sm:$0xff]  ;;  %v777_v39 = vpack.c.bf16 %v277_v36, %v276_v35 }
   0xa   :  { %4409 = vmatpush3.bf16.msra.mxu0 %v767_v21  ;;  %v784_v38 = vpack.c.bf16 %v291_v33, %v290_v32  ;;  %v309_v40 = vld [vmem:[%s7979_s1 + $0x1b8] sm:$0xff]  ;;  %v260_v41 = vld [vmem:[%s7979_s1 + $0x30] sm:$0xff]  ;;  %v278_v46 = vld [vmem:[%s7979_s1 + $0xc0] sm:$0xff] }
   0xb   :  { %4431 = vmatpush3.bf16.msra.mxu1 %v783_v25  ;;  %4410 = vmatprep.subr.bf16.mxu0 %v776_v26  ;;  %v261_v42 = vld [vmem:[%s7979_s1 + $0x38] sm:$0xff]  ;;  %v793_v43 = vpack.c.bf16 %v309_v40, %v308_v37  ;;  %v292_v44 = vld [vmem:[%s7979_s1 + $0x130] sm:$0xff]  ;;  %v279_v50 = vld [vmem:[%s7979_s1 + $0xc8] sm:$0xff] }
   0xc   :  { %4432 = vmatprep.subr.bf16.mxu1 %v792_v30  ;;  %v293_v45 = vld [vmem:[%s7979_s1 + $0x138] sm:$0xff]  ;;  %v310_v51 = vld [vmem:[%s7979_s1 + $0x1c0] sm:$0xff]  ;;  %v311_v52 = vld [vmem:[%s7979_s1 + $0x1c8] sm:$0xff]  ;;  %v769_v53 = vpack.c.bf16 %v261_v42, %v260_v41  ;;  %v778_v55 = vpack.c.bf16 %v279_v50, %v278_v46 }
   0xd   :  { %v785_v54 = vpack.c.bf16 %v293_v45, %v292_v44  ;;  %v262_v56 = vld [vmem:[%s7979_s1 + $0x40] sm:$0xff]  ;;  %v263_v57 = vld [vmem:[%s7979_s1 + $0x48] sm:$0xff]  ;;  %v794_v59 = vpack.c.bf16 %v311_v52, %v310_v51  ;;  %v280_v61 = vld [vmem:[%s7979_s1 + $0xd0] sm:$0xff] }
   0xe   :  { %4411 = vmatpush3.bf16.msra.mxu0 %v768_v34  ;;  %v294_v58 = vld [vmem:[%s7979_s1 + $0x140] sm:$0xff]  ;;  %v295_v60 = vld [vmem:[%s7979_s1 + $0x148] sm:$0xff]  ;;  %v281_v62 = vld [vmem:[%s7979_s1 + $0xd8] sm:$0xff]  ;;  %v770_v3 = vpack.c.bf16 %v263_v57, %v262_v56 }
   0xf   :  { %4433 = vmatpush3.bf16.msra.mxu1 %v784_v38  ;;  %4412 = vmatprep.subr.bf16.mxu0 %v777_v39  ;;  %v312_v1 = vld [vmem:[%s7979_s1 + $0x1d0] sm:$0xff]  ;;  %v313_v2 = vld [vmem:[%s7979_s1 + $0x1d8] sm:$0xff]  ;;  %v786_v4 = vpack.c.bf16 %v295_v60, %v294_v58  ;;  %v779_v5 = vpack.c.bf16 %v281_v62, %v280_v61  ;;  %v282_v11 = vld [vmem:[%s7979_s1 + $0xe0] sm:$0xff] }
  0x10   :  { %4434 = vmatprep.subr.bf16.mxu1 %v793_v43  ;;  %v264_v6 = vld [vmem:[%s7979_s1 + $0x50] sm:$0xff]  ;;  %v265_v7 = vld [vmem:[%s7979_s1 + $0x58] sm:$0xff]  ;;  %v795_v9 = vpack.c.bf16 %v313_v2, %v312_v1  ;;  %v283_v12 = vld [vmem:[%s7979_s1 + $0xe8] sm:$0xff] }
  0x11   :  { %v296_v8 = vld [vmem:[%s7979_s1 + $0x150] sm:$0xff]  ;;  %v297_v10 = vld [vmem:[%s7979_s1 + $0x158] sm:$0xff]  ;;  %v314_v14 = vld [vmem:[%s7979_s1 + $0x1e0] sm:$0xff]  ;;  %v771_v16 = vpack.c.bf16 %v265_v7, %v264_v6  ;;  %v780_v19 = vpack.c.bf16 %v283_v12, %v282_v11 }
  0x12   :  { %4413 = vmatpush3.bf16.msra.mxu0 %v769_v53  ;;  %v315_v15 = vld [vmem:[%s7979_s1 + $0x1e8] sm:$0xff]  ;;  %v266_v17 = vld [vmem:[%s7979_s1 + $0x60] sm:$0xff]  ;;  %v787_v18 = vpack.c.bf16 %v297_v10, %v296_v8  ;;  %v284_v25 = vld [vmem:[%s7979_s1 + $0xf0] sm:$0xff] }
  0x13   :  { %4435 = vmatpush3.bf16.msra.mxu1 %v785_v54  ;;  %4414 = vmatprep.subr.bf16.mxu0 %v778_v55  ;;  %v267_v20 = vld [vmem:[%s7979_s1 + $0x68] sm:$0xff]  ;;  %v298_v21 = vld [vmem:[%s7979_s1 + $0x160] sm:$0xff]  ;;  %v796_v23 = vpack.c.bf16 %v315_v15, %v314_v14  ;;  %v285_v26 = vld [vmem:[%s7979_s1 + $0xf8] sm:$0xff] }
  0x14   :  { %4436 = vmatprep.subr.bf16.mxu1 %v794_v59  ;;  %v21_v22 = vld [vmem:[%s7980_s0] sm:$0xff]  ;;  %v299_v24 = vld [vmem:[%s7979_s1 + $0x168] sm:$0xff]  ;;  %v316_v29 = vld [vmem:[%s7979_s1 + $0x1f0] sm:$0xff]  ;;  %v772_v31 = vpack.c.bf16 %v267_v20, %v266_v17  ;;  %v781_v35 = vpack.c.bf16 %v285_v26, %v284_v25 }
  0x15   :  { %v61_v27 = vrot.slane %v21_v22, %v5023_v13  ;;  %v54_v28 = vcombine.high %v21_v22, %v21_v22  ;;  %v317_v30 = vld [vmem:[%s7979_s1 + $0x1f8] sm:$0xff]  ;;  %v788_v34 = vpack.c.bf16 %v299_v24, %v298_v21  ;;  %v268_v36 = vld [vmem:[%s7979_s1 + $0x70] sm:$0xff]  ;;  %v334_v43 = vld [vmem:[%s7979_s1 + $0x280] sm:$0xff] }
  0x16   :  { %4415 = vmatpush3.bf16.msra.mxu0 %v770_v3  ;;  %v269_v37 = vld [vmem:[%s7979_s1 + $0x78] sm:$0xff]  ;;  %v300_v38 = vld [vmem:[%s7979_s1 + $0x170] sm:$0xff]  ;;  %v797_v39 = vpack.c.bf16 %v317_v30, %v316_v29  ;;  %v335_v44 = vld [vmem:[%s7979_s1 + $0x288] sm:$0xff] }
  0x17   :  { %4437 = vmatpush3.bf16.msra.mxu1 %v786_v4  ;;  %4416 = vmatprep.subr.bf16.mxu0 %v779_v5  ;;  %v69_v32 = vcombine.high %v61_v27, %v61_v27  ;;  %v68_v33 = vrot.slane %v54_v28, %v5023_v13  ;;  %v301_v40 = vld [vmem:[%s7979_s1 + $0x178] sm:$0xff]  ;;  %v366_v45 = vld [vmem:[%s7979_s1 + $0x380] sm:$0xff]  ;;  %v367_v46 = vld [vmem:[%s7979_s1 + $0x388] sm:$0xff]  ;;  %v773_v47 = vpack.c.bf16 %v269_v37, %v268_v36 }
  0x18   :  { %4438 = vmatprep.subr.bf16.mxu1 %v795_v9  ;;  %v789_v49 = vpack.c.bf16 %v301_v40, %v300_v38  ;;  %v806_v50 = vpack.c.bf16 %v335_v44, %v334_v43  ;;  %v318_v51 = vld [vmem:[%s7979_s1 + $0x200] sm:$0xff]  ;;  %v319_v52 = vld [vmem:[%s7979_s1 + $0x208] sm:$0xff]  ;;  %v822_v54 = vpack.c.bf16 %v367_v46, %v366_v45  ;;  %v336_v56 = vld [vmem:[%s7979_s1 + $0x290] sm:$0xff]  ;;  %v222_v58 = vpack.c.bf16 %v61_v27, %v61_v27 }
  0x19   :  { %v223_v41 = vpack.c.bf16 %v69_v32, %v69_v32  ;;  %v70_v42 = vcombine.high %v68_v33, %v68_v33  ;;  %v350_v53 = vld [vmem:[%s7979_s1 + $0x300] sm:$0xff]  ;;  %v351_v55 = vld [vmem:[%s7979_s1 + $0x308] sm:$0xff]  ;;  %v337_v57 = vld [vmem:[%s7979_s1 + $0x298] sm:$0xff]  ;;  %v224_v61 = vpack.c.bf16 %v68_v33, %v68_v33  ;;  %v798_v62 = vpack.c.bf16 %v319_v52, %v318_v51 }
  0x1a   :  { %4417 = vmatpush3.bf16.msra.mxu0 %v771_v16  ;;  %v368_v59 = vld [vmem:[%s7979_s1 + $0x390] sm:$0xff]  ;;  %v369_v60 = vld [vmem:[%s7979_s1 + $0x398] sm:$0xff]  ;;  %v814_v63 = vpack.c.bf16 %v351_v55, %v350_v53  ;;  %v807_v1 = vpack.c.bf16 %v337_v57, %v336_v56  ;;  %v338_v7 = vld [vmem:[%s7979_s1 + $0x2a0] sm:$0xff] }
  0x1b   :  { %4439 = vmatpush3.bf16.msra.mxu1 %v787_v18  ;;  %4418 = vmatprep.subr.bf16.mxu0 %v780_v19  ;;  %v225_v48 = vpack.c.bf16 %v70_v42, %v70_v42  ;;  %v320_v2 = vld [vmem:[%s7979_s1 + $0x210] sm:$0xff]  ;;  %v321_v3 = vld [vmem:[%s7979_s1 + $0x218] sm:$0xff]  ;;  %v823_v5 = vpack.c.bf16 %v369_v60, %v368_v59  ;;  %v339_v8 = vld [vmem:[%s7979_s1 + $0x2a8] sm:$0xff] }
  0x1c   :  { %4440 = vmatprep.subr.bf16.mxu1 %v796_v23  ;;  %1058 = vmatprep.mubr.bf16.mxu0 %v223_v41  ;;  %v352_v4 = vld [vmem:[%s7979_s1 + $0x310] sm:$0xff]  ;;  %v353_v6 = vld [vmem:[%s7979_s1 + $0x318] sm:$0xff]  ;;  %v370_v9 = vld [vmem:[%s7979_s1 + $0x3a0] sm:$0xff]  ;;  %v799_v11 = vpack.c.bf16 %v321_v3, %v320_v2  ;;  %v808_v14 = vpack.c.bf16 %v339_v8, %v338_v7 }
  0x1d   :  { %1098 = vmatprep.mubr.bf16.mxu1 %v225_v48  ;;  %v371_v10 = vld [vmem:[%s7979_s1 + $0x3a8] sm:$0xff]  ;;  %v815_v12 = vpack.c.bf16 %v353_v6, %v352_v4  ;;  %v322_v15 = vld [vmem:[%s7979_s1 + $0x220] sm:$0xff]  ;;  %v340_v20 = vld [vmem:[%s7979_s1 + $0x2b0] sm:$0xff] }
  0x1e   :  { %4419 = vmatpush3.bf16.msra.mxu0 %v772_v31  ;;  %v323_v16 = vld [vmem:[%s7979_s1 + $0x228] sm:$0xff]  ;;  %v354_v17 = vld [vmem:[%s7979_s1 + $0x320] sm:$0xff]  ;;  %v824_v18 = vpack.c.bf16 %v371_v10, %v370_v9  ;;  %v341_v21 = vld [vmem:[%s7979_s1 + $0x2b8] sm:$0xff] }
  0x1f   :  { %4441 = vmatpush3.bf16.msra.mxu1 %v788_v34  ;;  %4420 = vmatprep.subr.bf16.mxu0 %v781_v35  ;;  %v355_v19 = vld [vmem:[%s7979_s1 + $0x328] sm:$0xff]  ;;  %v372_v22 = vld [vmem:[%s7979_s1 + $0x3b0] sm:$0xff]  ;;  %v373_v23 = vld [vmem:[%s7979_s1 + $0x3b8] sm:$0xff]  ;;  %v800_v24 = vpack.c.bf16 %v323_v16, %v322_v15  ;;  %v809_v26 = vpack.c.bf16 %v341_v21, %v340_v20 }
  0x20   :  { %4442 = vmatprep.subr.bf16.mxu1 %v797_v39  ;;  %v816_v25 = vpack.c.bf16 %v355_v19, %v354_v17  ;;  %v324_v27 = vld [vmem:[%s7979_s1 + $0x230] sm:$0xff]  ;;  %v325_v28 = vld [vmem:[%s7979_s1 + $0x238] sm:$0xff]  ;;  %v825_v30 = vpack.c.bf16 %v373_v23, %v372_v22  ;;  %v342_v32 = vld [vmem:[%s7979_s1 + $0x2c0] sm:$0xff] }
  0x21   :  { %v356_v29 = vld [vmem:[%s7979_s1 + $0x330] sm:$0xff]  ;;  %v357_v31 = vld [vmem:[%s7979_s1 + $0x338] sm:$0xff]  ;;  %v343_v33 = vld [vmem:[%s7979_s1 + $0x2c8] sm:$0xff]  ;;  %v801_v37 = vpack.c.bf16 %v325_v28, %v324_v27 }
  0x22   :  { %4421 = vmatpush3.bf16.msra.mxu0 %v773_v47  ;;  %v374_v34 = vld [vmem:[%s7979_s1 + $0x3c0] sm:$0xff]  ;;  %v375_v35 = vld [vmem:[%s7979_s1 + $0x3c8] sm:$0xff]  ;;  %v817_v40 = vpack.c.bf16 %v357_v31, %v356_v29  ;;  %v810_v41 = vpack.c.bf16 %v343_v33, %v342_v32  ;;  %v344_v47 = vld [vmem:[%s7979_s1 + $0x2d0] sm:$0xff] }
  0x23   :  { %4443 = vmatpush3.bf16.msra.mxu1 %v789_v49  ;;  %4450 = vmatprep.subr.bf16.mxu0 %v806_v50  ;;  %v22_v36 = vld [vmem:[%s7980_s0 + $0x8] sm:$0xff]  ;;  %v326_v42 = vld [vmem:[%s7979_s1 + $0x240] sm:$0xff]  ;;  %v826_v45 = vpack.c.bf16 %v375_v35, %v374_v34  ;;  %v345_v48 = vld [vmem:[%s7979_s1 + $0x2d8] sm:$0xff] }
  0x24   :  { %4472 = vmatprep.subr.bf16.mxu1 %v822_v54  ;;  %v5184_v38 = vrot.slane %v22_v36, %v5023_v13  ;;  %v71_v39 = vcombine.high %v22_v36, %v22_v36  ;;  %v327_v43 = vld [vmem:[%s7979_s1 + $0x248] sm:$0xff]  ;;  %v358_v44 = vld [vmem:[%s7979_s1 + $0x340] sm:$0xff]  ;;  %v376_v51 = vld [vmem:[%s7979_s1 + $0x3d0] sm:$0xff]  ;;  %v811_v57 = vpack.c.bf16 %v345_v48, %v344_v47 }
  0x25   :  { %1059 = vmatmul.mubr.bf16.vlgmr.msra.gmra.mrb[0].mxu0 %v222_v58  ;;  %v359_v46 = vld [vmem:[%s7979_s1 + $0x348] sm:$0xff]  ;;  %v377_v52 = vld [vmem:[%s7979_s1 + $0x3d8] sm:$0xff]  ;;  %v802_v53 = vpack.c.bf16 %v327_v43, %v326_v42  ;;  %v328_v58 = vld [vmem:[%s7979_s1 + $0x250] sm:$0xff] }
  0x26   :  { %1099 = vmatmul.mubr.bf16.vlgmr.msra.gmra.mrb[0].mxu1 %v224_v61  ;;  %4451 = vmatpush3.bf16.msra.mxu0 %v798_v62  ;;  %v86_v49 = vcombine.high %v5184_v38, %v5184_v38  ;;  %v5207_v50 = vrot.slane %v71_v39, %v5023_v13  ;;  %v818_v56 = vpack.c.bf16 %v359_v46, %v358_v44  ;;  %v329_v59 = vld [vmem:[%s7979_s1 + $0x258] sm:$0xff]  ;;  %v360_v60 = vld [vmem:[%s7979_s1 + $0x350] sm:$0xff]  ;;  %v378_v3 = vld [vmem:[%s7979_s1 + $0x3e0] sm:$0xff] }
  0x27   :  { %4473 = vmatpush3.bf16.msra.mxu1 %v814_v63  ;;  %4452 = vmatprep.subr.bf16.mxu0 %v807_v1  ;;  %v827_v61 = vpack.c.bf16 %v377_v52, %v376_v51  ;;  %v361_v62 = vld [vmem:[%s7979_s1 + $0x358] sm:$0xff]  ;;  %v346_v63 = vld [vmem:[%s7979_s1 + $0x2e0] sm:$0xff]  ;;  %v347_v1 = vld [vmem:[%s7979_s1 + $0x2e8] sm:$0xff] }
  0x28   :  { %4474 = vmatprep.subr.bf16.mxu1 %v823_v5  ;;  %v227_v54 = vpack.c.bf16 %v86_v49, %v86_v49  ;;  %v87_v55 = vcombine.high %v5207_v50, %v5207_v50  ;;  %v379_v4 = vld [vmem:[%s7979_s1 + $0x3e8] sm:$0xff]  ;;  %v803_v5 = vpack.c.bf16 %v329_v59, %v328_v58  ;;  %v819_v6 = vpack.c.bf16 %v361_v62, %v360_v60  ;;  %v330_v8 = vld [vmem:[%s7979_s1 + $0x260] sm:$0xff]  ;;  %v349_v15 = vld [vmem:[%s7979_s1 + $0x2f8] sm:$0xff] }
  0x29   :  { %v812_v7 = vpack.c.bf16 %v347_v1, %v346_v63  ;;  %v331_v9 = vld [vmem:[%s7979_s1 + $0x268] sm:$0xff]  ;;  %v362_v10 = vld [vmem:[%s7979_s1 + $0x360] sm:$0xff]  ;;  %v380_v16 = vld [vmem:[%s7979_s1 + $0x3f0] sm:$0xff]  ;;  %v228_v44 = vpack.c.bf16 %v5207_v50, %v5207_v50 }
  0x2a   :  { %4453 = vmatpush3.bf16.msra.mxu0 %v799_v11  ;;  %1138 = vmatprep.mubr.bf16.mxu0 %v227_v54  ;;  %v229_v2 = vpack.c.bf16 %v87_v55, %v87_v55  ;;  %v828_v11 = vpack.c.bf16 %v379_v4, %v378_v3  ;;  %v381_v17 = vld [vmem:[%s7979_s1 + $0x3f8] sm:$0xff]  ;;  %v332_v21 = vld [vmem:[%s7979_s1 + $0x270] sm:$0xff]  ;;  %v399_v27 = vld [vmem:[%s7979_s1 + $0x488] sm:$0xff] }
  0x2b   :  { %4475 = vmatpush3.bf16.msra.mxu1 %v815_v12  ;;  %4454 = vmatprep.subr.bf16.mxu0 %v808_v14  ;;  %v363_v12 = vld [vmem:[%s7979_s1 + $0x368] sm:$0xff]  ;;  %v348_v14 = vld [vmem:[%s7979_s1 + $0x2f0] sm:$0xff]  ;;  %v333_v22 = vld [vmem:[%s7979_s1 + $0x278] sm:$0xff] }
  0x2c   :  { %4476 = vmatprep.subr.bf16.mxu1 %v824_v18  ;;  %1178 = vmatprep.mubr.bf16.mxu1 %v229_v2  ;;  %v804_v18 = vpack.c.bf16 %v331_v9, %v330_v8  ;;  %v820_v19 = vpack.c.bf16 %v363_v12, %v362_v10  ;;  %v813_v20 = vpack.c.bf16 %v349_v15, %v348_v14  ;;  %v364_v23 = vld [vmem:[%s7979_s1 + $0x370] sm:$0xff]  ;;  %v430_v28 = vld [vmem:[%s7979_s1 + $0x580] sm:$0xff]  ;;  %v431_v29 = vld [vmem:[%s7979_s1 + $0x588] sm:$0xff] }
  0x2d   :  { %v382_v31 = vld [vmem:[%s7979_s1 + $0x400] sm:$0xff]  ;;  %v383_v34 = vld [vmem:[%s7979_s1 + $0x408] sm:$0xff]  ;;  %v400_v39 = vld [vmem:[%s7979_s1 + $0x490] sm:$0xff] }
  0x2e   :  { %4455 = vmatpush3.bf16.msra.mxu0 %v800_v24  ;;  %v829_v24 = vpack.c.bf16 %v381_v17, %v380_v16  ;;  %v414_v35 = vld [vmem:[%s7979_s1 + $0x500] sm:$0xff]  ;;  %v415_v36 = vld [vmem:[%s7979_s1 + $0x508] sm:$0xff]  ;;  %v432_v42 = vld [vmem:[%s7979_s1 + $0x590] sm:$0xff] }
  0x2f   :  { %4477 = vmatpush3.bf16.msra.mxu1 %v816_v25  ;;  %4456 = vmatprep.subr.bf16.mxu0 %v809_v26  ;;  %v365_v25 = vld [vmem:[%s7979_s1 + $0x378] sm:$0xff]  ;;  %v398_v26 = vld [vmem:[%s7979_s1 + $0x480] sm:$0xff]  ;;  %v846_v46 = vpack.c.bf16 %v415_v36, %v414_v35  ;;  %v384_v47 = vld [vmem:[%s7979_s1 + $0x410] sm:$0xff] }
  0x30   :  { %4478 = vmatprep.subr.bf16.mxu1 %v825_v30  ;;  %v805_v30 = vpack.c.bf16 %v333_v22, %v332_v21  ;;  %v821_v32 = vpack.c.bf16 %v365_v25, %v364_v23  ;;  %v838_v33 = vpack.c.bf16 %v399_v27, %v398_v26  ;;  %v433_v43 = vld [vmem:[%s7979_s1 + $0x598] sm:$0xff]  ;;  %v416_v50 = vld [vmem:[%s7979_s1 + $0x510] sm:$0xff]  ;;  %v402_v55 = vld [vmem:[%s7979_s1 + $0x4a0] sm:$0xff] }
  0x31   :  { %v385_v49 = vld [vmem:[%s7979_s1 + $0x418] sm:$0xff]  ;;  %v855_v54 = vpack.c.bf16 %v433_v43, %v432_v42  ;;  %v435_v58 = vld [vmem:[%s7979_s1 + $0x5a8] sm:$0xff]  ;;  %v386_v1 = vld [vmem:[%s7979_s1 + $0x420] sm:$0xff] }
  0x32   :  { %4457 = vmatpush3.bf16.msra.mxu0 %v801_v37  ;;  %v854_v37 = vpack.c.bf16 %v431_v29, %v430_v28  ;;  %v417_v51 = vld [vmem:[%s7979_s1 + $0x518] sm:$0xff]  ;;  %v387_v2 = vld [vmem:[%s7979_s1 + $0x428] sm:$0xff]  ;;  %v418_v3 = vld [vmem:[%s7979_s1 + $0x520] sm:$0xff] }
  0x33   :  { %4479 = vmatpush3.bf16.msra.mxu1 %v817_v40  ;;  %4458 = vmatprep.subr.bf16.mxu0 %v810_v41  ;;  %v401_v40 = vld [vmem:[%s7979_s1 + $0x498] sm:$0xff]  ;;  %v226_v41 = vpack.c.bf16 %v5184_v38, %v5184_v38  ;;  %v23_v38 = vld [vmem:[%s7980_s0 + $0x10] sm:$0xff]  ;;  %v847_v62 = vpack.c.bf16 %v417_v51, %v416_v50  ;;  %v832_v14 = vpack.c.bf16 %v387_v2, %v386_v1  ;;  %v406_v22 = vld [vmem:[%s7979_s1 + $0x4c0] sm:$0xff] }
  0x34   :  { %4480 = vmatprep.subr.bf16.mxu1 %v826_v45  ;;  %v830_v45 = vpack.c.bf16 %v383_v34, %v382_v31  ;;  %v839_v48 = vpack.c.bf16 %v401_v40, %v400_v39  ;;  %v5333_v52 = vrot.slane %v23_v38, %v5023_v13  ;;  %v404_v8 = vld [vmem:[%s7979_s1 + $0x4b0] sm:$0xff]  ;;  %v405_v9 = vld [vmem:[%s7979_s1 + $0x4b8] sm:$0xff]  ;;  %v407_v23 = vld [vmem:[%s7979_s1 + $0x4c8] sm:$0xff] }
  0x35   :  { %v436_v10 = vld [vmem:[%s7979_s1 + $0x5b0] sm:$0xff]  ;;  %v841_v16 = vpack.c.bf16 %v405_v9, %v404_v8  ;;  %v421_v21 = vld [vmem:[%s7979_s1 + $0x538] sm:$0xff]  ;;  %v439_v25 = vld [vmem:[%s7979_s1 + $0x5c8] sm:$0xff]  ;;  %v842_v28 = vpack.c.bf16 %v407_v23, %v406_v22 }
  0x36   :  { %4459 = vmatpush3.bf16.msra.mxu0 %v802_v53  ;;  %v88_v53 = vcombine.high %v23_v38, %v23_v38  ;;  %v103_v59 = vcombine.high %v5333_v52, %v5333_v52  ;;  %v388_v17 = vld [vmem:[%s7979_s1 + $0x430] sm:$0xff]  ;;  %v390_v29 = vld [vmem:[%s7979_s1 + $0x440] sm:$0xff]  ;;  %v409_v35 = vld [vmem:[%s7979_s1 + $0x4d8] sm:$0xff] }
  0x37   :  { %4481 = vmatpush3.bf16.msra.mxu1 %v818_v56  ;;  %4460 = vmatprep.subr.bf16.mxu0 %v811_v57  ;;  %v403_v56 = vld [vmem:[%s7979_s1 + $0x4a8] sm:$0xff]  ;;  %v434_v57 = vld [vmem:[%s7979_s1 + $0x5a0] sm:$0xff]  ;;  %v408_v34 = vld [vmem:[%s7979_s1 + $0x4d0] sm:$0xff] }
  0x38   :  { %4482 = vmatprep.subr.bf16.mxu1 %v827_v61  ;;  %v5350_v60 = vrot.slane %v88_v53, %v5023_v13  ;;  %v831_v61 = vpack.c.bf16 %v385_v49, %v384_v47  ;;  %v840_v63 = vpack.c.bf16 %v403_v56, %v402_v55  ;;  %v231_v4 = vpack.c.bf16 %v103_v59, %v103_v59  ;;  %v422_v31 = vld [vmem:[%s7979_s1 + $0x540] sm:$0xff]  ;;  %v440_v36 = vld [vmem:[%s7979_s1 + $0x5d0] sm:$0xff]  ;;  %v393_v43 = vld [vmem:[%s7979_s1 + $0x458] sm:$0xff] }
  0x39   :  { %v392_v42 = vld [vmem:[%s7979_s1 + $0x450] sm:$0xff]  ;;  %v410_v47 = vld [vmem:[%s7979_s1 + $0x4e0] sm:$0xff]  ;;  %v411_v38 = vld [vmem:[%s7979_s1 + $0x4e8] sm:$0xff] }
  0x3a   :  { %4461 = vmatpush3.bf16.msra.mxu0 %v803_v5  ;;  %v104_v5 = vcombine.high %v5350_v60, %v5350_v60  ;;  %v443_v49 = vld [vmem:[%s7979_s1 + $0x5e8] sm:$0xff]  ;;  %v835_v50 = vpack.c.bf16 %v393_v43, %v392_v42  ;;  %v394_v51 = vld [vmem:[%s7979_s1 + $0x460] sm:$0xff]  ;;  %v412_v59 = vld [vmem:[%s7979_s1 + $0x4f0] sm:$0xff] }
  0x3b   :  { %4483 = vmatpush3.bf16.msra.mxu1 %v819_v6  ;;  %4462 = vmatprep.subr.bf16.mxu0 %v812_v7  ;;  %v856_v6 = vpack.c.bf16 %v435_v58, %v434_v57  ;;  %v419_v7 = vld [vmem:[%s7979_s1 + $0x528] sm:$0xff]  ;;  %v426_v56 = vld [vmem:[%s7979_s1 + $0x560] sm:$0xff]  ;;  %v445_v1 = vld [vmem:[%s7979_s1 + $0x5f8] sm:$0xff] }
  0x3c   :  { %4484 = vmatprep.subr.bf16.mxu1 %v828_v11  ;;  %v437_v11 = vld [vmem:[%s7979_s1 + $0x5b8] sm:$0xff]  ;;  %v233_v12 = vpack.c.bf16 %v104_v5, %v104_v5  ;;  %v848_v15 = vpack.c.bf16 %v419_v7, %v418_v3  ;;  %v395_v55 = vld [vmem:[%s7979_s1 + $0x468] sm:$0xff]  ;;  %v428_v8 = vld [vmem:[%s7979_s1 + $0x570] sm:$0xff] }
  0x3d   :  { %v427_v57 = vld [vmem:[%s7979_s1 + $0x568] sm:$0xff]  ;;  %v836_v3 = vpack.c.bf16 %v395_v55, %v394_v51  ;;  %v397_v7 = vld [vmem:[%s7979_s1 + $0x478] sm:$0xff]  ;;  %v478_v23 = vld [vmem:[%s7979_s1 + $0x700] sm:$0xff] }
  0x3e   :  { %4463 = vmatpush3.bf16.msra.mxu0 %v804_v18  ;;  %v389_v18 = vld [vmem:[%s7979_s1 + $0x438] sm:$0xff]  ;;  %v447_v22 = vld [vmem:[%s7979_s1 + $0x608] sm:$0xff]  ;;  %v482_v51 = vld [vmem:[%s7979_s1 + $0x720] sm:$0xff] }
  0x3f   :  { %4485 = vmatpush3.bf16.msra.mxu1 %v820_v19  ;;  %4464 = vmatprep.subr.bf16.mxu0 %v813_v20  ;;  %v420_v19 = vld [vmem:[%s7979_s1 + $0x530] sm:$0xff]  ;;  %v857_v20 = vpack.c.bf16 %v437_v11, %v436_v10  ;;  %v833_v26 = vpack.c.bf16 %v389_v18, %v388_v17  ;;  %v429_v10 = vld [vmem:[%s7979_s1 + $0x578] sm:$0xff]  ;;  %v462_v11 = vld [vmem:[%s7979_s1 + $0x680] sm:$0xff] }
  0x40   :  { %4486 = vmatprep.subr.bf16.mxu1 %v829_v24  ;;  %v438_v24 = vld [vmem:[%s7979_s1 + $0x5c0] sm:$0xff]  ;;  %v849_v27 = vpack.c.bf16 %v421_v21, %v420_v19  ;;  %v853_v19 = vpack.c.bf16 %v429_v10, %v428_v8  ;;  %v467_v42 = vld [vmem:[%s7979_s1 + $0x6a8] sm:$0xff]  ;;  %v468_v55 = vld [vmem:[%s7979_s1 + $0x6b0] sm:$0xff] }
  0x41   :  { %v446_v21 = vld [vmem:[%s7979_s1 + $0x600] sm:$0xff]  ;;  %v503_v8 = vld [vmem:[%s7979_s1 + $0x7c8] sm:$0xff] }
  0x42   :  { %4465 = vmatpush3.bf16.msra.mxu0 %v805_v30  ;;  %v391_v30 = vld [vmem:[%s7979_s1 + $0x448] sm:$0xff] }
  0x43   :  { %4487 = vmatpush3.bf16.msra.mxu1 %v821_v32  ;;  %4494 = vmatprep.subr.bf16.mxu0 %v838_v33  ;;  %v858_v32 = vpack.c.bf16 %v439_v25, %v438_v24  ;;  %v423_v33 = vld [vmem:[%s7979_s1 + $0x548] sm:$0xff]  ;;  %v834_v39 = vpack.c.bf16 %v391_v30, %v390_v29  ;;  %v230_v29 = vpack.c.bf16 %v5333_v52, %v5333_v52  ;;  %v496_v30 = vld [vmem:[%s7979_s1 + $0x790] sm:$0xff] }
  0x44   :  { %4516 = vmatprep.subr.bf16.mxu1 %v854_v37  ;;  %v441_v37 = vld [vmem:[%s7979_s1 + $0x5d8] sm:$0xff]  ;;  %v850_v40 = vpack.c.bf16 %v423_v33, %v422_v31  ;;  %v479_v25 = vld [vmem:[%s7979_s1 + $0x708] sm:$0xff]  ;;  %v232_v33 = vpack.c.bf16 %v5350_v60, %v5350_v60 }
  0x45   :  { %1139 = vmatmul.mubr.bf16.vlgmr.msra.gmra.mrb[4].mxu0 %v226_v41  ;;  %v843_v41 = vpack.c.bf16 %v409_v35, %v408_v34  ;;  %v497_v31 = vld [vmem:[%s7979_s1 + $0x798] sm:$0xff]  ;;  %v862_v34 = vpack.c.bf16 %v447_v22, %v446_v21  ;;  %v878_v35 = vpack.c.bf16 %v479_v25, %v478_v23  ;;  %v504_v22 = vld [vmem:[%s7979_s1 + $0x7d0] sm:$0xff] }
  0x46   :  { %1179 = vmatmul.mubr.bf16.vlgmr.msra.gmra.mrb[4].mxu1 %v228_v44  ;;  %4495 = vmatpush3.bf16.msra.mxu0 %v830_v45  ;;  %v424_v44 = vld [vmem:[%s7979_s1 + $0x550] sm:$0xff]  ;;  %v859_v45 = vpack.c.bf16 %v441_v37, %v440_v36  ;;  %v449_v37 = vld [vmem:[%s7979_s1 + $0x618] sm:$0xff] }
  0x47   :  { %4517 = vmatpush3.bf16.msra.mxu1 %v846_v46  ;;  %4496 = vmatprep.subr.bf16.mxu0 %v839_v48  ;;  %v425_v46 = vld [vmem:[%s7979_s1 + $0x558] sm:$0xff]  ;;  %v442_v48 = vld [vmem:[%s7979_s1 + $0x5e0] sm:$0xff]  ;;  %v448_v36 = vld [vmem:[%s7979_s1 + $0x610] sm:$0xff] }
  0x48   :  { %4518 = vmatprep.subr.bf16.mxu1 %v855_v54  ;;  %1218 = vmatprep.mubr.bf16.mxu0 %v231_v4  ;;  %v851_v53 = vpack.c.bf16 %v425_v46, %v424_v44  ;;  %v844_v54 = vpack.c.bf16 %v411_v38, %v410_v47  ;;  %v860_v58 = vpack.c.bf16 %v443_v49, %v442_v48  ;;  %v481_v60 = vld [vmem:[%s7979_s1 + $0x718] sm:$0xff]  ;;  %v498_v44 = vld [vmem:[%s7979_s1 + $0x7a0] sm:$0xff] }
  0x49   :  { %1258 = vmatprep.mubr.bf16.mxu1 %v233_v12  ;;  %v852_v4 = vpack.c.bf16 %v427_v57, %v426_v56  ;;  %v463_v12 = vld [vmem:[%s7979_s1 + $0x688] sm:$0xff]  ;;  %v863_v47 = vpack.c.bf16 %v449_v37, %v448_v36  ;;  %v450_v49 = vld [vmem:[%s7979_s1 + $0x620] sm:$0xff]  ;;  %v469_v56 = vld [vmem:[%s7979_s1 + $0x6b8] sm:$0xff] }
  0x4a   :  { %4497 = vmatpush3.bf16.msra.mxu0 %v831_v61  ;;  %v413_v61 = vld [vmem:[%s7979_s1 + $0x4f8] sm:$0xff]  ;;  %v500_v57 = vld [vmem:[%s7979_s1 + $0x7b0] sm:$0xff]  ;;  %v25_v36 = vld [vmem:[%s7980_s0 + $0x20] sm:$0xff] }
  0x4b   :  { %4519 = vmatpush3.bf16.msra.mxu1 %v847_v62  ;;  %4498 = vmatprep.subr.bf16.mxu0 %v840_v63  ;;  %v24_v62 = vld [vmem:[%s7980_s0 + $0x18] sm:$0xff]  ;;  %v444_v63 = vld [vmem:[%s7979_s1 + $0x5f0] sm:$0xff]  ;;  %v845_v5 = vpack.c.bf16 %v413_v61, %v412_v59 }
  0x4c   :  { %4520 = vmatprep.subr.bf16.mxu1 %v856_v6  ;;  %v105_v2 = vcombine.high %v24_v62, %v24_v62  ;;  %v396_v6 = vld [vmem:[%s7979_s1 + $0x470] sm:$0xff]  ;;  %v861_v9 = vpack.c.bf16 %v445_v1, %v444_v63  ;;  %v453_v1 = vld [vmem:[%s7979_s1 + $0x638] sm:$0xff] }
  0x4d   :  { %v837_v18 = vpack.c.bf16 %v397_v7, %v396_v6  ;;  %v452_v63 = vld [vmem:[%s7979_s1 + $0x630] sm:$0xff]  ;;  %v471_v6 = vld [vmem:[%s7979_s1 + $0x6c8] sm:$0xff]  ;;  %v502_v7 = vld [vmem:[%s7979_s1 + $0x7c0] sm:$0xff] }
  0x4e   :  { %4499 = vmatpush3.bf16.msra.mxu0 %v832_v14  ;;  %v5496_v14 = vrot.slane %v24_v62, %v5023_v13  ;;  %v5505_v17 = vrot.slane %v105_v2, %v5023_v13  ;;  %v873_v62 = vpack.c.bf16 %v469_v56, %v468_v55  ;;  %v484_v2 = vld [vmem:[%s7979_s1 + $0x730] sm:$0xff]  ;;  %v473_v21 = vld [vmem:[%s7979_s1 + $0x6d8] sm:$0xff] }
  0x4f   :  { %4521 = vmatpush3.bf16.msra.mxu1 %v848_v15  ;;  %4500 = vmatprep.subr.bf16.mxu0 %v841_v16  ;;  %v494_v15 = vld [vmem:[%s7979_s1 + $0x780] sm:$0xff]  ;;  %v495_v16 = vld [vmem:[%s7979_s1 + $0x788] sm:$0xff]  ;;  %v505_v23 = vld [vmem:[%s7979_s1 + $0x7d8] sm:$0xff] }
  0x50   :  { %4522 = vmatprep.subr.bf16.mxu1 %v857_v20  ;;  %v870_v20 = vpack.c.bf16 %v463_v12, %v462_v11  ;;  %v886_v24 = vpack.c.bf16 %v495_v16, %v494_v15  ;;  %v454_v12 = vld [vmem:[%s7979_s1 + $0x640] sm:$0xff]  ;;  %v455_v15 = vld [vmem:[%s7979_s1 + $0x648] sm:$0xff]  ;;  %v493_v56 = vld [vmem:[%s7979_s1 + $0x778] sm:$0xff] }
  0x51   :  { %v486_v16 = vld [vmem:[%s7979_s1 + $0x740] sm:$0xff] }
  0x52   :  { %4501 = vmatpush3.bf16.msra.mxu0 %v833_v26  ;;  %v464_v26 = vld [vmem:[%s7979_s1 + $0x690] sm:$0xff] }
  0x53   :  { %4523 = vmatpush3.bf16.msra.mxu1 %v849_v27  ;;  %4502 = vmatprep.subr.bf16.mxu0 %v842_v28  ;;  %v465_v27 = vld [vmem:[%s7979_s1 + $0x698] sm:$0xff]  ;;  %v120_v28 = vcombine.high %v5496_v14, %v5496_v14 }
  0x54   :  { %4524 = vmatprep.subr.bf16.mxu1 %v858_v32  ;;  %v121_v32 = vcombine.high %v5505_v17, %v5505_v17  ;;  %v871_v52 = vpack.c.bf16 %v465_v27, %v464_v26  ;;  %v456_v27 = vld [vmem:[%s7979_s1 + $0x650] sm:$0xff] }
  0x55   :  { %v235_v43 = vpack.c.bf16 %v120_v28, %v120_v28  ;;  %v457_v28 = vld [vmem:[%s7979_s1 + $0x658] sm:$0xff] }
  0x56   :  { %4503 = vmatpush3.bf16.msra.mxu0 %v834_v39  ;;  %v480_v39 = vld [vmem:[%s7979_s1 + $0x710] sm:$0xff]  ;;  %v237_v46 = vpack.c.bf16 %v121_v32, %v121_v32  ;;  %v474_v32 = vld [vmem:[%s7979_s1 + $0x6e0] sm:$0xff] }
  0x57   :  { %4525 = vmatpush3.bf16.msra.mxu1 %v850_v40  ;;  %4504 = vmatprep.subr.bf16.mxu0 %v843_v41  ;;  %v887_v40 = vpack.c.bf16 %v497_v31, %v496_v30  ;;  %v466_v41 = vld [vmem:[%s7979_s1 + $0x6a0] sm:$0xff]  ;;  %v879_v38 = vpack.c.bf16 %v481_v60, %v480_v39  ;;  %v891_v30 = vpack.c.bf16 %v505_v23, %v504_v22  ;;  %v489_v31 = vld [vmem:[%s7979_s1 + $0x758] sm:$0xff]  ;;  %v459_v60 = vld [vmem:[%s7979_s1 + $0x668] sm:$0xff] }
  0x58   :  { %4526 = vmatprep.subr.bf16.mxu1 %v859_v45  ;;  %v499_v45 = vld [vmem:[%s7979_s1 + $0x7a8] sm:$0xff]  ;;  %v872_v48 = vpack.c.bf16 %v467_v42, %v466_v41  ;;  %v490_v41 = vld [vmem:[%s7979_s1 + $0x760] sm:$0xff]  ;;  %v512_v22 = vld [vmem:[%s7979_s1 + $0x810] sm:$0xff] }
  0x59   :  { %v513_v23 = vld [vmem:[%s7979_s1 + $0x818] sm:$0xff] }
  0x5a   :  { %4505 = vmatpush3.bf16.msra.mxu0 %v835_v50  ;;  %v451_v50 = vld [vmem:[%s7979_s1 + $0x628] sm:$0xff] }
  0x5b   :  { %4527 = vmatpush3.bf16.msra.mxu1 %v851_v53  ;;  %4506 = vmatprep.subr.bf16.mxu0 %v844_v54  ;;  %v888_v53 = vpack.c.bf16 %v499_v45, %v498_v44  ;;  %v483_v54 = vld [vmem:[%s7979_s1 + $0x728] sm:$0xff]  ;;  %v864_v59 = vpack.c.bf16 %v451_v50, %v450_v49  ;;  %v476_v44 = vld [vmem:[%s7979_s1 + $0x6f0] sm:$0xff]  ;;  %v477_v45 = vld [vmem:[%s7979_s1 + $0x6f8] sm:$0xff] }
  0x5c   :  { %4528 = vmatprep.subr.bf16.mxu1 %v860_v58  ;;  %v501_v58 = vld [vmem:[%s7979_s1 + $0x7b8] sm:$0xff]  ;;  %v880_v61 = vpack.c.bf16 %v483_v54, %v482_v51  ;;  %v877_v50 = vpack.c.bf16 %v477_v45, %v476_v44  ;;  %v460_v51 = vld [vmem:[%s7979_s1 + $0x670] sm:$0xff] }
  0x5d   :  { %v492_v54 = vld [vmem:[%s7979_s1 + $0x770] sm:$0xff] }
  0x5e   :  { %4507 = vmatpush3.bf16.msra.mxu0 %v836_v3  ;;  %v889_v3 = vpack.c.bf16 %v501_v58, %v500_v57  ;;  %v526_v57 = vld [vmem:[%s7979_s1 + $0x880] sm:$0xff]  ;;  %v527_v58 = vld [vmem:[%s7979_s1 + $0x888] sm:$0xff] }
  0x5f   :  { %4529 = vmatpush3.bf16.msra.mxu1 %v852_v4  ;;  %4508 = vmatprep.subr.bf16.mxu0 %v845_v5  ;;  %v485_v4 = vld [vmem:[%s7979_s1 + $0x738] sm:$0xff]  ;;  %v470_v5 = vld [vmem:[%s7979_s1 + $0x6c0] sm:$0xff] }
  0x60   :  { %4530 = vmatprep.subr.bf16.mxu1 %v861_v9  ;;  %v865_v9 = vpack.c.bf16 %v453_v1, %v452_v63  ;;  %v881_v10 = vpack.c.bf16 %v485_v4, %v484_v2  ;;  %v874_v11 = vpack.c.bf16 %v471_v6, %v470_v5  ;;  %v885_v2 = vpack.c.bf16 %v493_v56, %v492_v54  ;;  %v510_v4 = vld [vmem:[%s7979_s1 + $0x800] sm:$0xff]  ;;  %v511_v5 = vld [vmem:[%s7979_s1 + $0x808] sm:$0xff] }
  0x61   :  { %v542_v6 = vld [vmem:[%s7979_s1 + $0x900] sm:$0xff]  ;;  %v567_v54 = vld [vmem:[%s7979_s1 + $0x9c8] sm:$0xff] }
  0x62   :  { %4509 = vmatpush3.bf16.msra.mxu0 %v837_v18  ;;  %v890_v18 = vpack.c.bf16 %v503_v8, %v502_v7  ;;  %v543_v8 = vld [vmem:[%s7979_s1 + $0x908] sm:$0xff] }
  0x63   :  { %4531 = vmatpush3.bf16.msra.mxu1 %v853_v19  ;;  %4538 = vmatprep.subr.bf16.mxu0 %v870_v20  ;;  %v487_v19 = vld [vmem:[%s7979_s1 + $0x748] sm:$0xff]  ;;  %v472_v20 = vld [vmem:[%s7979_s1 + $0x6d0] sm:$0xff] }
  0x64   :  { %4560 = vmatprep.subr.bf16.mxu1 %v886_v24  ;;  %v866_v24 = vpack.c.bf16 %v455_v15, %v454_v12  ;;  %v882_v25 = vpack.c.bf16 %v487_v19, %v486_v16  ;;  %v875_v26 = vpack.c.bf16 %v473_v21, %v472_v20  ;;  %v234_v12 = vpack.c.bf16 %v5496_v14, %v5496_v14  ;;  %v560_v15 = vld [vmem:[%s7979_s1 + $0x990] sm:$0xff]  ;;  %v561_v16 = vld [vmem:[%s7979_s1 + $0x998] sm:$0xff] }
  0x65   :  { %1219 = vmatmul.mubr.bf16.vlgmr.msra.gmra.mrb[8].mxu0 %v230_v29  ;;  %v488_v29 = vld [vmem:[%s7979_s1 + $0x750] sm:$0xff]  ;;  %v236_v19 = vpack.c.bf16 %v5505_v17, %v5505_v17  ;;  %v894_v20 = vpack.c.bf16 %v511_v5, %v510_v4  ;;  %v910_v21 = vpack.c.bf16 %v543_v8, %v542_v6  ;;  %v545_v17 = vld [vmem:[%s7979_s1 + $0x918] sm:$0xff] }
  0x66   :  { %1259 = vmatmul.mubr.bf16.vlgmr.msra.gmra.mrb[8].mxu1 %v232_v33  ;;  %4539 = vmatpush3.bf16.msra.mxu0 %v862_v34  ;;  %v475_v33 = vld [vmem:[%s7979_s1 + $0x6e8] sm:$0xff]  ;;  %v506_v34 = vld [vmem:[%s7979_s1 + $0x7e0] sm:$0xff]  ;;  %v883_v37 = vpack.c.bf16 %v489_v31, %v488_v29  ;;  %v537_v4 = vld [vmem:[%s7979_s1 + $0x8d8] sm:$0xff] }
  0x67   :  { %4561 = vmatpush3.bf16.msra.mxu1 %v878_v35  ;;  %4540 = vmatprep.subr.bf16.mxu0 %v871_v52  ;;  %v507_v35 = vld [vmem:[%s7979_s1 + $0x7e8] sm:$0xff]  ;;  %v867_v52 = vpack.c.bf16 %v457_v28, %v456_v27  ;;  %v876_v39 = vpack.c.bf16 %v475_v33, %v474_v32  ;;  %v562_v29 = vld [vmem:[%s7979_s1 + $0x9a0] sm:$0xff]  ;;  %v895_v32 = vpack.c.bf16 %v513_v23, %v512_v22  ;;  %v568_v5 = vld [vmem:[%s7979_s1 + $0x9d0] sm:$0xff] }
  0x68   :  { %4562 = vmatprep.subr.bf16.mxu1 %v887_v40  ;;  %1298 = vmatprep.mubr.bf16.mxu0 %v235_v43  ;;  %v458_v40 = vld [vmem:[%s7979_s1 + $0x660] sm:$0xff]  ;;  %v892_v42 = vpack.c.bf16 %v507_v35, %v506_v34  ;;  %v491_v43 = vld [vmem:[%s7979_s1 + $0x768] sm:$0xff]  ;;  %v569_v6 = vld [vmem:[%s7979_s1 + $0x9d8] sm:$0xff] }
  0x69   :  { %1338 = vmatprep.mubr.bf16.mxu1 %v237_v46  ;;  %v508_v46 = vld [vmem:[%s7979_s1 + $0x7f0] sm:$0xff]  ;;  %v884_v49 = vpack.c.bf16 %v491_v43, %v490_v41  ;;  %v531_v27 = vld [vmem:[%s7979_s1 + $0x8a8] sm:$0xff]  ;;  %v514_v35 = vld [vmem:[%s7979_s1 + $0x820] sm:$0xff] }
  0x6a   :  { %4541 = vmatpush3.bf16.msra.mxu0 %v863_v47  ;;  %v509_v47 = vld [vmem:[%s7979_s1 + $0x7f8] sm:$0xff]  ;;  %v564_v41 = vld [vmem:[%s7979_s1 + $0x9b0] sm:$0xff]  ;;  %v26_v22 = vld [vmem:[%s7980_s0 + $0x28] sm:$0xff] }
  0x6b   :  { %4563 = vmatpush3.bf16.msra.mxu1 %v879_v38  ;;  %4542 = vmatprep.subr.bf16.mxu0 %v872_v48  ;;  %v122_v38 = vcombine.high %v25_v36, %v25_v36  ;;  %v868_v48 = vpack.c.bf16 %v459_v60, %v458_v40  ;;  %v893_v55 = vpack.c.bf16 %v509_v47, %v508_v46  ;;  %v532_v40 = vld [vmem:[%s7979_s1 + $0x8b0] sm:$0xff]  ;;  %v533_v60 = vld [vmem:[%s7979_s1 + $0x8b8] sm:$0xff] }
  0x6c   :  { %4564 = vmatprep.subr.bf16.mxu1 %v888_v53  ;;  %v461_v53 = vld [vmem:[%s7979_s1 + $0x678] sm:$0xff]  ;;  %v905_v45 = vpack.c.bf16 %v533_v60, %v532_v40  ;;  %v516_v46 = vld [vmem:[%s7979_s1 + $0x830] sm:$0xff] }
  0x6d   :  { %v5714_v63 = vrot.slane %v122_v38, %v5023_v13  ;;  %v869_v1 = vpack.c.bf16 %v461_v53, %v460_v51  ;;  %v517_v47 = vld [vmem:[%s7979_s1 + $0x838] sm:$0xff]  ;;  %v548_v38 = vld [vmem:[%s7979_s1 + $0x930] sm:$0xff]  ;;  %v535_v51 = vld [vmem:[%s7979_s1 + $0x8c8] sm:$0xff] }
  0x6e   :  { %4543 = vmatpush3.bf16.msra.mxu0 %v864_v59  ;;  %v5705_v59 = vrot.slane %v25_v36, %v5023_v13  ;;  %v546_v36 = vld [vmem:[%s7979_s1 + $0x920] sm:$0xff]  ;;  %v557_v60 = vld [vmem:[%s7979_s1 + $0x978] sm:$0xff] }
  0x6f   :  { %4565 = vmatpush3.bf16.msra.mxu1 %v880_v61  ;;  %4544 = vmatprep.subr.bf16.mxu0 %v873_v62  ;;  %v558_v61 = vld [vmem:[%s7979_s1 + $0x980] sm:$0xff]  ;;  %v559_v62 = vld [vmem:[%s7979_s1 + $0x988] sm:$0xff] }
  0x70   :  { %4566 = vmatprep.subr.bf16.mxu1 %v889_v3  ;;  %v902_v3 = vpack.c.bf16 %v527_v58, %v526_v57  ;;  %v918_v7 = vpack.c.bf16 %v559_v62, %v558_v61  ;;  %v566_v53 = vld [vmem:[%s7979_s1 + $0x9c0] sm:$0xff]  ;;  %v519_v61 = vld [vmem:[%s7979_s1 + $0x848] sm:$0xff] }
  0x71   :  { %v518_v58 = vld [vmem:[%s7979_s1 + $0x840] sm:$0xff] }
  0x72   :  { %4545 = vmatpush3.bf16.msra.mxu0 %v865_v9  ;;  %v528_v9 = vld [vmem:[%s7979_s1 + $0x890] sm:$0xff]  ;;  %v550_v62 = vld [vmem:[%s7979_s1 + $0x940] sm:$0xff] }
  0x73   :  { %4567 = vmatpush3.bf16.msra.mxu1 %v881_v10  ;;  %4546 = vmatprep.subr.bf16.mxu0 %v874_v11  ;;  %v529_v10 = vld [vmem:[%s7979_s1 + $0x898] sm:$0xff]  ;;  %v137_v11 = vcombine.high %v5705_v59, %v5705_v59 }
  0x74   :  { %4568 = vmatprep.subr.bf16.mxu1 %v890_v18  ;;  %v138_v18 = vcombine.high %v5714_v63, %v5714_v63  ;;  %v903_v14 = vpack.c.bf16 %v529_v10, %v528_v9  ;;  %v520_v10 = vld [vmem:[%s7979_s1 + $0x850] sm:$0xff] }
  0x75   :  { %v239_v28 = vpack.c.bf16 %v137_v11, %v137_v11  ;;  %v521_v11 = vld [vmem:[%s7979_s1 + $0x858] sm:$0xff] }
  0x76   :  { %4547 = vmatpush3.bf16.msra.mxu0 %v866_v24  ;;  %v544_v24 = vld [vmem:[%s7979_s1 + $0x910] sm:$0xff]  ;;  %v241_v31 = vpack.c.bf16 %v138_v18, %v138_v18  ;;  %v538_v18 = vld [vmem:[%s7979_s1 + $0x8e0] sm:$0xff] }
  0x77   :  { %4569 = vmatpush3.bf16.msra.mxu1 %v882_v25  ;;  %4548 = vmatprep.subr.bf16.mxu0 %v875_v26  ;;  %v919_v25 = vpack.c.bf16 %v561_v16, %v560_v15  ;;  %v530_v26 = vld [vmem:[%s7979_s1 + $0x8a0] sm:$0xff]  ;;  %v911_v33 = vpack.c.bf16 %v545_v17, %v544_v24  ;;  %v923_v15 = vpack.c.bf16 %v569_v6, %v568_v5  ;;  %v553_v16 = vld [vmem:[%s7979_s1 + $0x958] sm:$0xff]  ;;  %v523_v17 = vld [vmem:[%s7979_s1 + $0x868] sm:$0xff] }
  0x78   :  { %4570 = vmatprep.subr.bf16.mxu1 %v891_v30  ;;  %v563_v30 = vld [vmem:[%s7979_s1 + $0x9a8] sm:$0xff]  ;;  %v904_v34 = vpack.c.bf16 %v531_v27, %v530_v26  ;;  %v554_v26 = vld [vmem:[%s7979_s1 + $0x960] sm:$0xff]  ;;  %v576_v5 = vld [vmem:[%s7979_s1 + $0xa10] sm:$0xff] }
  0x79   :  { %v577_v6 = vld [vmem:[%s7979_s1 + $0xa18] sm:$0xff] }
  0x7a   :  { %4549 = vmatpush3.bf16.msra.mxu0 %v867_v52  ;;  %v515_v52 = vld [vmem:[%s7979_s1 + $0x828] sm:$0xff] }
  0x7b   :  { %4571 = vmatpush3.bf16.msra.mxu1 %v883_v37  ;;  %4550 = vmatprep.subr.bf16.mxu0 %v876_v39  ;;  %v920_v37 = vpack.c.bf16 %v563_v30, %v562_v29  ;;  %v547_v39 = vld [vmem:[%s7979_s1 + $0x928] sm:$0xff]  ;;  %v896_v43 = vpack.c.bf16 %v515_v52, %v514_v35  ;;  %v540_v29 = vld [vmem:[%s7979_s1 + $0x8f0] sm:$0xff]  ;;  %v541_v30 = vld [vmem:[%s7979_s1 + $0x8f8] sm:$0xff] }
  0x7c   :  { %4572 = vmatprep.subr.bf16.mxu1 %v892_v42  ;;  %v565_v42 = vld [vmem:[%s7979_s1 + $0x9b8] sm:$0xff]  ;;  %v912_v44 = vpack.c.bf16 %v547_v39, %v546_v36  ;;  %v909_v52 = vpack.c.bf16 %v541_v30, %v540_v29  ;;  %v524_v36 = vld [vmem:[%s7979_s1 + $0x870] sm:$0xff] }
  0x7d   :  { %v556_v39 = vld [vmem:[%s7979_s1 + $0x970] sm:$0xff] }
  0x7e   :  { %4551 = vmatpush3.bf16.msra.mxu0 %v868_v48  ;;  %v921_v48 = vpack.c.bf16 %v565_v42, %v564_v41  ;;  %v590_v41 = vld [vmem:[%s7979_s1 + $0xa80] sm:$0xff]  ;;  %v591_v42 = vld [vmem:[%s7979_s1 + $0xa88] sm:$0xff] }
  0x7f   :  { %4573 = vmatpush3.bf16.msra.mxu1 %v884_v49  ;;  %4552 = vmatprep.subr.bf16.mxu0 %v877_v50  ;;  %v549_v49 = vld [vmem:[%s7979_s1 + $0x938] sm:$0xff]  ;;  %v534_v50 = vld [vmem:[%s7979_s1 + $0x8c0] sm:$0xff] }
  0x80   :  { %4574 = vmatprep.subr.bf16.mxu1 %v893_v55  ;;  %v897_v55 = vpack.c.bf16 %v517_v47, %v516_v46  ;;  %v913_v56 = vpack.c.bf16 %v549_v49, %v548_v38  ;;  %v906_v57 = vpack.c.bf16 %v535_v51, %v534_v50  ;;  %v917_v38 = vpack.c.bf16 %v557_v60, %v556_v39  ;;  %v574_v49 = vld [vmem:[%s7979_s1 + $0xa00] sm:$0xff]  ;;  %v575_v50 = vld [vmem:[%s7979_s1 + $0xa08] sm:$0xff] }
  0x81   :  { %v606_v51 = vld [vmem:[%s7979_s1 + $0xb00] sm:$0xff]  ;;  %v631_v39 = vld [vmem:[%s7979_s1 + $0xbc8] sm:$0xff] }
  0x82   :  { %4553 = vmatpush3.bf16.msra.mxu0 %v869_v1  ;;  %v922_v1 = vpack.c.bf16 %v567_v54, %v566_v53  ;;  %v607_v54 = vld [vmem:[%s7979_s1 + $0xb08] sm:$0xff] }
  0x83   :  { %4575 = vmatpush3.bf16.msra.mxu1 %v885_v2  ;;  %4582 = vmatprep.subr.bf16.mxu0 %v902_v3  ;;  %v551_v2 = vld [vmem:[%s7979_s1 + $0x948] sm:$0xff]  ;;  %v536_v3 = vld [vmem:[%s7979_s1 + $0x8d0] sm:$0xff] }
  0x84   :  { %4604 = vmatprep.subr.bf16.mxu1 %v918_v7  ;;  %v898_v7 = vpack.c.bf16 %v519_v61, %v518_v58  ;;  %v914_v8 = vpack.c.bf16 %v551_v2, %v550_v62  ;;  %v907_v9 = vpack.c.bf16 %v537_v4, %v536_v3  ;;  %v238_v58 = vpack.c.bf16 %v5705_v59, %v5705_v59  ;;  %v624_v61 = vld [vmem:[%s7979_s1 + $0xb90] sm:$0xff]  ;;  %v625_v62 = vld [vmem:[%s7979_s1 + $0xb98] sm:$0xff] }
  0x85   :  { %1299 = vmatmul.mubr.bf16.vlgmr.msra.gmra.mrb[12].mxu0 %v234_v12  ;;  %v552_v12 = vld [vmem:[%s7979_s1 + $0x950] sm:$0xff]  ;;  %v240_v2 = vpack.c.bf16 %v5714_v63, %v5714_v63  ;;  %v926_v3 = vpack.c.bf16 %v575_v50, %v574_v49  ;;  %v942_v4 = vpack.c.bf16 %v607_v54, %v606_v51  ;;  %v609_v63 = vld [vmem:[%s7979_s1 + $0xb18] sm:$0xff] }
  0x86   :  { %1339 = vmatmul.mubr.bf16.vlgmr.msra.gmra.mrb[12].mxu1 %v236_v19  ;;  %4583 = vmatpush3.bf16.msra.mxu0 %v894_v20  ;;  %v539_v19 = vld [vmem:[%s7979_s1 + $0x8e8] sm:$0xff]  ;;  %v570_v20 = vld [vmem:[%s7979_s1 + $0x9e0] sm:$0xff]  ;;  %v915_v23 = vpack.c.bf16 %v553_v16, %v552_v12  ;;  %v601_v49 = vld [vmem:[%s7979_s1 + $0xad8] sm:$0xff] }
  0x87   :  { %4605 = vmatpush3.bf16.msra.mxu1 %v910_v21  ;;  %4584 = vmatprep.subr.bf16.mxu0 %v903_v14  ;;  %v571_v21 = vld [vmem:[%s7979_s1 + $0x9e8] sm:$0xff]  ;;  %v899_v14 = vpack.c.bf16 %v521_v11, %v520_v10  ;;  %v908_v24 = vpack.c.bf16 %v539_v19, %v538_v18  ;;  %v626_v12 = vld [vmem:[%s7979_s1 + $0xba0] sm:$0xff]  ;;  %v927_v18 = vpack.c.bf16 %v577_v6, %v576_v5  ;;  %v632_v50 = vld [vmem:[%s7979_s1 + $0xbd0] sm:$0xff] }
  0x88   :  { %4606 = vmatprep.subr.bf16.mxu1 %v919_v25  ;;  %1378 = vmatprep.mubr.bf16.mxu0 %v239_v28  ;;  %v522_v25 = vld [vmem:[%s7979_s1 + $0x860] sm:$0xff]  ;;  %v924_v27 = vpack.c.bf16 %v571_v21, %v570_v20  ;;  %v555_v28 = vld [vmem:[%s7979_s1 + $0x968] sm:$0xff]  ;;  %v633_v51 = vld [vmem:[%s7979_s1 + $0xbd8] sm:$0xff] }
  0x89   :  { %1418 = vmatprep.mubr.bf16.mxu1 %v241_v31  ;;  %v572_v31 = vld [vmem:[%s7979_s1 + $0x9f0] sm:$0xff]  ;;  %v916_v35 = vpack.c.bf16 %v555_v28, %v554_v26  ;;  %v595_v10 = vld [vmem:[%s7979_s1 + $0xaa8] sm:$0xff]  ;;  %v578_v21 = vld [vmem:[%s7979_s1 + $0xa20] sm:$0xff] }
  0x8a   :  { %4585 = vmatpush3.bf16.msra.mxu0 %v895_v32  ;;  %v573_v32 = vld [vmem:[%s7979_s1 + $0x9f8] sm:$0xff]  ;;  %v628_v26 = vld [vmem:[%s7979_s1 + $0xbb0] sm:$0xff] }
  0x8b   :  { %4607 = vmatpush3.bf16.msra.mxu1 %v911_v33  ;;  %4586 = vmatprep.subr.bf16.mxu0 %v904_v34  ;;  %v139_v33 = vcombine.high %v26_v22, %v26_v22  ;;  %v900_v34 = vpack.c.bf16 %v523_v17, %v522_v25  ;;  %v925_v40 = vpack.c.bf16 %v573_v32, %v572_v31  ;;  %v596_v25 = vld [vmem:[%s7979_s1 + $0xab0] sm:$0xff]  ;;  %v597_v17 = vld [vmem:[%s7979_s1 + $0xab8] sm:$0xff] }
  0x8c   :  { %4608 = vmatprep.subr.bf16.mxu1 %v920_v37  ;;  %v525_v37 = vld [vmem:[%s7979_s1 + $0x878] sm:$0xff]  ;;  %v937_v30 = vpack.c.bf16 %v597_v17, %v596_v25  ;;  %v580_v31 = vld [vmem:[%s7979_s1 + $0xa30] sm:$0xff] }
  0x8d   :  { %v5923_v46 = vrot.slane %v139_v33, %v5023_v13  ;;  %v901_v47 = vpack.c.bf16 %v525_v37, %v524_v36  ;;  %v581_v32 = vld [vmem:[%s7979_s1 + $0xa38] sm:$0xff]  ;;  %v612_v33 = vld [vmem:[%s7979_s1 + $0xb30] sm:$0xff]  ;;  %v599_v36 = vld [vmem:[%s7979_s1 + $0xac8] sm:$0xff] }
  0x8e   :  { %4587 = vmatpush3.bf16.msra.mxu0 %v896_v43  ;;  %v5914_v43 = vrot.slane %v26_v22, %v5023_v13  ;;  %v610_v22 = vld [vmem:[%s7979_s1 + $0xb20] sm:$0xff]  ;;  %v27_v5 = vld [vmem:[%s7980_s0 + $0x30] sm:$0xff]  ;;  %v621_v17 = vld [vmem:[%s7979_s1 + $0xb78] sm:$0xff] }
  0x8f   :  { %4609 = vmatpush3.bf16.msra.mxu1 %v912_v44  ;;  %4588 = vmatprep.subr.bf16.mxu0 %v905_v45  ;;  %v622_v44 = vld [vmem:[%s7979_s1 + $0xb80] sm:$0xff]  ;;  %v623_v45 = vld [vmem:[%s7979_s1 + $0xb88] sm:$0xff] }
  0x90   :  { %4610 = vmatprep.subr.bf16.mxu1 %v921_v48  ;;  %v934_v48 = vpack.c.bf16 %v591_v42, %v590_v41  ;;  %v950_v53 = vpack.c.bf16 %v623_v45, %v622_v44  ;;  %v630_v37 = vld [vmem:[%s7979_s1 + $0xbc0] sm:$0xff]  ;;  %v583_v44 = vld [vmem:[%s7979_s1 + $0xa48] sm:$0xff] }
  0x91   :  { %v582_v42 = vld [vmem:[%s7979_s1 + $0xa40] sm:$0xff] }
  0x92   :  { %4589 = vmatpush3.bf16.msra.mxu0 %v897_v55  ;;  %v592_v55 = vld [vmem:[%s7979_s1 + $0xa90] sm:$0xff]  ;;  %v614_v45 = vld [vmem:[%s7979_s1 + $0xb40] sm:$0xff] }
  0x93   :  { %4611 = vmatpush3.bf16.msra.mxu1 %v913_v56  ;;  %4590 = vmatprep.subr.bf16.mxu0 %v906_v57  ;;  %v593_v56 = vld [vmem:[%s7979_s1 + $0xa98] sm:$0xff]  ;;  %v154_v57 = vcombine.high %v5914_v43, %v5914_v43 }
  0x94   :  { %4612 = vmatprep.subr.bf16.mxu1 %v922_v1  ;;  %v155_v1 = vcombine.high %v5923_v46, %v5923_v46  ;;  %v935_v59 = vpack.c.bf16 %v593_v56, %v592_v55  ;;  %v584_v56 = vld [vmem:[%s7979_s1 + $0xa50] sm:$0xff] }
  0x95   :  { %v243_v11 = vpack.c.bf16 %v154_v57, %v154_v57  ;;  %v585_v57 = vld [vmem:[%s7979_s1 + $0xa58] sm:$0xff] }
  0x96   :  { %4591 = vmatpush3.bf16.msra.mxu0 %v898_v7  ;;  %v608_v7 = vld [vmem:[%s7979_s1 + $0xb10] sm:$0xff]  ;;  %v245_v16 = vpack.c.bf16 %v155_v1, %v155_v1  ;;  %v602_v1 = vld [vmem:[%s7979_s1 + $0xae0] sm:$0xff] }
  0x97   :  { %4613 = vmatpush3.bf16.msra.mxu1 %v914_v8  ;;  %4592 = vmatprep.subr.bf16.mxu0 %v907_v9  ;;  %v951_v8 = vpack.c.bf16 %v625_v62, %v624_v61  ;;  %v594_v9 = vld [vmem:[%s7979_s1 + $0xaa0] sm:$0xff]  ;;  %v943_v19 = vpack.c.bf16 %v609_v63, %v608_v7  ;;  %v955_v61 = vpack.c.bf16 %v633_v51, %v632_v50  ;;  %v617_v62 = vld [vmem:[%s7979_s1 + $0xb58] sm:$0xff]  ;;  %v587_v63 = vld [vmem:[%s7979_s1 + $0xa68] sm:$0xff] }
  0x98   :  { %4614 = vmatprep.subr.bf16.mxu1 %v923_v15  ;;  %v627_v15 = vld [vmem:[%s7979_s1 + $0xba8] sm:$0xff]  ;;  %v936_v20 = vpack.c.bf16 %v595_v10, %v594_v9  ;;  %v618_v9 = vld [vmem:[%s7979_s1 + $0xb60] sm:$0xff]  ;;  %v640_v50 = vld [vmem:[%s7979_s1 + $0xc10] sm:$0xff] }
  0x99   :  { %v641_v51 = vld [vmem:[%s7979_s1 + $0xc18] sm:$0xff] }
  0x9a   :  { %4593 = vmatpush3.bf16.msra.mxu0 %v899_v14  ;;  %v579_v14 = vld [vmem:[%s7979_s1 + $0xa28] sm:$0xff] }
  0x9b   :  { %4615 = vmatpush3.bf16.msra.mxu1 %v915_v23  ;;  %4594 = vmatprep.subr.bf16.mxu0 %v908_v24  ;;  %v952_v23 = vpack.c.bf16 %v627_v15, %v626_v12  ;;  %v611_v24 = vld [vmem:[%s7979_s1 + $0xb28] sm:$0xff]  ;;  %v928_v28 = vpack.c.bf16 %v579_v14, %v578_v21  ;;  %v604_v12 = vld [vmem:[%s7979_s1 + $0xaf0] sm:$0xff]  ;;  %v605_v15 = vld [vmem:[%s7979_s1 + $0xaf8] sm:$0xff] }
  0x9c   :  { %4616 = vmatprep.subr.bf16.mxu1 %v924_v27  ;;  %v629_v27 = vld [vmem:[%s7979_s1 + $0xbb8] sm:$0xff]  ;;  %v944_v29 = vpack.c.bf16 %v611_v24, %v610_v22  ;;  %v941_v14 = vpack.c.bf16 %v605_v15, %v604_v12  ;;  %v588_v22 = vld [vmem:[%s7979_s1 + $0xa70] sm:$0xff] }
  0x9d   :  { %v620_v24 = vld [vmem:[%s7979_s1 + $0xb70] sm:$0xff] }
  0x9e   :  { %4595 = vmatpush3.bf16.msra.mxu0 %v900_v34  ;;  %v953_v34 = vpack.c.bf16 %v629_v27, %v628_v26  ;;  %v654_v26 = vld [vmem:[%s7979_s1 + $0xc80] sm:$0xff]  ;;  %v655_v27 = vld [vmem:[%s7979_s1 + $0xc88] sm:$0xff] }
  0x9f   :  { %4617 = vmatpush3.bf16.msra.mxu1 %v916_v35  ;;  %4596 = vmatprep.subr.bf16.mxu0 %v909_v52  ;;  %v613_v35 = vld [vmem:[%s7979_s1 + $0xb38] sm:$0xff]  ;;  %v598_v52 = vld [vmem:[%s7979_s1 + $0xac0] sm:$0xff] }
  0xa0   :  { %4618 = vmatprep.subr.bf16.mxu1 %v925_v40  ;;  %v929_v40 = vpack.c.bf16 %v581_v32, %v580_v31  ;;  %v945_v60 = vpack.c.bf16 %v613_v35, %v612_v33  ;;  %v938_v41 = vpack.c.bf16 %v599_v36, %v598_v52  ;;  %v949_v33 = vpack.c.bf16 %v621_v17, %v620_v24  ;;  %v638_v35 = vld [vmem:[%s7979_s1 + $0xc00] sm:$0xff]  ;;  %v639_v52 = vld [vmem:[%s7979_s1 + $0xc08] sm:$0xff] }
  0xa1   :  { %v670_v36 = vld [vmem:[%s7979_s1 + $0xd00] sm:$0xff]  ;;  %v695_v24 = vld [vmem:[%s7979_s1 + $0xdc8] sm:$0xff] }
  0xa2   :  { %4597 = vmatpush3.bf16.msra.mxu0 %v901_v47  ;;  %v954_v47 = vpack.c.bf16 %v631_v39, %v630_v37  ;;  %v671_v39 = vld [vmem:[%s7979_s1 + $0xd08] sm:$0xff] }
  0xa3   :  { %4619 = vmatpush3.bf16.msra.mxu1 %v917_v38  ;;  %4626 = vmatprep.subr.bf16.mxu0 %v934_v48  ;;  %v615_v38 = vld [vmem:[%s7979_s1 + $0xb48] sm:$0xff]  ;;  %v600_v48 = vld [vmem:[%s7979_s1 + $0xad0] sm:$0xff] }
  0xa4   :  { %4648 = vmatprep.subr.bf16.mxu1 %v950_v53  ;;  %v930_v53 = vpack.c.bf16 %v583_v44, %v582_v42  ;;  %v946_v54 = vpack.c.bf16 %v615_v38, %v614_v45  ;;  %v939_v55 = vpack.c.bf16 %v601_v49, %v600_v48  ;;  %v242_v42 = vpack.c.bf16 %v5914_v43, %v5914_v43  ;;  %v688_v44 = vld [vmem:[%s7979_s1 + $0xd90] sm:$0xff]  ;;  %v689_v45 = vld [vmem:[%s7979_s1 + $0xd98] sm:$0xff] }
  0xa5   :  { %1379 = vmatmul.mubr.bf16.vlgmr.msra.gmra.mrb[16].mxu0 %v238_v58  ;;  %v616_v58 = vld [vmem:[%s7979_s1 + $0xb50] sm:$0xff]  ;;  %v244_v38 = vpack.c.bf16 %v5923_v46, %v5923_v46  ;;  %v958_v48 = vpack.c.bf16 %v639_v52, %v638_v35  ;;  %v974_v49 = vpack.c.bf16 %v671_v39, %v670_v36  ;;  %v673_v46 = vld [vmem:[%s7979_s1 + $0xd18] sm:$0xff] }
  0xa6   :  { %1419 = vmatmul.mubr.bf16.vlgmr.msra.gmra.mrb[16].mxu1 %v240_v2  ;;  %4627 = vmatpush3.bf16.msra.mxu0 %v926_v3  ;;  %v603_v2 = vld [vmem:[%s7979_s1 + $0xae8] sm:$0xff]  ;;  %v634_v3 = vld [vmem:[%s7979_s1 + $0xbe0] sm:$0xff]  ;;  %v947_v6 = vpack.c.bf16 %v617_v62, %v616_v58  ;;  %v665_v35 = vld [vmem:[%s7979_s1 + $0xcd8] sm:$0xff] }
  0xa7   :  { %4649 = vmatpush3.bf16.msra.mxu1 %v942_v4  ;;  %4628 = vmatprep.subr.bf16.mxu0 %v935_v59  ;;  %v635_v4 = vld [vmem:[%s7979_s1 + $0xbe8] sm:$0xff]  ;;  %v931_v59 = vpack.c.bf16 %v585_v57, %v584_v56  ;;  %v940_v7 = vpack.c.bf16 %v603_v2, %v602_v1  ;;  %v690_v58 = vld [vmem:[%s7979_s1 + $0xda0] sm:$0xff]  ;;  %v959_v1 = vpack.c.bf16 %v641_v51, %v640_v50  ;;  %v696_v52 = vld [vmem:[%s7979_s1 + $0xdd0] sm:$0xff] }
  0xa8   :  { %4650 = vmatprep.subr.bf16.mxu1 %v951_v8  ;;  %1458 = vmatprep.mubr.bf16.mxu0 %v243_v11  ;;  %v586_v8 = vld [vmem:[%s7979_s1 + $0xa60] sm:$0xff]  ;;  %v956_v10 = vpack.c.bf16 %v635_v4, %v634_v3  ;;  %v619_v11 = vld [vmem:[%s7979_s1 + $0xb68] sm:$0xff]  ;;  %v697_v36 = vld [vmem:[%s7979_s1 + $0xdd8] sm:$0xff] }
  0xa9   :  { %1498 = vmatprep.mubr.bf16.mxu1 %v245_v16  ;;  %v636_v16 = vld [vmem:[%s7979_s1 + $0xbf0] sm:$0xff]  ;;  %v948_v21 = vpack.c.bf16 %v619_v11, %v618_v9  ;;  %v659_v56 = vld [vmem:[%s7979_s1 + $0xca8] sm:$0xff]  ;;  %v642_v4 = vld [vmem:[%s7979_s1 + $0xc20] sm:$0xff] }
  0xaa   :  { %4629 = vmatpush3.bf16.msra.mxu0 %v927_v18  ;;  %v637_v18 = vld [vmem:[%s7979_s1 + $0xbf8] sm:$0xff]  ;;  %v692_v9 = vld [vmem:[%s7979_s1 + $0xdb0] sm:$0xff] }
  0xab   :  { %4651 = vmatpush3.bf16.msra.mxu1 %v943_v19  ;;  %4630 = vmatprep.subr.bf16.mxu0 %v936_v20  ;;  %v156_v19 = vcombine.high %v27_v5, %v27_v5  ;;  %v932_v20 = vpack.c.bf16 %v587_v63, %v586_v8  ;;  %v957_v25 = vpack.c.bf16 %v637_v18, %v636_v16  ;;  %v660_v8 = vld [vmem:[%s7979_s1 + $0xcb0] sm:$0xff]  ;;  %v661_v63 = vld [vmem:[%s7979_s1 + $0xcb8] sm:$0xff] }
  0xac   :  { %4652 = vmatprep.subr.bf16.mxu1 %v952_v23  ;;  %v589_v23 = vld [vmem:[%s7979_s1 + $0xa78] sm:$0xff]  ;;  %v969_v15 = vpack.c.bf16 %v661_v63, %v660_v8  ;;  %v644_v16 = vld [vmem:[%s7979_s1 + $0xc30] sm:$0xff] }
  0xad   :  { %v6132_v31 = vrot.slane %v156_v19, %v5023_v13  ;;  %v933_v32 = vpack.c.bf16 %v589_v23, %v588_v22  ;;  %v645_v18 = vld [vmem:[%s7979_s1 + $0xc38] sm:$0xff]  ;;  %v676_v19 = vld [vmem:[%s7979_s1 + $0xd30] sm:$0xff]  ;;  %v663_v22 = vld [vmem:[%s7979_s1 + $0xcc8] sm:$0xff] }
  0xae   :  { %4631 = vmatpush3.bf16.msra.mxu0 %v928_v28  ;;  %v6123_v28 = vrot.slane %v27_v5, %v5023_v13  ;;  %v674_v5 = vld [vmem:[%s7979_s1 + $0xd20] sm:$0xff]  ;;  %v28_v50 = vld [vmem:[%s7980_s0 + $0x38] sm:$0xff] }
  0xaf   :  { %4653 = vmatpush3.bf16.msra.mxu1 %v944_v29  ;;  %4632 = vmatprep.subr.bf16.mxu0 %v937_v30  ;;  %v686_v29 = vld [vmem:[%s7979_s1 + $0xd80] sm:$0xff]  ;;  %v687_v30 = vld [vmem:[%s7979_s1 + $0xd88] sm:$0xff]  ;;  %v685_v63 = vld [vmem:[%s7979_s1 + $0xd78] sm:$0xff] }
  0xb0   :  { %4654 = vmatprep.subr.bf16.mxu1 %v953_v34  ;;  %v966_v34 = vpack.c.bf16 %v655_v27, %v654_v26  ;;  %v982_v37 = vpack.c.bf16 %v687_v30, %v686_v29  ;;  %v694_v23 = vld [vmem:[%s7979_s1 + $0xdc0] sm:$0xff]  ;;  %v647_v29 = vld [vmem:[%s7979_s1 + $0xc48] sm:$0xff] }
  0xb1   :  { %v646_v27 = vld [vmem:[%s7979_s1 + $0xc40] sm:$0xff] }
  0xb2   :  { %4633 = vmatpush3.bf16.msra.mxu0 %v929_v40  ;;  %v656_v40 = vld [vmem:[%s7979_s1 + $0xc90] sm:$0xff]  ;;  %v678_v30 = vld [vmem:[%s7979_s1 + $0xd40] sm:$0xff] }
  0xb3   :  { %4655 = vmatpush3.bf16.msra.mxu1 %v945_v60  ;;  %4634 = vmatprep.subr.bf16.mxu0 %v938_v41  ;;  %v657_v60 = vld [vmem:[%s7979_s1 + $0xc98] sm:$0xff]  ;;  %v171_v41 = vcombine.high %v6123_v28, %v6123_v28 }
  0xb4   :  { %4656 = vmatprep.subr.bf16.mxu1 %v954_v47  ;;  %v172_v47 = vcombine.high %v6132_v31, %v6132_v31  ;;  %v967_v43 = vpack.c.bf16 %v657_v60, %v656_v40  ;;  %v648_v60 = vld [vmem:[%s7979_s1 + $0xc50] sm:$0xff] }
  0xb5   :  { %v247_v57 = vpack.c.bf16 %v171_v41, %v171_v41  ;;  %v649_v41 = vld [vmem:[%s7979_s1 + $0xc58] sm:$0xff] }
  0xb6   :  { %4635 = vmatpush3.bf16.msra.mxu0 %v930_v53  ;;  %v672_v53 = vld [vmem:[%s7979_s1 + $0xd10] sm:$0xff]  ;;  %v249_v62 = vpack.c.bf16 %v172_v47, %v172_v47  ;;  %v666_v47 = vld [vmem:[%s7979_s1 + $0xce0] sm:$0xff] }
  0xb7   :  { %4657 = vmatpush3.bf16.msra.mxu1 %v946_v54  ;;  %4636 = vmatprep.subr.bf16.mxu0 %v939_v55  ;;  %v983_v54 = vpack.c.bf16 %v689_v45, %v688_v44  ;;  %v658_v55 = vld [vmem:[%s7979_s1 + $0xca0] sm:$0xff]  ;;  %v975_v2 = vpack.c.bf16 %v673_v46, %v672_v53  ;;  %v987_v44 = vpack.c.bf16 %v697_v36, %v696_v52  ;;  %v681_v45 = vld [vmem:[%s7979_s1 + $0xd58] sm:$0xff]  ;;  %v651_v46 = vld [vmem:[%s7979_s1 + $0xc68] sm:$0xff] }
  0xb8   :  { %4658 = vmatprep.subr.bf16.mxu1 %v955_v61  ;;  %v691_v61 = vld [vmem:[%s7979_s1 + $0xda8] sm:$0xff]  ;;  %v968_v3 = vpack.c.bf16 %v659_v56, %v658_v55  ;;  %v682_v55 = vld [vmem:[%s7979_s1 + $0xd60] sm:$0xff]  ;;  %v704_v52 = vld [vmem:[%s7979_s1 + $0xe10] sm:$0xff] }
  0xb9   :  { %v705_v36 = vld [vmem:[%s7979_s1 + $0xe18] sm:$0xff] }
  0xba   :  { %4637 = vmatpush3.bf16.msra.mxu0 %v931_v59  ;;  %v643_v59 = vld [vmem:[%s7979_s1 + $0xc28] sm:$0xff] }
  0xbb   :  { %4659 = vmatpush3.bf16.msra.mxu1 %v947_v6  ;;  %4638 = vmatprep.subr.bf16.mxu0 %v940_v7  ;;  %v984_v6 = vpack.c.bf16 %v691_v61, %v690_v58  ;;  %v675_v7 = vld [vmem:[%s7979_s1 + $0xd28] sm:$0xff]  ;;  %v960_v11 = vpack.c.bf16 %v643_v59, %v642_v4  ;;  %v668_v58 = vld [vmem:[%s7979_s1 + $0xcf0] sm:$0xff]  ;;  %v669_v61 = vld [vmem:[%s7979_s1 + $0xcf8] sm:$0xff] }
  0xbc   :  { %4660 = vmatprep.subr.bf16.mxu1 %v956_v10  ;;  %v693_v10 = vld [vmem:[%s7979_s1 + $0xdb8] sm:$0xff]  ;;  %v976_v12 = vpack.c.bf16 %v675_v7, %v674_v5  ;;  %v973_v59 = vpack.c.bf16 %v669_v61, %v668_v58  ;;  %v652_v5 = vld [vmem:[%s7979_s1 + $0xc70] sm:$0xff] }
  0xbd   :  { %v684_v7 = vld [vmem:[%s7979_s1 + $0xd70] sm:$0xff] }
  0xbe   :  { %4639 = vmatpush3.bf16.msra.mxu0 %v932_v20  ;;  %v985_v20 = vpack.c.bf16 %v693_v10, %v692_v9  ;;  %v718_v9 = vld [vmem:[%s7979_s1 + $0xe80] sm:$0xff]  ;;  %v719_v10 = vld [vmem:[%s7979_s1 + $0xe88] sm:$0xff] }
  0xbf   :  { %4661 = vmatpush3.bf16.msra.mxu1 %v948_v21  ;;  %4640 = vmatprep.subr.bf16.mxu0 %v941_v14  ;;  %v677_v21 = vld [vmem:[%s7979_s1 + $0xd38] sm:$0xff]  ;;  %v662_v14 = vld [vmem:[%s7979_s1 + $0xcc0] sm:$0xff] }
  0xc0   :  { %4662 = vmatprep.subr.bf16.mxu1 %v957_v25  ;;  %v961_v25 = vpack.c.bf16 %v645_v18, %v644_v16  ;;  %v977_v17 = vpack.c.bf16 %v677_v21, %v676_v19  ;;  %v970_v26 = vpack.c.bf16 %v663_v22, %v662_v14  ;;  %v981_v19 = vpack.c.bf16 %v685_v63, %v684_v7  ;;  %v702_v21 = vld [vmem:[%s7979_s1 + $0xe00] sm:$0xff]  ;;  %v703_v14 = vld [vmem:[%s7979_s1 + $0xe08] sm:$0xff] }
  0xc1   :  { %v734_v22 = vld [vmem:[%s7979_s1 + $0xf00] sm:$0xff]  ;;  %v759_v7 = vld [vmem:[%s7979_s1 + $0xfc8] sm:$0xff] }
  0xc2   :  { %4641 = vmatpush3.bf16.msra.mxu0 %v933_v32  ;;  %v986_v32 = vpack.c.bf16 %v695_v24, %v694_v23  ;;  %v735_v24 = vld [vmem:[%s7979_s1 + $0xf08] sm:$0xff] }
  0xc3   :  { %4663 = vmatpush3.bf16.msra.mxu1 %v949_v33  ;;  %4670 = vmatprep.subr.bf16.mxu0 %v966_v34  ;;  %v679_v33 = vld [vmem:[%s7979_s1 + $0xd48] sm:$0xff]  ;;  %v664_v34 = vld [vmem:[%s7979_s1 + $0xcd0] sm:$0xff] }
  0xc4   :  { %4692 = vmatprep.subr.bf16.mxu1 %v982_v37  ;;  %v962_v37 = vpack.c.bf16 %v647_v29, %v646_v27  ;;  %v978_v39 = vpack.c.bf16 %v679_v33, %v678_v30  ;;  %v971_v40 = vpack.c.bf16 %v665_v35, %v664_v34  ;;  %v246_v27 = vpack.c.bf16 %v6123_v28, %v6123_v28  ;;  %v752_v29 = vld [vmem:[%s7979_s1 + $0xf90] sm:$0xff]  ;;  %v753_v30 = vld [vmem:[%s7979_s1 + $0xf98] sm:$0xff] }
  0xc5   :  { %1459 = vmatmul.mubr.bf16.vlgmr.msra.gmra.mrb[20].mxu0 %v242_v42  ;;  %v680_v42 = vld [vmem:[%s7979_s1 + $0xd50] sm:$0xff]  ;;  %v248_v33 = vpack.c.bf16 %v6132_v31, %v6132_v31  ;;  %v990_v34 = vpack.c.bf16 %v703_v14, %v702_v21  ;;  %v1006_v35 = vpack.c.bf16 %v735_v24, %v734_v22  ;;  %v737_v31 = vld [vmem:[%s7979_s1 + $0xf18] sm:$0xff] }
  0xc6   :  { %1499 = vmatmul.mubr.bf16.vlgmr.msra.gmra.mrb[20].mxu1 %v244_v38  ;;  %4671 = vmatpush3.bf16.msra.mxu0 %v958_v48  ;;  %v667_v38 = vld [vmem:[%s7979_s1 + $0xce8] sm:$0xff]  ;;  %v698_v48 = vld [vmem:[%s7979_s1 + $0xde0] sm:$0xff]  ;;  %v979_v51 = vpack.c.bf16 %v681_v45, %v680_v42  ;;  %v729_v21 = vld [vmem:[%s7979_s1 + $0xed8] sm:$0xff] }
  0xc7   :  { %4693 = vmatpush3.bf16.msra.mxu1 %v974_v49  ;;  %4672 = vmatprep.subr.bf16.mxu0 %v967_v43  ;;  %v699_v49 = vld [vmem:[%s7979_s1 + $0xde8] sm:$0xff]  ;;  %v963_v43 = vpack.c.bf16 %v649_v41, %v648_v60  ;;  %v972_v53 = vpack.c.bf16 %v667_v38, %v666_v47  ;;  %v754_v42 = vld [vmem:[%s7979_s1 + $0xfa0] sm:$0xff]  ;;  %v991_v47 = vpack.c.bf16 %v705_v36, %v704_v52  ;;  %v760_v14 = vld [vmem:[%s7979_s1 + $0xfd0] sm:$0xff] }
  0xc8   :  { %4694 = vmatprep.subr.bf16.mxu1 %v983_v54  ;;  %1538 = vmatprep.mubr.bf16.mxu0 %v247_v57  ;;  %v650_v54 = vld [vmem:[%s7979_s1 + $0xc60] sm:$0xff]  ;;  %v988_v56 = vpack.c.bf16 %v699_v49, %v698_v48  ;;  %v683_v57 = vld [vmem:[%s7979_s1 + $0xd68] sm:$0xff]  ;;  %v761_v22 = vld [vmem:[%s7979_s1 + $0xfd8] sm:$0xff] }
  0xc9   :  { %1578 = vmatprep.mubr.bf16.mxu1 %v249_v62  ;;  %v700_v62 = vld [vmem:[%s7979_s1 + $0xdf0] sm:$0xff]  ;;  %v980_v4 = vpack.c.bf16 %v683_v57, %v682_v55  ;;  %v723_v60 = vld [vmem:[%s7979_s1 + $0xea8] sm:$0xff]  ;;  %v706_v49 = vld [vmem:[%s7979_s1 + $0xe20] sm:$0xff] }
  0xca   :  { %4673 = vmatpush3.bf16.msra.mxu0 %v959_v1  ;;  %v701_v1 = vld [vmem:[%s7979_s1 + $0xdf8] sm:$0xff]  ;;  %v756_v55 = vld [vmem:[%s7979_s1 + $0xfb0] sm:$0xff]  ;;  %v763_v52 = vld [vmem:[%s7979_s1 + $0xfe8] sm:$0xff] }
  0xcb   :  { %4695 = vmatpush3.bf16.msra.mxu1 %v975_v2  ;;  %4674 = vmatprep.subr.bf16.mxu0 %v968_v3  ;;  %v173_v2 = vcombine.high %v28_v50, %v28_v50  ;;  %v964_v3 = vpack.c.bf16 %v651_v46, %v650_v54  ;;  %v989_v8 = vpack.c.bf16 %v701_v1, %v700_v62  ;;  %v724_v54 = vld [vmem:[%s7979_s1 + $0xeb0] sm:$0xff]  ;;  %v725_v46 = vld [vmem:[%s7979_s1 + $0xeb8] sm:$0xff] }
  0xcc   :  { %4696 = vmatprep.subr.bf16.mxu1 %v984_v6  ;;  %v653_v6 = vld [vmem:[%s7979_s1 + $0xc78] sm:$0xff]  ;;  %v1001_v61 = vpack.c.bf16 %v725_v46, %v724_v54  ;;  %v708_v62 = vld [vmem:[%s7979_s1 + $0xe30] sm:$0xff] }
  0xcd   :  { %v6341_v16 = vrot.slane %v173_v2, %v5023_v13  ;;  %v965_v18 = vpack.c.bf16 %v653_v6, %v652_v5  ;;  %v709_v1 = vld [vmem:[%s7979_s1 + $0xe38] sm:$0xff]  ;;  %v740_v2 = vld [vmem:[%s7979_s1 + $0xf30] sm:$0xff]  ;;  %v727_v5 = vld [vmem:[%s7979_s1 + $0xec8] sm:$0xff] }
  0xce   :  { %4675 = vmatpush3.bf16.msra.mxu0 %v960_v11  ;;  %v6332_v11 = vrot.slane %v28_v50, %v5023_v13  ;;  %v738_v50 = vld [vmem:[%s7979_s1 + $0xf20] sm:$0xff] }
  0xcf   :  { %4697 = vmatpush3.bf16.msra.mxu1 %v976_v12  ;;  %4676 = vmatprep.subr.bf16.mxu0 %v969_v15  ;;  %v750_v12 = vld [vmem:[%s7979_s1 + $0xf80] sm:$0xff]  ;;  %v751_v15 = vld [vmem:[%s7979_s1 + $0xf88] sm:$0xff] }
  0xd0   :  { %4698 = vmatprep.subr.bf16.mxu1 %v985_v20  ;;  %v998_v20 = vpack.c.bf16 %v719_v10, %v718_v9  ;;  %v1014_v23 = vpack.c.bf16 %v751_v15, %v750_v12  ;;  %v758_v6 = vld [vmem:[%s7979_s1 + $0xfc0] sm:$0xff]  ;;  %v711_v12 = vld [vmem:[%s7979_s1 + $0xe48] sm:$0xff] }
  0xd1   :  { %v710_v10 = vld [vmem:[%s7979_s1 + $0xe40] sm:$0xff] }
  0xd2   :  { %4677 = vmatpush3.bf16.msra.mxu0 %v961_v25  ;;  %v720_v25 = vld [vmem:[%s7979_s1 + $0xe90] sm:$0xff]  ;;  %v742_v15 = vld [vmem:[%s7979_s1 + $0xf40] sm:$0xff] }
  0xd3   :  { %4699 = vmatpush3.bf16.msra.mxu1 %v977_v17  ;;  %4678 = vmatprep.subr.bf16.mxu0 %v970_v26  ;;  %v721_v17 = vld [vmem:[%s7979_s1 + $0xe98] sm:$0xff]  ;;  %v188_v26 = vcombine.high %v6332_v11, %v6332_v11 }
  0xd4   :  { %4700 = vmatprep.subr.bf16.mxu1 %v986_v32  ;;  %v189_v32 = vcombine.high %v6341_v16, %v6341_v16  ;;  %v999_v28 = vpack.c.bf16 %v721_v17, %v720_v25  ;;  %v712_v17 = vld [vmem:[%s7979_s1 + $0xe50] sm:$0xff] }
  0xd5   :  { %v251_v41 = vpack.c.bf16 %v188_v26, %v188_v26  ;;  %v713_v26 = vld [vmem:[%s7979_s1 + $0xe58] sm:$0xff] }
  0xd6   :  { %4679 = vmatpush3.bf16.msra.mxu0 %v962_v37  ;;  %v736_v37 = vld [vmem:[%s7979_s1 + $0xf10] sm:$0xff]  ;;  %v253_v45 = vpack.c.bf16 %v189_v32, %v189_v32  ;;  %v745_v32 = vld [vmem:[%s7979_s1 + $0xf58] sm:$0xff]  ;;  %v995_v36 = vpack.c.bf16 %v713_v26, %v712_v17 }
  0xd7   :  { %4701 = vmatpush3.bf16.msra.mxu1 %v978_v39  ;;  %4680 = vmatprep.subr.bf16.mxu0 %v971_v40  ;;  %v1015_v39 = vpack.c.bf16 %v753_v30, %v752_v29  ;;  %v722_v40 = vld [vmem:[%s7979_s1 + $0xea0] sm:$0xff]  ;;  %v1007_v38 = vpack.c.bf16 %v737_v31, %v736_v37  ;;  %v6481_v29 = vsub.s32 0, %v4996_v0  ;;  %v1019_v30 = vpack.c.bf16 %v761_v22, %v760_v14 }
  0xd8   :  { %4702 = vmatprep.subr.bf16.mxu1 %v987_v44  ;;  %v755_v44 = vld [vmem:[%s7979_s1 + $0xfa8] sm:$0xff]  ;;  %v1000_v48 = vpack.c.bf16 %v723_v60, %v722_v40  ;;  %v714_v31 = vld [vmem:[%s7979_s1 + $0xe60] sm:$0xff] }
  0xd9   :  { %8000 = vst [vmem:[#allocation2_spill] sm:$0xff] %v6481_v29  ;;  %v715_v40 = vld [vmem:[%s7979_s1 + $0xe68] sm:$0xff]  ;;  %v746_v60 = vld [vmem:[%s7979_s1 + $0xf60] sm:$0xff] }
  0xda   :  { %4681 = vmatpush3.bf16.msra.mxu0 %v963_v43  ;;  %v707_v43 = vld [vmem:[%s7979_s1 + $0xe28] sm:$0xff]  ;;  %v996_v46 = vpack.c.bf16 %v715_v40, %v714_v31 }
  0xdb   :  { %4703 = vmatpush3.bf16.msra.mxu1 %v979_v51  ;;  %4682 = vmatprep.subr.bf16.mxu0 %v972_v53  ;;  %v1016_v51 = vpack.c.bf16 %v755_v44, %v754_v42  ;;  %v739_v53 = vld [vmem:[%s7979_s1 + $0xf28] sm:$0xff]  ;;  %v992_v57 = vpack.c.bf16 %v707_v43, %v706_v49  ;;  %v764_v43 = vld [vmem:[%s7979_s1 + $0xff0] sm:$0xff] }
  0xdc   :  { %4704 = vmatprep.subr.bf16.mxu1 %v988_v56  ;;  %v757_v56 = vld [vmem:[%s7979_s1 + $0xfb8] sm:$0xff]  ;;  %v1008_v58 = vpack.c.bf16 %v739_v53, %v738_v50 }
  0xdd   :  { %v765_v50 = vld [vmem:[%s7979_s1 + $0xff8] sm:$0xff] }
  0xde   :  { %4683 = vmatpush3.bf16.msra.mxu0 %v964_v3  ;;  %v1017_v3 = vpack.c.bf16 %v757_v56, %v756_v55 }
  0xdf   :  { %4705 = vmatpush3.bf16.msra.mxu1 %v980_v4  ;;  %4684 = vmatprep.subr.bf16.mxu0 %v973_v59  ;;  %v741_v4 = vld [vmem:[%s7979_s1 + $0xf38] sm:$0xff]  ;;  %v726_v59 = vld [vmem:[%s7979_s1 + $0xec0] sm:$0xff] }
  0xe0   :  { %4706 = vmatprep.subr.bf16.mxu1 %v989_v8  ;;  %v993_v8 = vpack.c.bf16 %v709_v1, %v708_v62  ;;  %v1009_v63 = vpack.c.bf16 %v741_v4, %v740_v2  ;;  %v1002_v9 = vpack.c.bf16 %v727_v5, %v726_v59  ;;  %v716_v62 = vld [vmem:[%s7979_s1 + $0xe70] sm:$0xff]  ;;  %v717_v1 = vld [vmem:[%s7979_s1 + $0xe78] sm:$0xff]  ;;  %v1021_v4 = vpack.c.bf16 %v765_v50, %v764_v43 }
  0xe1   :  { %v748_v59 = vld [vmem:[%s7979_s1 + $0xf70] sm:$0xff]  ;;  %v749_v5 = vld [vmem:[%s7979_s1 + $0xf78] sm:$0xff] }
  0xe2   :  { %4685 = vmatpush3.bf16.msra.mxu0 %v965_v18  ;;  %v1018_v18 = vpack.c.bf16 %v759_v7, %v758_v6  ;;  %v997_v7 = vpack.c.bf16 %v717_v1, %v716_v62  ;;  %v1702_v62 = vld [vmem:[%s7982_s3 + $0x8] sm:$0xff] }
  0xe3   :  { %4707 = vmatpush3.bf16.msra.mxu1 %v981_v19  ;;  %4714 = vmatprep.subr.bf16.mxu0 %v998_v20  ;;  %v743_v19 = vld [vmem:[%s7979_s1 + $0xf48] sm:$0xff]  ;;  %v728_v20 = vld [vmem:[%s7979_s1 + $0xed0] sm:$0xff] }
  0xe4   :  { %4736 = vmatprep.subr.bf16.mxu1 %v1014_v23  ;;  %v994_v23 = vpack.c.bf16 %v711_v12, %v710_v10  ;;  %v1010_v24 = vpack.c.bf16 %v743_v19, %v742_v15  ;;  %v1003_v25 = vpack.c.bf16 %v729_v21, %v728_v20  ;;  %v1734_v1 = vld [vmem:[%s7982_s3 + $0x108] sm:$0xff] }
  0xe5   :  { %1539 = vmatmul.mubr.bf16.vlgmr.msra.gmra.mrb[24].mxu0 %v246_v27  ;;  %v744_v27 = vld [vmem:[%s7979_s1 + $0xf50] sm:$0xff] }
  0xe6   :  { %1579 = vmatmul.mubr.bf16.vlgmr.msra.gmra.mrb[24].mxu1 %v248_v33  ;;  %4715 = vmatpush3.bf16.msra.mxu0 %v990_v34  ;;  %v730_v33 = vld [vmem:[%s7979_s1 + $0xee0] sm:$0xff]  ;;  %v731_v34 = vld [vmem:[%s7979_s1 + $0xee8] sm:$0xff]  ;;  %v1011_v37 = vpack.c.bf16 %v745_v32, %v744_v27 }
  0xe7   :  { %4737 = vmatpush3.bf16.msra.mxu1 %v1006_v35  ;;  %4716 = vmatprep.subr.bf16.mxu0 %v999_v28  ;;  %v6495_v35 = vld [vmem:[%s7981_s2] sm:$0x7] }
  0xe8   :  { %4738 = vmatprep.subr.bf16.mxu1 %v1015_v39  ;;  %1618 = vmatprep.mubr.bf16.mxu0 %v251_v41  ;;  %v762_v28 = vld [vmem:[%s7979_s1 + $0xfe0] sm:$0xff]  ;;  %v1004_v39 = vpack.c.bf16 %v731_v34, %v730_v33  ;;  %v1025_v42 = vrot.slane %v6495_v35, %v6481_v29 }
  0xe9   :  { %1658 = vmatprep.mubr.bf16.mxu1 %v253_v45  ;;  %v1020_v44 = vpack.c.bf16 %v763_v52, %v762_v28  ;;  %v747_v45 = vld [vmem:[%s7979_s1 + $0xf68] sm:$0xff] }
  0xea   :  { %4717 = vmatpush3.bf16.msra.mxu0 %v991_v47  ;;  %v732_v47 = vld [vmem:[%s7979_s1 + $0xef0] sm:$0xff] }
  0xeb   :  { %4739 = vmatpush3.bf16.msra.mxu1 %v1007_v38  ;;  %4718 = vmatprep.subr.bf16.mxu0 %v1000_v48  ;;  %v733_v38 = vld [vmem:[%s7979_s1 + $0xef8] sm:$0xff] }
  0xec   :  { %4740 = vmatprep.subr.bf16.mxu1 %v1016_v51 }
  0xee   :  { %4719 = vmatpush3.bf16.msra.mxu0 %v992_v57 }
  0xef   :  { %4741 = vmatpush3.bf16.msra.mxu1 %v1008_v58  ;;  %4720 = vmatprep.subr.bf16.mxu0 %v1001_v61  ;;  %v1012_v58 = vpack.c.bf16 %v747_v45, %v746_v60  ;;  %v1005_v61 = vpack.c.bf16 %v733_v38, %v732_v47 }
  0xf0   :  { %4742 = vmatprep.subr.bf16.mxu1 %v1017_v3 }
  0xf2   :  { %4721 = vmatpush3.bf16.msra.mxu0 %v993_v8  ;;  %v1013_v8 = vpack.c.bf16 %v749_v5, %v748_v59  ;;  %v1701_v59 = vld [vmem:[%s7982_s3] sm:$0xff] }
  0xf3   :  { %4743 = vmatpush3.bf16.msra.mxu1 %v1009_v63  ;;  %4722 = vmatprep.subr.bf16.mxu0 %v1002_v9  ;;  %v250_v63 = vpack.c.bf16 %v6332_v11, %v6332_v11  ;;  %v252_v9 = vpack.c.bf16 %v6341_v16, %v6341_v16  ;;  %v1733_v5 = vld [vmem:[%s7982_s3 + $0x100] sm:$0xff] }
  0xf4   :  { %4744 = vmatprep.subr.bf16.mxu1 %v1018_v18 }
  0xf6   :  { %4723 = vmatpush3.bf16.msra.mxu0 %v994_v23 }
  0xf7   :  { %4745 = vmatpush3.bf16.msra.mxu1 %v1010_v24  ;;  %4724 = vmatprep.subr.bf16.mxu0 %v1003_v25 }
  0xf8   :  { %v4422_v41 = vpop.f32.mrb[0].mxu0  ;;  %4746 = vmatprep.subr.bf16.mxu1 %v1019_v30 }
  0xf9   :  { %v4444_v48 = vpop.f32.mrb[0].mxu1  ;;  %v4423_v49 = vpop.f32.mrb[1].mxu0 }
  0xfa   :  { %v4424_v51 = vadd.f32 %v4423_v49, %v4422_v41  ;;  %v4445_v53 = vpop.f32.mrb[1].mxu1  ;;  %v4425_v54 = vpop.f32.mrb[2].mxu0  ;;  %4725 = vmatpush3.bf16.msra.mxu0 %v995_v36 }
  0xfb   :  { %v4446_v55 = vadd.f32 %v4445_v53, %v4444_v48  ;;  %v4447_v56 = vpop.f32.mrb[2].mxu1  ;;  %4747 = vmatpush3.bf16.msra.mxu1 %v1011_v37  ;;  %v4426_v57 = vpop.f32.mrb[3].mxu0  ;;  %4726 = vmatprep.subr.bf16.mxu0 %v1004_v39 }
  0xfc   :  { %v1061_v2 = vadd.f32 %v4424_v51, %v1025_v42  ;;  %v4448_v3 = vpop.f32.mrb[3].mxu1  ;;  %4748 = vmatprep.subr.bf16.mxu1 %v1020_v44 }
  0xfd   :  { %v1830_v3 = vpack.c.bf16 %v1734_v1, %v1702_v62 }
  0xfe   :  { %v1101_v6 = vadd.f32 %v4446_v55, %v1061_v2  ;;  %4727 = vmatpush3.bf16.msra.mxu0 %v996_v46  ;;  %v1704_v2 = vld [vmem:[%s7982_s3 + $0x18] sm:$0xff] }
  0xff   :  { %4749 = vmatpush3.bf16.msra.mxu1 %v1012_v58  ;;  %4728 = vmatprep.subr.bf16.mxu0 %v1005_v61 }
 0x100   :  { %4750 = vmatprep.subr.bf16.mxu1 %v1021_v4  ;;  %v1736_v4 = vld [vmem:[%s7982_s3 + $0x118] sm:$0xff] }
 0x102   :  { %4729 = vmatpush3.bf16.msra.mxu0 %v997_v7  ;;  %v1829_v7 = vpack.c.bf16 %v1733_v5, %v1701_v59 }
 0x103   :  { %4751 = vmatpush3.bf16.msra.mxu1 %v1013_v8  ;;  %v1703_v8 = vld [vmem:[%s7982_s3 + $0x10] sm:$0xff]  ;;  %2201 = vmatprep.subr.bf16.mxu0 %v1830_v3 }
 0x105   :  { %1619 = vmatmul.mubr.bf16.vlgmr.msra.gmra.mrb[28].mxu0 %v250_v63  ;;  %v1735_v63 = vld [vmem:[%s7982_s3 + $0x110] sm:$0xff] }
 0x106   :  { %1659 = vmatmul.mubr.bf16.vlgmr.msra.gmra.mrb[28].mxu1 %v252_v9  ;;  %v1831_v9 = vpack.c.bf16 %v1735_v63, %v1703_v8  ;;  %2202 = vmatpush1.bf16.msra.mxu0 %v1829_v7 }
 0x118   :  { %v4466_v10 = vpop.f32.mrb[4].mxu0 }
 0x119   :  { %v4488_v12 = vpop.f32.mrb[4].mxu1  ;;  %v4467_v15 = vpop.f32.mrb[5].mxu0 }
 0x11a   :  { %v4468_v18 = vadd.f32 %v4467_v15, %v4466_v10  ;;  %v4489_v19 = vpop.f32.mrb[5].mxu1  ;;  %v4469_v20 = vpop.f32.mrb[6].mxu0  ;;  %v1766_v10 = vld [vmem:[%s7982_s3 + $0x208] sm:$0xff]  ;;  %v1768_v15 = vld [vmem:[%s7982_s3 + $0x218] sm:$0xff] }
 0x11b   :  { %v4490_v21 = vadd.f32 %v4489_v19, %v4488_v12  ;;  %v4491_v14 = vpop.f32.mrb[6].mxu1  ;;  %v4470_v22 = vpop.f32.mrb[7].mxu0  ;;  %v1798_v12 = vld [vmem:[%s7982_s3 + $0x308] sm:$0xff]  ;;  %v1800_v19 = vld [vmem:[%s7982_s3 + $0x318] sm:$0xff]  ;;  %v1765_v20 = vld [vmem:[%s7982_s3 + $0x200] sm:$0xff] }
 0x11c   :  { %v1141_v23 = vadd.f32 %v4468_v18, %v1101_v6  ;;  %v4492_v24 = vpop.f32.mrb[7].mxu1  ;;  %v1832_v6 = vpack.c.bf16 %v1736_v4, %v1704_v2  ;;  %v1862_v18 = vpack.c.bf16 %v1798_v12, %v1766_v10  ;;  %v1864_v14 = vpack.c.bf16 %v1800_v19, %v1768_v15 }
 0x11d   :  { %v1799_v24 = vld [vmem:[%s7982_s3 + $0x310] sm:$0xff] }
 0x11e   :  { %v1181_v25 = vadd.f32 %v4490_v21, %v1141_v23  ;;  %2242 = vmatprep.subr.bf16.mxu1 %v1832_v6  ;;  %v1797_v21 = vld [vmem:[%s7982_s3 + $0x300] sm:$0xff]  ;;  %v1767_v23 = vld [vmem:[%s7982_s3 + $0x210] sm:$0xff]  ;;  %2203 = vmatprep.subr.bf16.mxu0 %v1862_v18 }
 0x11f   :  { %2243 = vmatpush1.bf16.msra.mxu1 %v1831_v9  ;;  %v1861_v22 = vpack.c.bf16 %v1797_v21, %v1765_v20 }
 0x120   :  { %2244 = vmatprep.subr.bf16.mxu1 %v1864_v14 }
 0x121   :  { %2204 = vmatpush1.bf16.msra.mxu0 %v1861_v22 }
 0x138   :  { %v4510_v11 = vpop.f32.mrb[8].mxu0 }
 0x139   :  { %v4532_v17 = vpop.f32.mrb[8].mxu1  ;;  %v4511_v26 = vpop.f32.mrb[9].mxu0 }
 0x13a   :  { %v4512_v27 = vadd.f32 %v4511_v26, %v4510_v11  ;;  %v4533_v16 = vpop.f32.mrb[9].mxu1  ;;  %v4513_v30 = vpop.f32.mrb[10].mxu0  ;;  %v1706_v11 = vld [vmem:[%s7982_s3 + $0x28] sm:$0xff]  ;;  %v1708_v26 = vld [vmem:[%s7982_s3 + $0x38] sm:$0xff] }
 0x13b   :  { %v4534_v32 = vadd.f32 %v4533_v16, %v4532_v17  ;;  %v4535_v33 = vpop.f32.mrb[10].mxu1  ;;  %v4514_v34 = vpop.f32.mrb[11].mxu0  ;;  %v1738_v17 = vld [vmem:[%s7982_s3 + $0x128] sm:$0xff]  ;;  %v4839_v16 = vmov 0  }
 0x13c   :  { %v1221_v28 = vadd.f32 %v4512_v27, %v1181_v25  ;;  %v4536_v52 = vpop.f32.mrb[11].mxu1  ;;  %v1863_v25 = vpack.c.bf16 %v1799_v24, %v1767_v23  ;;  %2233 = vmatprep.mubr.bf16.mxu0 %v4839_v16  ;;  %v1834_v30 = vpack.c.bf16 %v1738_v17, %v1706_v11  ;;  %2274 = vmatprep.mubr.bf16.mxu1 %v4839_v16 }
 0x13e   :  { %v1261_v36 = vadd.f32 %v4534_v32, %v1221_v28  ;;  %2245 = vmatpush1.bf16.msra.mxu1 %v1863_v25  ;;  %v1740_v32 = vld [vmem:[%s7982_s3 + $0x138] sm:$0xff]  ;;  %2283 = vmatprep.subr.bf16.mxu0 %v1834_v30 }
 0x13f   :  { %v1836_v28 = vpack.c.bf16 %v1740_v32, %v1708_v26  ;;  %v6608_v26 = vsub.s32 1, %v4996_v0 }
 0x141   :  { %2324 = vmatprep.subr.bf16.mxu1 %v1836_v28  ;;  %8001 = vst [vmem:[#allocation3_spill] sm:$0xff] %v6608_v26  ;;  %v1692_v30 = vrot.slane %v6495_v35, %v6608_v26 }
 0x158   :  { %v4554_v37 = vpop.f32.mrb[12].mxu0 }
 0x159   :  { %v4576_v39 = vpop.f32.mrb[12].mxu1  ;;  %v4555_v31 = vpop.f32.mrb[13].mxu0 }
 0x15a   :  { %v4556_v40 = vadd.f32 %v4555_v31, %v4554_v37  ;;  %v4577_v60 = vpop.f32.mrb[13].mxu1  ;;  %v4557_v41 = vpop.f32.mrb[14].mxu0 }
 0x15b   :  { %v4578_v42 = vadd.f32 %v4577_v60, %v4576_v39  ;;  %v4579_v44 = vpop.f32.mrb[14].mxu1  ;;  %v4558_v45 = vpop.f32.mrb[15].mxu0 }
 0x15c   :  { %v1301_v47 = vadd.f32 %v4556_v40, %v1261_v36  ;;  %v4580_v38 = vpop.f32.mrb[15].mxu1 }
 0x15e   :  { %v1341_v48 = vadd.f32 %v4578_v42, %v1301_v47 }
 0x178   :  { %v4598_v49 = vpop.f32.mrb[16].mxu0 }
 0x179   :  { %v4620_v43 = vpop.f32.mrb[16].mxu1  ;;  %v4599_v50 = vpop.f32.mrb[17].mxu0 }
 0x17a   :  { %v4600_v51 = vadd.f32 %v4599_v50, %v4598_v49  ;;  %v4621_v53 = vpop.f32.mrb[17].mxu1  ;;  %v4601_v54 = vpop.f32.mrb[18].mxu0 }
 0x17b   :  { %v4622_v46 = vadd.f32 %v4621_v53, %v4620_v43  ;;  %v4623_v55 = vpop.f32.mrb[18].mxu1  ;;  %v4602_v56 = vpop.f32.mrb[19].mxu0 }
 0x17c   :  { %v1381_v57 = vadd.f32 %v4600_v51, %v1341_v48  ;;  %v4624_v58 = vpop.f32.mrb[19].mxu1 }
 0x17e   :  { %v1421_v61 = vadd.f32 %v4622_v46, %v1381_v57 }
 0x198   :  { %v4642_v27 = vpop.f32.mrb[20].mxu0 }
 0x199   :  { %v4664_v33 = vpop.f32.mrb[20].mxu1  ;;  %v4643_v34 = vpop.f32.mrb[21].mxu0 }
 0x19a   :  { %v4644_v52 = vadd.f32 %v4643_v34, %v4642_v27  ;;  %v4665_v36 = vpop.f32.mrb[21].mxu1  ;;  %v4645_v37 = vpop.f32.mrb[22].mxu0  ;;  %v6611_v27 = vsub.s32 2, %v4996_v0 }
 0x19b   :  { %v4666_v39 = vadd.f32 %v4665_v36, %v4664_v33  ;;  %v4667_v31 = vpop.f32.mrb[22].mxu1  ;;  %v4646_v40 = vpop.f32.mrb[23].mxu0  ;;  %v1737_v36 = vld [vmem:[%s7982_s3 + $0x120] sm:$0xff] }
 0x19c   :  { %v1461_v60 = vadd.f32 %v4644_v52, %v1421_v61  ;;  %v4668_v41 = vpop.f32.mrb[23].mxu1  ;;  %8002 = vst [vmem:[#allocation4_spill] sm:$0xff] %v6611_v27  ;;  %v1697_v33 = vrot.slane %v6495_v35, %v6611_v27  ;;  %v1705_v52 = vld [vmem:[%s7982_s3 + $0x20] sm:$0xff]  ;;  %v1739_v31 = vld [vmem:[%s7982_s3 + $0x130] sm:$0xff]  ;;  %v1770_v35 = vld [vmem:[%s7982_s3 + $0x228] sm:$0xff] }
 0x19d   :  { %v1802_v40 = vld [vmem:[%s7982_s3 + $0x328] sm:$0xff]  ;;  %v1804_v41 = vld [vmem:[%s7982_s3 + $0x338] sm:$0xff] }
 0x19e   :  { %v1501_v42 = vadd.f32 %v4666_v39, %v1461_v60  ;;  %v1707_v39 = vld [vmem:[%s7982_s3 + $0x30] sm:$0xff]  ;;  %v1772_v60 = vld [vmem:[%s7982_s3 + $0x238] sm:$0xff] }
 0x1b8   :  { %v4686_v44 = vpop.f32.mrb[24].mxu0 }
 0x1b9   :  { %v4708_v45 = vpop.f32.mrb[24].mxu1  ;;  %v4687_v47 = vpop.f32.mrb[25].mxu0 }
 0x1ba   :  { %v4688_v38 = vadd.f32 %v4687_v47, %v4686_v44  ;;  %v4709_v48 = vpop.f32.mrb[25].mxu1  ;;  %v4689_v49 = vpop.f32.mrb[26].mxu0  ;;  %v1833_v44 = vpack.c.bf16 %v1737_v36, %v1705_v52  ;;  %v1769_v47 = vld [vmem:[%s7982_s3 + $0x220] sm:$0xff]  ;;  %v1812_v52 = vld [vmem:[%s7982_s3 + $0x378] sm:$0xff] }
 0x1bb   :  { %v4710_v43 = vadd.f32 %v4709_v48, %v4708_v45  ;;  %v4711_v50 = vpop.f32.mrb[26].mxu1  ;;  %v4690_v51 = vpop.f32.mrb[27].mxu0  ;;  %v1835_v45 = vpack.c.bf16 %v1739_v31, %v1707_v39  ;;  %v1866_v49 = vpack.c.bf16 %v1802_v40, %v1770_v35  ;;  %v1777_v39 = vld [vmem:[%s7982_s3 + $0x260] sm:$0xff] }
 0x1bc   :  { %v1541_v53 = vadd.f32 %v4688_v38, %v1501_v42  ;;  %v4712_v54 = vpop.f32.mrb[27].mxu1  ;;  %v1801_v38 = vld [vmem:[%s7982_s3 + $0x320] sm:$0xff]  ;;  %v1771_v50 = vld [vmem:[%s7982_s3 + $0x230] sm:$0xff] }
 0x1bd   :  { %v1803_v51 = vld [vmem:[%s7982_s3 + $0x330] sm:$0xff]  ;;  %v1742_v54 = vld [vmem:[%s7982_s3 + $0x148] sm:$0xff]  ;;  %v1809_v31 = vld [vmem:[%s7982_s3 + $0x360] sm:$0xff] }
 0x1be   :  { %v1581_v46 = vadd.f32 %v4710_v43, %v1541_v53  ;;  %v1868_v43 = vpack.c.bf16 %v1804_v41, %v1772_v60  ;;  %v1710_v53 = vld [vmem:[%s7982_s3 + $0x48] sm:$0xff]  ;;  %v1779_v60 = vld [vmem:[%s7982_s3 + $0x270] sm:$0xff] }
 0x1bf   :  { %v1811_v41 = vld [vmem:[%s7982_s3 + $0x370] sm:$0xff] }
 0x1d8   :  { %v4730_v55 = vpop.f32.mrb[28].mxu0 }
 0x1d9   :  { %v4752_v56 = vpop.f32.mrb[28].mxu1  ;;  %v4731_v57 = vpop.f32.mrb[29].mxu0 }
 0x1da   :  { %v4732_v58 = vadd.f32 %v4731_v57, %v4730_v55  ;;  %v4753_v62 = vpop.f32.mrb[29].mxu1  ;;  %v4733_v61 = vpop.f32.mrb[30].mxu0  ;;  %v1744_v55 = vld [vmem:[%s7982_s3 + $0x158] sm:$0xff]  ;;  %v1867_v57 = vpack.c.bf16 %v1803_v51, %v1771_v50  ;;  %v1749_v50 = vld [vmem:[%s7982_s3 + $0x180] sm:$0xff] }
 0x1db   :  { %v4754_v1 = vadd.f32 %v4753_v62, %v4752_v56  ;;  %v4755_v2 = vpop.f32.mrb[30].mxu1  ;;  %v4734_v3 = vpop.f32.mrb[31].mxu0  ;;  %v1865_v56 = vpack.c.bf16 %v1801_v38, %v1769_v47  ;;  %v1741_v62 = vld [vmem:[%s7982_s3 + $0x140] sm:$0xff]  ;;  %v1838_v61 = vpack.c.bf16 %v1742_v54, %v1710_v53  ;;  %v1752_v47 = vld [vmem:[%s7982_s3 + $0x198] sm:$0xff]  ;;  %v1873_v38 = vpack.c.bf16 %v1809_v31, %v1777_v39  ;;  %v1719_v54 = vld [vmem:[%s7982_s3 + $0x90] sm:$0xff] }
 0x1dc   :  { %v1621_v4 = vadd.f32 %v4732_v58, %v1581_v46  ;;  %v4756_v59 = vpop.f32.mrb[31].mxu1  ;;  %v1712_v46 = vld [vmem:[%s7982_s3 + $0x58] sm:$0xff]  ;;  %v1709_v58 = vld [vmem:[%s7982_s3 + $0x40] sm:$0xff]  ;;  %v1711_v2 = vld [vmem:[%s7982_s3 + $0x50] sm:$0xff] }
 0x1dd   :  { %v1743_v3 = vld [vmem:[%s7982_s3 + $0x150] sm:$0xff]  ;;  %v1806_v59 = vld [vmem:[%s7982_s3 + $0x348] sm:$0xff]  ;;  %v1760_v39 = vld [vmem:[%s7982_s3 + $0x1d8] sm:$0xff] }
 0x1de   :  { %v1661_v5 = vadd.f32 %v4754_v1, %v1621_v4  ;;  %v1840_v1 = vpack.c.bf16 %v1744_v55, %v1712_v46  ;;  %v1774_v4 = vld [vmem:[%s7982_s3 + $0x248] sm:$0xff]  ;;  %v1751_v46 = vld [vmem:[%s7982_s3 + $0x190] sm:$0xff] }
 0x1df   :  { %v1782_v55 = vld [vmem:[%s7982_s3 + $0x288] sm:$0xff] }
 0x1e0   :  { %v1667_v6 = vsel %vm1666_vm0, %v1661_v5, 0.0 }
 0x1e1   :  { %v1668_v7 = vrot.slane %v1667_v6, 4 }
 0x1e3   :  { %v1669_v8 = vadd.f32 %v1668_v7, %v1667_v6  ;;  %v1808_v6 = vld [vmem:[%s7982_s3 + $0x358] sm:$0xff]  ;;  %v1837_v7 = vpack.c.bf16 %v1741_v62, %v1709_v58 }
 0x1e4   :  { %v1816_v58 = vld [vmem:[%s7982_s3 + $0x398] sm:$0xff] }
 0x1e5   :  { %v1670_v63 = vrot.slane %v1669_v8, 2 }
 0x1e7   :  { %v1671_v9 = vadd.f32 %v1670_v63, %v1669_v8  ;;  %v1839_v8 = vpack.c.bf16 %v1743_v3, %v1711_v2  ;;  %v1773_v63 = vld [vmem:[%s7982_s3 + $0x240] sm:$0xff] }
 0x1e8   :  { %v1813_v2 = vld [vmem:[%s7982_s3 + $0x380] sm:$0xff] }
 0x1e9   :  { %v1672_v10 = vrot.slane %v1671_v9, 1 }
 0x1eb   :  { %v1673_v12 = vadd.f32 %v1672_v10, %v1671_v9  ;;  %v1805_v9 = vld [vmem:[%s7982_s3 + $0x340] sm:$0xff]  ;;  %v1870_v10 = vpack.c.bf16 %v1806_v59, %v1774_v4  ;;  %v1783_v59 = vld [vmem:[%s7982_s3 + $0x290] sm:$0xff] }
 0x1ed   :  { %v1675_v15 = vmul.f32 0.5, %v1673_v12 }
 0x1ef   :  { %v1676_v18 = vsub.f32 %v1661_v5, %v1675_v15  ;;  %v1776_v5 = vld [vmem:[%s7982_s3 + $0x258] sm:$0xff]  ;;  %v1775_v15 = vld [vmem:[%s7982_s3 + $0x250] sm:$0xff] }
 0x1f0   :  { %v1872_v12 = vpack.c.bf16 %v1808_v6, %v1776_v5  ;;  %v1815_v5 = vld [vmem:[%s7982_s3 + $0x390] sm:$0xff]  ;;  %v1722_v6 = vld [vmem:[%s7982_s3 + $0xa8] sm:$0xff] }
 0x1f1   :  { %v1677_v19 = vmul.f32 %v1676_v18, %v1676_v18 }
 0x1f3   :  { %v1678_v20 = vsel %vm1666_vm0, %v1677_v19, 0.0  ;;  %v1714_v19 = vld [vmem:[%s7982_s3 + $0x68] sm:$0xff] }
 0x1f4   :  { %v1679_v21 = vrot.slane %v1678_v20, 4 }
 0x1f6   :  { %v1680_v14 = vadd.f32 %v1679_v21, %v1678_v20  ;;  %v1746_v20 = vld [vmem:[%s7982_s3 + $0x168] sm:$0xff]  ;;  %v1716_v21 = vld [vmem:[%s7982_s3 + $0x78] sm:$0xff] }
 0x1f8   :  { %v1681_v22 = vrot.slane %v1680_v14, 2 }
 0x1fa   :  { %v1682_v23 = vadd.f32 %v1681_v22, %v1680_v14  ;;  %v1748_v14 = vld [vmem:[%s7982_s3 + $0x178] sm:$0xff]  ;;  %v1869_v22 = vpack.c.bf16 %v1805_v9, %v1773_v63 }
 0x1fb   :  { %v1756_v63 = vld [vmem:[%s7982_s3 + $0x1b8] sm:$0xff] }
 0x1fc   :  { %v1683_v24 = vrot.slane %v1682_v23, 1 }
 0x1fe   :  { %v1684_v25 = vadd.f32 %v1683_v24, %v1682_v23  ;;  %v1713_v24 = vld [vmem:[%s7982_s3 + $0x60] sm:$0xff] }
 0x200   :  { %v1685_v11 = vmul.f32 0.5, %v1684_v25  ;;  %v1745_v25 = vld [vmem:[%s7982_s3 + $0x160] sm:$0xff] }
 0x201   :  { %v1841_v36 = vpack.c.bf16 %v1745_v25, %v1713_v24  ;;  %v1820_v24 = vld [vmem:[%s7982_s3 + $0x3b8] sm:$0xff] }
 0x202   :  { %v1686_v17 = vadd.f32 0.8, %v1685_v11  ;;  %v1842_v11 = vpack.c.bf16 %v1746_v20, %v1714_v19  ;;  %v1723_v20 = vld [vmem:[%s7982_s3 + $0xb0] sm:$0xff] }
 0x204   :  { %4768 = vrsqrt.f32 %v1686_v17  ;;  %v1844_v17 = vpack.c.bf16 %v1748_v14, %v1716_v21  ;;  %v1755_v21 = vld [vmem:[%s7982_s3 + $0x1b0] sm:$0xff]  ;;  %v1786_v14 = vld [vmem:[%s7982_s3 + $0x2a8] sm:$0xff] }
 0x20e   :  { %v4769_v32 = vpop.eup %4768 }
 0x20f   :  { %v1688_v34 = vmul.f32 %v4769_v32, %v1676_v18  ;;  %v1807_v18 = vld [vmem:[%s7982_s3 + $0x350] sm:$0xff] }
 0x210   :  { %v1871_v23 = vpack.c.bf16 %v1807_v18, %v1775_v15  ;;  %v1747_v32 = vld [vmem:[%s7982_s3 + $0x170] sm:$0xff]  ;;  %v1753_v15 = vld [vmem:[%s7982_s3 + $0x1a0] sm:$0xff] }
 0x211   :  { %v1693_v28 = vmul.f32 %v1692_v30, %v1688_v34  ;;  %v1715_v30 = vld [vmem:[%s7982_s3 + $0x70] sm:$0xff]  ;;  %v1810_v34 = vld [vmem:[%s7982_s3 + $0x368] sm:$0xff] }
 0x213   :  { %v1698_v37 = vadd.f32 %v1697_v33, %v1693_v28  ;;  %v1778_v33 = vld [vmem:[%s7982_s3 + $0x268] sm:$0xff]  ;;  %v1780_v28 = vld [vmem:[%s7982_s3 + $0x278] sm:$0xff] }
 0x214   :  { %v1874_v35 = vpack.c.bf16 %v1810_v34, %v1778_v33  ;;  %v1876_v40 = vpack.c.bf16 %v1812_v52, %v1780_v28  ;;  %v1787_v34 = vld [vmem:[%s7982_s3 + $0x2b0] sm:$0xff]  ;;  %v1726_v52 = vld [vmem:[%s7982_s3 + $0xc8] sm:$0xff] }
 0x215   :  { %v1699_v42 = vmax.f32 %v1698_v37, 0.0  ;;  %v1843_v37 = vpack.c.bf16 %v1747_v32, %v1715_v30  ;;  %v1817_v30 = vld [vmem:[%s7982_s3 + $0x3a0] sm:$0xff]  ;;  %v1819_v28 = vld [vmem:[%s7982_s3 + $0x3b0] sm:$0xff] }
 0x217   :  { %v6647_v48 = vpack.c.bf16 %v1699_v42, %v1699_v42  ;;  %v1718_v42 = vld [vmem:[%s7982_s3 + $0x88] sm:$0xff] }
 0x219   :  { %4390 = vmatmul.mubr.msk.bf16.vlgmr.msra.gmra.mrb[32].mxu0 %vm2197_vm1, %v6647_v48  ;;  %4391 = vmatmul.mubr.msk.bf16.vlgmr.msra.gmra.mrb[32].mxu1 %vm2197_vm1, %v6647_v48 }
 0x21a   :  { %2284 = vmatpush1.bf16.msra.mxu0 %v1833_v44  ;;  %2325 = vmatpush1.bf16.msra.mxu1 %v1835_v45  ;;  %v1750_v44 = vld [vmem:[%s7982_s3 + $0x188] sm:$0xff]  ;;  %v1720_v45 = vld [vmem:[%s7982_s3 + $0x98] sm:$0xff] }
 0x21b   :  { %2285 = vmatprep.subr.bf16.mxu0 %v1866_v49  ;;  %2326 = vmatprep.subr.bf16.mxu1 %v1868_v43  ;;  %v1875_v49 = vpack.c.bf16 %v1811_v41, %v1779_v60  ;;  %v1717_v43 = vld [vmem:[%s7982_s3 + $0x80] sm:$0xff]  ;;  %v1846_v51 = vpack.c.bf16 %v1750_v44, %v1718_v42  ;;  %v1848_v53 = vpack.c.bf16 %v1752_v47, %v1720_v45  ;;  %v1727_v44 = vld [vmem:[%s7982_s3 + $0xd0] sm:$0xff]  ;;  %v1790_v47 = vld [vmem:[%s7982_s3 + $0x2c8] sm:$0xff] }
 0x21c   :  { %2315 = vmatprep.mubr.bf16.mxu0 %v4839_v16  ;;  %2356 = vmatprep.mubr.bf16.mxu1 %v4839_v16  ;;  %v1845_v62 = vpack.c.bf16 %v1749_v50, %v1717_v43  ;;  %v1757_v60 = vld [vmem:[%s7982_s3 + $0x1c0] sm:$0xff]  ;;  %v1759_v45 = vld [vmem:[%s7982_s3 + $0x1d0] sm:$0xff]  ;;  %v1824_v43 = vld [vmem:[%s7982_s3 + $0x3d8] sm:$0xff] }
 0x21e   :  { %2286 = vmatpush1.bf16.msra.mxu0 %v1865_v56  ;;  %2327 = vmatpush1.bf16.msra.mxu1 %v1867_v57  ;;  %v1814_v56 = vld [vmem:[%s7982_s3 + $0x388] sm:$0xff]  ;;  %v1784_v57 = vld [vmem:[%s7982_s3 + $0x298] sm:$0xff] }
 0x21f   :  { %2365 = vmatprep.subr.bf16.mxu0 %v1838_v61  ;;  %2406 = vmatprep.subr.bf16.mxu1 %v1840_v1  ;;  %v1847_v61 = vpack.c.bf16 %v1751_v46, %v1719_v54  ;;  %v1781_v1 = vld [vmem:[%s7982_s3 + $0x280] sm:$0xff]  ;;  %v1878_v3 = vpack.c.bf16 %v1814_v56, %v1782_v55  ;;  %v1880_v4 = vpack.c.bf16 %v1816_v58, %v1784_v57  ;;  %v1791_v56 = vld [vmem:[%s7982_s3 + $0x2d0] sm:$0xff]  ;;  %v1730_v58 = vld [vmem:[%s7982_s3 + $0xe8] sm:$0xff] }
 0x220   :  { %v1877_v9 = vpack.c.bf16 %v1813_v2, %v1781_v1  ;;  %v1821_v54 = vld [vmem:[%s7982_s3 + $0x3c0] sm:$0xff]  ;;  %v1823_v57 = vld [vmem:[%s7982_s3 + $0x3d0] sm:$0xff]  ;;  %v1764_v1 = vld [vmem:[%s7982_s3 + $0x1f8] sm:$0xff] }
 0x221   :  { %4392 = vmatmul.mubr.msk.bf16.vlgmr.msra.gmra.mrb[36].mxu0 %vm2197_vm1, %v6647_v48  ;;  %4393 = vmatmul.mubr.msk.bf16.vlgmr.msra.gmra.mrb[36].mxu1 %vm2197_vm1, %v6647_v48 }
 0x222   :  { %2366 = vmatpush1.bf16.msra.mxu0 %v1837_v7  ;;  %2407 = vmatpush1.bf16.msra.mxu1 %v1839_v8  ;;  %v1754_v7 = vld [vmem:[%s7982_s3 + $0x1a8] sm:$0xff]  ;;  %v1724_v8 = vld [vmem:[%s7982_s3 + $0xb8] sm:$0xff] }
 0x223   :  { %2367 = vmatprep.subr.bf16.mxu0 %v1870_v10  ;;  %2408 = vmatprep.subr.bf16.mxu1 %v1872_v12  ;;  %v1879_v10 = vpack.c.bf16 %v1815_v5, %v1783_v59  ;;  %v1721_v12 = vld [vmem:[%s7982_s3 + $0xa0] sm:$0xff]  ;;  %v1850_v18 = vpack.c.bf16 %v1754_v7, %v1722_v6  ;;  %v1852_v19 = vpack.c.bf16 %v1756_v63, %v1724_v8  ;;  %v1731_v7 = vld [vmem:[%s7982_s3 + $0xf0] sm:$0xff]  ;;  %v1794_v63 = vld [vmem:[%s7982_s3 + $0x2e8] sm:$0xff] }
 0x224   :  { %2397 = vmatprep.mubr.bf16.mxu0 %v4839_v16  ;;  %2438 = vmatprep.mubr.bf16.mxu1 %v4839_v16  ;;  %v1849_v25 = vpack.c.bf16 %v1753_v15, %v1721_v12  ;;  %v1761_v59 = vld [vmem:[%s7982_s3 + $0x1e0] sm:$0xff]  ;;  %v1763_v8 = vld [vmem:[%s7982_s3 + $0x1f0] sm:$0xff]  ;;  %v1828_v12 = vld [vmem:[%s7982_s3 + $0x3f8] sm:$0xff] }
 0x226   :  { %2368 = vmatpush1.bf16.msra.mxu0 %v1869_v22  ;;  %2409 = vmatpush1.bf16.msra.mxu1 %v1871_v23  ;;  %v1818_v22 = vld [vmem:[%s7982_s3 + $0x3a8] sm:$0xff]  ;;  %v1788_v23 = vld [vmem:[%s7982_s3 + $0x2b8] sm:$0xff] }
 0x227   :  { %2447 = vmatprep.subr.bf16.mxu0 %v1842_v11  ;;  %2488 = vmatprep.subr.bf16.mxu1 %v1844_v17  ;;  %v1851_v11 = vpack.c.bf16 %v1755_v21, %v1723_v20  ;;  %v1785_v17 = vld [vmem:[%s7982_s3 + $0x2a0] sm:$0xff]  ;;  %v1882_v32 = vpack.c.bf16 %v1818_v22, %v1786_v14  ;;  %v1884_v33 = vpack.c.bf16 %v1820_v24, %v1788_v23  ;;  %v1795_v22 = vld [vmem:[%s7982_s3 + $0x2f0] sm:$0xff] }
 0x228   :  { %v1881_v31 = vpack.c.bf16 %v1817_v30, %v1785_v17  ;;  %v1825_v14 = vld [vmem:[%s7982_s3 + $0x3e0] sm:$0xff]  ;;  %v1827_v23 = vld [vmem:[%s7982_s3 + $0x3f0] sm:$0xff]  ;;  %v31_v17 = vld [vmem:[%s7983_s4 + $0x8] sm:$0x77]  ;;  %v6996_v30 = vsub.s32 4, %v4996_v0 }
 0x229   :  { %4394 = vmatmul.mubr.msk.bf16.vlgmr.msra.gmra.mrb[40].mxu0 %vm2197_vm1, %v6647_v48  ;;  %4395 = vmatmul.mubr.msk.bf16.vlgmr.msra.gmra.mrb[40].mxu1 %vm2197_vm1, %v6647_v48 }
 0x22a   :  { %2448 = vmatpush1.bf16.msra.mxu0 %v1841_v36  ;;  %2489 = vmatpush1.bf16.msra.mxu1 %v1843_v37  ;;  %v1758_v36 = vld [vmem:[%s7982_s3 + $0x1c8] sm:$0xff]  ;;  %v1728_v37 = vld [vmem:[%s7982_s3 + $0xd8] sm:$0xff]  ;;  %8003 = vst [vmem:[#allocation5_spill] sm:$0xff] %v6996_v30 }
 0x22b   :  { %2449 = vmatprep.subr.bf16.mxu0 %v1874_v35  ;;  %2490 = vmatprep.subr.bf16.mxu1 %v1876_v40  ;;  %v1883_v35 = vpack.c.bf16 %v1819_v28, %v1787_v34  ;;  %v1725_v40 = vld [vmem:[%s7982_s3 + $0xc0] sm:$0xff]  ;;  %v1854_v41 = vpack.c.bf16 %v1758_v36, %v1726_v52  ;;  %v1856_v42 = vpack.c.bf16 %v1760_v39, %v1728_v37  ;;  %v7010_v28 = vld [vmem:[%s7983_s4 + $0x18] sm:$0x77]  ;;  %v7024_v39 = vsub.s32 5, %v4996_v0 }
 0x22c   :  { %2479 = vmatprep.mubr.bf16.mxu0 %v4839_v16  ;;  %2520 = vmatprep.mubr.bf16.mxu1 %v4839_v16  ;;  %v1853_v50 = vpack.c.bf16 %v1757_v60, %v1725_v40  ;;  %v1924_v34 = vrot.slane %v31_v17, %v6996_v30  ;;  %v7015_v52 = vld [vmem:[%s7983_s4 + $0x20] sm:$0x77]  ;;  %v7035_v40 = vsub.s32 6, %v4996_v0 }
 0x22d   :  { %8004 = vst [vmem:[#allocation6_spill] sm:$0xff] %v7024_v39 }
 0x22e   :  { %2450 = vmatpush1.bf16.msra.mxu0 %v1873_v38  ;;  %2491 = vmatpush1.bf16.msra.mxu1 %v1875_v49  ;;  %v1822_v38 = vld [vmem:[%s7982_s3 + $0x3c8] sm:$0xff]  ;;  %v1792_v49 = vld [vmem:[%s7982_s3 + $0x2d8] sm:$0xff]  ;;  %8005 = vst [vmem:[#allocation7_spill] sm:$0xff] %v7035_v40 }
 0x22f   :  { %2529 = vmatprep.subr.bf16.mxu0 %v1846_v51  ;;  %2570 = vmatprep.subr.bf16.mxu1 %v1848_v53  ;;  %v1855_v51 = vpack.c.bf16 %v1759_v45, %v1727_v44  ;;  %v1789_v53 = vld [vmem:[%s7982_s3 + $0x2c0] sm:$0xff]  ;;  %v1886_v46 = vpack.c.bf16 %v1822_v38, %v1790_v47  ;;  %v1888_v55 = vpack.c.bf16 %v1824_v43, %v1792_v49 }
 0x230   :  { %v1885_v2 = vpack.c.bf16 %v1821_v54, %v1789_v53  ;;  %v1940_v45 = vrot.slane %v7010_v28, %v6996_v30  ;;  %v1944_v47 = vrot.slane %v7015_v52, %v6481_v29  ;;  %v1948_v49 = vrot.slane %v7015_v52, %v6996_v30 }
 0x231   :  { %4396 = vmatmul.mubr.msk.bf16.vlgmr.msra.gmra.mrb[44].mxu0 %vm2197_vm1, %v6647_v48  ;;  %4397 = vmatmul.mubr.msk.bf16.vlgmr.msra.gmra.mrb[44].mxu1 %vm2197_vm1, %v6647_v48  ;;  %v3861_v53 = vrot.slane %v31_v17, %v6611_v27 }
 0x232   :  { %2530 = vmatpush1.bf16.msra.mxu0 %v1845_v62  ;;  %2571 = vmatpush1.bf16.msra.mxu1 %v1847_v61  ;;  %v1762_v62 = vld [vmem:[%s7982_s3 + $0x1e8] sm:$0xff]  ;;  %v1732_v61 = vld [vmem:[%s7982_s3 + $0xf8] sm:$0xff] }
 0x233   :  { %2531 = vmatprep.subr.bf16.mxu0 %v1878_v3  ;;  %2572 = vmatprep.subr.bf16.mxu1 %v1880_v4  ;;  %v1887_v3 = vpack.c.bf16 %v1823_v57, %v1791_v56  ;;  %v1729_v4 = vld [vmem:[%s7982_s3 + $0xe0] sm:$0xff]  ;;  %v1858_v5 = vpack.c.bf16 %v1762_v62, %v1730_v58  ;;  %v1860_v6 = vpack.c.bf16 %v1764_v1, %v1732_v61 }
 0x234   :  { %2561 = vmatprep.mubr.bf16.mxu0 %v4839_v16  ;;  %2602 = vmatprep.mubr.bf16.mxu1 %v4839_v16  ;;  %v1857_v15 = vpack.c.bf16 %v1761_v59, %v1729_v4  ;;  %v3865_v58 = vrot.slane %v31_v17, %v7035_v40  ;;  %v7074_v61 = vrot.slane %v1940_v45, %v6481_v29 }
 0x235   :  { %v7077_v1 = vrot.slane %v1944_v47, %v6481_v29  ;;  %v7091_v59 = vrot.slane %v1948_v49, %v6481_v29  ;;  %v3885_v47 = vrot.slane %v7015_v52, %v6611_v27 }
 0x236   :  { %2532 = vmatpush1.bf16.msra.mxu0 %v1877_v9  ;;  %2573 = vmatpush1.bf16.msra.mxu1 %v1879_v10  ;;  %v1826_v9 = vld [vmem:[%s7982_s3 + $0x3e8] sm:$0xff]  ;;  %v1796_v10 = vld [vmem:[%s7982_s3 + $0x2f8] sm:$0xff] }
 0x237   :  { %2611 = vmatprep.subr.bf16.mxu0 %v1850_v18  ;;  %2652 = vmatprep.subr.bf16.mxu1 %v1852_v19  ;;  %v1859_v18 = vpack.c.bf16 %v1763_v8, %v1731_v7  ;;  %v1793_v19 = vld [vmem:[%s7982_s3 + $0x2e0] sm:$0xff]  ;;  %v1890_v20 = vpack.c.bf16 %v1826_v9, %v1794_v63  ;;  %v1892_v21 = vpack.c.bf16 %v1828_v12, %v1796_v10 }
 0x238   :  { %v1889_v24 = vpack.c.bf16 %v1825_v14, %v1793_v19  ;;  %v7106_v63 = vrot.slane %v3861_v53, %v6611_v27  ;;  %v38_v19 = vld [vmem:[%s7983_s4 + $0x40] sm:$0x77]  ;;  %v3557_v14 = vrot.slane %v7010_v28, %v6608_v26 }
 0x239   :  { %4398 = vmatmul.mubr.msk.bf16.vlgmr.msra.gmra.mrb[48].mxu0 %vm2197_vm1, %v6647_v48  ;;  %4399 = vmatmul.mubr.msk.bf16.vlgmr.msra.gmra.mrb[48].mxu1 %vm2197_vm1, %v6647_v48 }
 0x23a   :  { %2612 = vmatpush1.bf16.msra.mxu0 %v1849_v25  ;;  %2653 = vmatpush1.bf16.msra.mxu1 %v1851_v11  ;;  %v1891_v25 = vpack.c.bf16 %v1827_v23, %v1795_v22  ;;  %v30_v11 = vld [vmem:[%s7983_s4] sm:$0x77]  ;;  %v7135_v23 = vld [vmem:[%s7983_s4 + $0x48] sm:$0x77]  ;;  %v7165_v45 = vrot.slane %v3557_v14, %v6608_v26 }
 0x23b   :  { %2613 = vmatprep.subr.bf16.mxu0 %v1882_v32  ;;  %2654 = vmatprep.subr.bf16.mxu1 %v1884_v33  ;;  %v1920_v32 = vrot.slane %v31_v17, %v6481_v29  ;;  %v1916_v33 = vrot.slane %v30_v11, %v6996_v30  ;;  %v3533_v0 = vrot.slane %v30_v11, %v6608_v26 }
 0x23c   :  { %2643 = vmatprep.mubr.bf16.mxu0 %v4839_v16  ;;  %2684 = vmatprep.mubr.bf16.mxu1 %v4839_v16  ;;  %v3537_v54 = vrot.slane %v30_v11, %v7024_v39  ;;  %8007 = vst [vmem:[#allocation9_spill] sm:$0xff] %v7135_v23 }
 0x23d   :  { %v7021_v37 = vrot.slane %v1920_v32, %v6481_v29 }
 0x23e   :  { %2614 = vmatpush1.bf16.msra.mxu0 %v1881_v31  ;;  %2655 = vmatpush1.bf16.msra.mxu1 %v1883_v35  ;;  %v7029_v31 = vld [vmem:[%s7983_s4 + $0x28] sm:$0x77]  ;;  %v7032_v35 = vrot.slane %v1916_v33, %v6481_v29  ;;  %v7109_v9 = vrot.slane %v3537_v54, %v6608_v26 }
 0x23f   :  { %2693 = vmatprep.subr.bf16.mxu0 %v1854_v41  ;;  %2734 = vmatprep.subr.bf16.mxu1 %v1856_v42  ;;  %v1936_v41 = vrot.slane %v7010_v28, %v6481_v29  ;;  %v7042_v42 = vrot.slane %v1924_v34, %v6481_v29  ;;  %v1952_v38 = vrot.slane %v7029_v31, %v6481_v29 }
 0x240   :  { %v1956_v43 = vrot.slane %v7029_v31, %v6996_v30  ;;  %v1976_v34 = vrot.slane %v38_v19, %v6481_v29 }
 0x241   :  { %4400 = vmatmul.mubr.msk.bf16.vlgmr.msra.gmra.mrb[52].mxu0 %vm2197_vm1, %v6647_v48  ;;  %4401 = vmatmul.mubr.msk.bf16.vlgmr.msra.gmra.mrb[52].mxu1 %vm2197_vm1, %v6647_v48  ;;  %v7067_v57 = vrot.slane %v1936_v41, %v6481_v29  ;;  %v7088_v4 = vrot.slane %v1952_v38, %v6481_v29  ;;  %v3565_v41 = vrot.slane %v7015_v52, %v6608_v26 }
 0x242   :  { %2694 = vmatpush1.bf16.msra.mxu0 %v1853_v50  ;;  %2735 = vmatpush1.bf16.msra.mxu1 %v1855_v51  ;;  %v3853_v50 = vrot.slane %v30_v11, %v6611_v27  ;;  %v3541_v51 = vrot.slane %v31_v17, %v6608_v26 }
 0x243   :  { %2695 = vmatprep.subr.bf16.mxu0 %v1886_v46  ;;  %2736 = vmatprep.subr.bf16.mxu1 %v1888_v55  ;;  %v3857_v46 = vrot.slane %v30_v11, %v7035_v40  ;;  %v3545_v55 = vrot.slane %v31_v17, %v7024_v39  ;;  %v3561_v17 = vrot.slane %v7010_v28, %v7024_v39 }
 0x244   :  { %2725 = vmatprep.mubr.bf16.mxu0 %v4839_v16  ;;  %2766 = vmatprep.mubr.bf16.mxu1 %v4839_v16  ;;  %v7100_v7 = vrot.slane %v3853_v50, %v6611_v27  ;;  %v7103_v8 = vrot.slane %v3541_v51, %v6608_v26 }
 0x245   :  { %v7112_v10 = vrot.slane %v3857_v46, %v6611_v27  ;;  %v7115_v12 = vrot.slane %v3545_v55, %v6608_v26  ;;  %v7182_v50 = vrot.slane %v3561_v17, %v6608_v26  ;;  %v7194_v46 = vrot.slane %v1976_v34, %v6481_v29 }
 0x246   :  { %2696 = vmatpush1.bf16.msra.mxu0 %v1885_v2  ;;  %2737 = vmatpush1.bf16.msra.mxu1 %v1887_v3  ;;  %v7082_v2 = vld [vmem:[%s7983_s4 + $0x30] sm:$0x77]  ;;  %v7085_v3 = vrot.slane %v3533_v0, %v6608_v26  ;;  %v3893_v17 = vrot.slane %v7029_v31, %v6611_v27 }
 0x247   :  { %2775 = vmatprep.subr.bf16.mxu0 %v1858_v5  ;;  %2816 = vmatprep.subr.bf16.mxu1 %v1860_v6  ;;  %8006 = vst [vmem:[#allocation8_spill] sm:$0xff] %v7082_v2  ;;  %v7094_v5 = vrot.slane %v1956_v43, %v6481_v29  ;;  %v37_v6 = vld [vmem:[%s7983_s4 + $0x38] sm:$0x77]  ;;  %v1964_v32 = vrot.slane %v7082_v2, %v6996_v30  ;;  %8010 = vst [vmem:[#allocation12_spill] sm:$0xff] %v7194_v46 }
 0x248   :  { %v1968_v22 = vrot.slane %v37_v6, %v6481_v29  ;;  %v1972_v33 = vrot.slane %v37_v6, %v6996_v30  ;;  %v7197_v6 = vrot.slane %v3565_v41, %v6608_v26 }
 0x249   :  { %4402 = vmatmul.mubr.msk.bf16.vlgmr.msra.gmra.mrb[56].mxu0 %vm2197_vm1, %v6647_v48  ;;  %4403 = vmatmul.mubr.msk.bf16.vlgmr.msra.gmra.mrb[56].mxu1 %vm2197_vm1, %v6647_v48  ;;  %v7188_v53 = vrot.slane %v1964_v32, %v6481_v29 }
 0x24a   :  { %2776 = vmatpush1.bf16.msra.mxu0 %v1857_v15  ;;  %2817 = vmatpush1.bf16.msra.mxu1 %v1859_v18  ;;  %v1960_v18 = vrot.slane %v7082_v2, %v6481_v29  ;;  %v7170_v0 = vrot.slane %v1968_v22, %v6481_v29  ;;  %v7191_v54 = vrot.slane %v1972_v33, %v6481_v29 }
 0x24b   :  { %2777 = vmatprep.subr.bf16.mxu0 %v1890_v20  ;;  %2818 = vmatprep.subr.bf16.mxu1 %v1892_v21  ;;  %v7125_v20 = vrot.slane %v3865_v58, %v6611_v27  ;;  %8008 = vst [vmem:[#allocation10_spill] sm:$0xff] %v7188_v53  ;;  %8011 = vst [vmem:[#allocation13_spill] sm:$0xff] %v7197_v6  ;;  %v3889_v33 = vrot.slane %v7015_v52, %v7035_v40 }
 0x24c   :  { %2807 = vmatprep.mubr.bf16.mxu0 %v4839_v16  ;;  %2848 = vmatprep.mubr.bf16.mxu1 %v4839_v16  ;;  %v1912_v16 = vrot.slane %v30_v11, %v6481_v29  ;;  %8009 = vst [vmem:[#allocation11_spill] sm:$0xff] %v7191_v54 }
 0x24d   :  { %v7251_v2 = vrot.slane %v3889_v33, %v6611_v27 }
 0x24e   :  { %2778 = vmatpush1.bf16.msra.mxu0 %v1889_v24  ;;  %2819 = vmatpush1.bf16.msra.mxu1 %v1891_v25  ;;  %v7018_v36 = vrot.slane %v1912_v16, %v6481_v29  ;;  %v3877_v24 = vrot.slane %v7010_v28, %v6611_v27  ;;  %v3881_v16 = vrot.slane %v7010_v28, %v7035_v40 }
 0x24f   :  { %8018 = vst [vmem:[#allocation20_spill] sm:$0xff] %v7251_v2 }
 0x250   :  { %v7173_v38 = vrot.slane %v3877_v24, %v6611_v27  ;;  %v7185_v51 = vrot.slane %v3881_v16, %v6611_v27 }
 0x251   :  { %4404 = vmatmul.mubr.msk.bf16.vlgmr.msra.gmra.mrb[60].mxu0 %vm2197_vm1, %v6647_v48  ;;  %4405 = vmatmul.mubr.msk.bf16.vlgmr.msra.gmra.mrb[60].mxu1 %vm2197_vm1, %v6647_v48  ;;  %v7005_v48 = vld [vmem:[%s7983_s4 + $0x10] sm:$0x77] }
 0x252   :  { %v1928_v60 = vrot.slane %v7005_v48, %v6481_v29  ;;  %v1932_v44 = vrot.slane %v7005_v48, %v6996_v30  ;;  %v3549_v15 = vrot.slane %v7005_v48, %v6608_v26  ;;  %v3869_v21 = vrot.slane %v7005_v48, %v6611_v27 }
 0x253   :  { %v3553_v25 = vrot.slane %v7005_v48, %v7024_v39  ;;  %v3873_v11 = vrot.slane %v7005_v48, %v7035_v40  ;;  %v7157_v48 = vrot.slane %v1960_v18, %v6481_v29 }
 0x254   :  { %v7064_v56 = vrot.slane %v1928_v60, %v6481_v29  ;;  %v7071_v62 = vrot.slane %v1932_v44, %v6481_v29  ;;  %v7152_v60 = vrot.slane %v3549_v15, %v6608_v26  ;;  %v1984_v44 = vrot.slane %v7135_v23, %v6481_v29 }
 0x255   :  { %v7162_v28 = vrot.slane %v3869_v21, %v6611_v27  ;;  %v7176_v49 = vrot.slane %v3553_v25, %v6608_v26  ;;  %v7179_v43 = vrot.slane %v3873_v11, %v6611_v27  ;;  %v3573_v15 = vrot.slane %v7029_v31, %v6608_v26 }
 0x256   :  { %v7202_v18 = vrot.slane %v1984_v44, %v6481_v29  ;;  %v1980_v21 = vrot.slane %v38_v19, %v6996_v30  ;;  %v7212_v11 = vrot.slane %v3885_v47, %v6611_v27  ;;  %v3897_v47 = vrot.slane %v7029_v31, %v7035_v40 }
 0x258   :  { %8012 = vst [vmem:[#allocation14_spill] sm:$0xff] %v7202_v18  ;;  %8013 = vst [vmem:[#allocation15_spill] sm:$0xff] %v7212_v11 }
 0x2ec   :  { %v2235_v55 = vpop.f32.mrb[32].mxu0  ;;  %v2276_v58 = vpop.f32.mrb[32].mxu1 }
 0x2ed   :  { %v7206_v14 = vadd.f32 %v2235_v55, %v7018_v36  ;;  %v7209_v22 = vadd.f32 %v2276_v58, %v7021_v37  ;;  %v2237_v24 = vpop.f32.mrb[33].mxu0  ;;  %v2278_v25 = vpop.f32.mrb[33].mxu1  ;;  %v3569_v37 = vrot.slane %v7015_v52, %v7024_v39 }
 0x2ee   :  { %v7217_v16 = vadd.f32 %v2237_v24, %v7032_v35  ;;  %v7220_v32 = vadd.f32 %v2278_v25, %v7042_v42  ;;  %v2239_v19 = vpop.f32.mrb[34].mxu0  ;;  %v2280_v36 = vpop.f32.mrb[34].mxu1  ;;  %v3577_v42 = vrot.slane %v7029_v31, %v7024_v39  ;;  %v7245_v31 = vrot.slane %v3893_v17, %v6611_v27 }
 0x2ef   :  { %v2858_v34 = vsel %vm2857_vm2, %v7206_v14, 0.0  ;;  %v2872_v41 = vsel %vm2857_vm2, %v7209_v22, 0.0  ;;  %v2240_v44 = vpop.f32.mrb[35].mxu0  ;;  %v2281_v35 = vpop.f32.mrb[35].mxu1  ;;  %v7239_v36 = vrot.slane %v3573_v15, %v6608_v26  ;;  %v7248_v40 = vrot.slane %v3569_v37, %v6608_v26 }
 0x2f0   :  { %v2859_v55 = vrot.slane %v2858_v34, 4  ;;  %v2873_v58 = vrot.slane %v2872_v41, 4  ;;  %v2865_v24 = vsel %vm2857_vm2, %v7217_v16, 0.0  ;;  %v2879_v52 = vsel %vm2857_vm2, %v7220_v32, 0.0  ;;  %8016 = vst [vmem:[#allocation18_spill] sm:$0xff] %v7245_v31 }
 0x2f1   :  { %v2866_v25 = vrot.slane %v2865_v24, 4  ;;  %v2880_v19 = vrot.slane %v2879_v52, 4  ;;  %8014 = vst [vmem:[#allocation16_spill] sm:$0xff] %v7239_v36  ;;  %v7242_v44 = vrot.slane %v1980_v21, %v6481_v29  ;;  %8017 = vst [vmem:[#allocation19_spill] sm:$0xff] %v7248_v40  ;;  %v7254_v18 = vrot.slane %v3577_v42, %v6608_v26 }
 0x2f2   :  { %v2860_v35 = vadd.f32 %v2859_v55, %v2858_v34  ;;  %v2874_v39 = vadd.f32 %v2873_v58, %v2872_v41  ;;  %v7257_v34 = vrot.slane %v3897_v47, %v6611_v27 }
 0x2f3   :  { %8015 = vst [vmem:[#allocation17_spill] sm:$0xff] %v7242_v44  ;;  %v2867_v11 = vadd.f32 %v2866_v25, %v2865_v24  ;;  %v2881_v6 = vadd.f32 %v2880_v19, %v2879_v52  ;;  %8019 = vst [vmem:[#allocation21_spill] sm:$0xff] %v7254_v18 }
 0x2f4   :  { %v2861_v15 = vrot.slane %v2860_v35, 2  ;;  %v2875_v36 = vrot.slane %v2874_v39, 2  ;;  %v2317_v21 = vpop.f32.mrb[36].mxu0  ;;  %v2358_v44 = vpop.f32.mrb[36].mxu1  ;;  %8020 = vst [vmem:[#allocation22_spill] sm:$0xff] %v7257_v34 }
 0x2f5   :  { %v2868_v37 = vrot.slane %v2867_v11, 2  ;;  %v2882_v41 = vrot.slane %v2881_v6, 2  ;;  %v7262_v55 = vadd.f32 %v2317_v21, %v7064_v56  ;;  %v7265_v33 = vadd.f32 %v2358_v44, %v7067_v57  ;;  %v2319_v42 = vpop.f32.mrb[37].mxu0  ;;  %v2360_v58 = vpop.f32.mrb[37].mxu1 }
 0x2f6   :  { %v2862_v24 = vadd.f32 %v2861_v15, %v2860_v35  ;;  %v2876_v52 = vadd.f32 %v2875_v36, %v2874_v39  ;;  %v7268_v25 = vadd.f32 %v2319_v42, %v7071_v62  ;;  %v7271_v47 = vadd.f32 %v2360_v58, %v7074_v61  ;;  %v2321_v19 = vpop.f32.mrb[38].mxu0  ;;  %v2362_v17 = vpop.f32.mrb[38].mxu1 }
 0x2f7   :  { %v2869_v34 = vadd.f32 %v2868_v37, %v2867_v11  ;;  %v2883_v18 = vadd.f32 %v2882_v41, %v2881_v6  ;;  %v2886_v56 = vsel %vm2857_vm2, %v7262_v55, 0.0  ;;  %v2900_v57 = vsel %vm2857_vm2, %v7265_v33, 0.0  ;;  %v2322_v44 = vpop.f32.mrb[39].mxu0  ;;  %v2363_v21 = vpop.f32.mrb[39].mxu1 }
 0x2f8   :  { %v2863_v35 = vrot.slane %v2862_v24, 1  ;;  %v2877_v39 = vrot.slane %v2876_v52, 1  ;;  %v2887_v36 = vrot.slane %v2886_v56, 4  ;;  %v2901_v62 = vrot.slane %v2900_v57, 4 }
 0x2f9   :  { %v2870_v15 = vrot.slane %v2869_v34, 1  ;;  %v2884_v42 = vrot.slane %v2883_v18, 1  ;;  %v2893_v61 = vsel %vm2857_vm2, %v7268_v25, 0.0  ;;  %v2907_v6 = vsel %vm2857_vm2, %v7271_v47, 0.0 }
 0x2fa   :  { %v2864_v11 = vadd.f32 %v2863_v35, %v2862_v24  ;;  %v2878_v17 = vadd.f32 %v2877_v39, %v2876_v52  ;;  %v2888_v37 = vadd.f32 %v2887_v36, %v2886_v56  ;;  %v2902_v41 = vadd.f32 %v2901_v62, %v2900_v57 }
 0x2fb   :  { %v2871_v58 = vadd.f32 %v2870_v15, %v2869_v34  ;;  %v2885_v19 = vadd.f32 %v2884_v42, %v2883_v18  ;;  %v2894_v44 = vrot.slane %v2893_v61, 4  ;;  %v2908_v21 = vrot.slane %v2907_v6, 4 }
 0x2fc   :  { %v3082_v2 = vmul.f32 0.5, %v2864_v11  ;;  %v3084_v40 = vmul.f32 0.5, %v2878_v17  ;;  %v2889_v31 = vrot.slane %v2888_v37, 2  ;;  %v2903_v27 = vrot.slane %v2902_v41, 2  ;;  %v7281_v26 = vpop.f32.mrb[40].mxu0  ;;  %v7283_v30 = vpop.f32.mrb[40].mxu1 }
 0x2fd   :  { %v3083_v23 = vmul.f32 0.5, %v2871_v58  ;;  %v3085_v29 = vmul.f32 0.5, %v2885_v19  ;;  %v2895_v46 = vadd.f32 %v2894_v44, %v2893_v61  ;;  %v2909_v54 = vadd.f32 %v2908_v21, %v2907_v6  ;;  %v7285_v24 = vpop.f32.mrb[41].mxu0  ;;  %v7287_v52 = vpop.f32.mrb[41].mxu1 }
 0x2fe   :  { %v7290_v18 = vsub.f32 %v7206_v14, %v3082_v2  ;;  %v7293_v34 = vsub.f32 %v7209_v22, %v3084_v40  ;;  %v2890_v56 = vadd.f32 %v2889_v31, %v2888_v37  ;;  %v2904_v57 = vadd.f32 %v2903_v27, %v2902_v41  ;;  %v2403_v35 = vpop.f32.mrb[42].mxu0  ;;  %v2444_v39 = vpop.f32.mrb[42].mxu1 }
 0x2ff   :  { %v7296_v36 = vsub.f32 %v7217_v16, %v3083_v23  ;;  %v7299_v62 = vsub.f32 %v7220_v32, %v3085_v29  ;;  %v2896_v15 = vrot.slane %v2895_v46, 2  ;;  %v2910_v42 = vrot.slane %v2909_v54, 2  ;;  %v2404_v61 = vpop.f32.mrb[43].mxu0  ;;  %v2445_v6 = vpop.f32.mrb[43].mxu1 }
 0x300   :  { %v3146_v2 = vmul.f32 %v7290_v18, %v7290_v18  ;;  %v3148_v40 = vmul.f32 %v7293_v34, %v7293_v34  ;;  %v2891_v14 = vrot.slane %v2890_v56, 1  ;;  %v2905_v27 = vrot.slane %v2904_v57, 1 }
 0x301   :  { %v3147_v22 = vmul.f32 %v7296_v36, %v7296_v36  ;;  %v3149_v23 = vmul.f32 %v7299_v62, %v7299_v62  ;;  %v2897_v29 = vadd.f32 %v2896_v15, %v2895_v46  ;;  %v2911_v16 = vadd.f32 %v2910_v42, %v2909_v54 }
 0x302   :  { %v3178_v32 = vsel %vm2857_vm2, %v3146_v2, 0.0  ;;  %v3192_v31 = vsel %vm2857_vm2, %v3148_v40, 0.0  ;;  %v2892_v11 = vadd.f32 %v2891_v14, %v2890_v56  ;;  %v2906_v17 = vadd.f32 %v2905_v27, %v2904_v57 }
 0x303   :  { %v3179_v37 = vrot.slane %v3178_v32, 4  ;;  %v3193_v41 = vrot.slane %v3192_v31, 4  ;;  %v3185_v58 = vsel %vm2857_vm2, %v3147_v22, 0.0  ;;  %v3199_v19 = vsel %vm2857_vm2, %v3149_v23, 0.0 }
 0x304   :  { %v3186_v44 = vrot.slane %v3185_v58, 4  ;;  %v3200_v21 = vrot.slane %v3199_v19, 4  ;;  %v3086_v35 = vmul.f32 0.5, %v2892_v11  ;;  %v3088_v39 = vmul.f32 0.5, %v2906_v17  ;;  %v7313_v61 = vpop.f32.mrb[44].mxu0  ;;  %v7315_v46 = vpop.f32.mrb[44].mxu1 }
 0x305   :  { %v3180_v54 = vadd.f32 %v3179_v37, %v3178_v32  ;;  %v3194_v15 = vadd.f32 %v3193_v41, %v3192_v31  ;;  %v2898_v42 = vrot.slane %v2897_v29, 1  ;;  %v2912_v6 = vrot.slane %v2911_v16, 1  ;;  %v7317_v56 = vpop.f32.mrb[45].mxu0  ;;  %v7319_v57 = vpop.f32.mrb[45].mxu1 }
 0x306   :  { %8021 = vst [vmem:[#allocation23_spill] sm:$0xff] %v7317_v56  ;;  %8022 = vst [vmem:[#allocation24_spill] sm:$0xff] %v7319_v57  ;;  %v3187_v2 = vadd.f32 %v3186_v44, %v3185_v58  ;;  %v3201_v40 = vadd.f32 %v3200_v21, %v3199_v19  ;;  %v7322_v14 = vsub.f32 %v7262_v55, %v3086_v35  ;;  %v2485_v22 = vpop.f32.mrb[46].mxu0  ;;  %v2526_v23 = vpop.f32.mrb[46].mxu1 }
 0x307   :  { %v7325_v27 = vsub.f32 %v7265_v33, %v3088_v39  ;;  %v3181_v11 = vrot.slane %v3180_v54, 2  ;;  %v3195_v17 = vrot.slane %v3194_v15, 2  ;;  %v2899_v32 = vadd.f32 %v2898_v42, %v2897_v29  ;;  %v2486_v37 = vpop.f32.mrb[47].mxu0  ;;  %v2527_v41 = vpop.f32.mrb[47].mxu1 }
 0x308   :  { %v2913_v31 = vadd.f32 %v2912_v6, %v2911_v16  ;;  %v3188_v53 = vrot.slane %v3187_v2, 2  ;;  %v3202_v56 = vrot.slane %v3201_v40, 2  ;;  %v3150_v58 = vmul.f32 %v7322_v14, %v7322_v14 }
 0x309   :  { %v3152_v55 = vmul.f32 %v7325_v27, %v7325_v27  ;;  %v3182_v19 = vadd.f32 %v3181_v11, %v3180_v54  ;;  %v3196_v44 = vadd.f32 %v3195_v17, %v3194_v15  ;;  %v3087_v33 = vmul.f32 0.5, %v2899_v32 }
 0x30a   :  { %v3089_v21 = vmul.f32 0.5, %v2913_v31  ;;  %v3189_v35 = vadd.f32 %v3188_v53, %v3187_v2  ;;  %v3203_v39 = vadd.f32 %v3202_v56, %v3201_v40  ;;  %v3206_v22 = vsel %vm2857_vm2, %v3150_v58, 0.0 }
 0x30b   :  { %v3220_v29 = vsel %vm2857_vm2, %v3152_v55, 0.0  ;;  %v3183_v16 = vrot.slane %v3182_v19, 1  ;;  %v3197_v42 = vrot.slane %v3196_v44, 1  ;;  %v3207_v6 = vrot.slane %v3206_v22, 4 }
 0x30c   :  { %v3221_v23 = vrot.slane %v3220_v29, 4  ;;  %v3190_v37 = vrot.slane %v3189_v35, 1  ;;  %v3204_v41 = vrot.slane %v3203_v39, 1  ;;  %v7334_v57 = vsub.f32 %v7268_v25, %v3087_v33  ;;  %v7339_v15 = vpop.f32.mrb[48].mxu0  ;;  %v7341_v53 = vpop.f32.mrb[48].mxu1 }
 0x30d   :  { %v7337_v54 = vsub.f32 %v7271_v47, %v3089_v21  ;;  %8023 = vst [vmem:[#allocation25_spill] sm:$0xff] %v7341_v53  ;;  %v3184_v56 = vadd.f32 %v3183_v16, %v3182_v19  ;;  %v3198_v2 = vadd.f32 %v3197_v42, %v3196_v44  ;;  %v3208_v40 = vadd.f32 %v3207_v6, %v3206_v22  ;;  %v7343_v17 = vpop.f32.mrb[49].mxu0  ;;  %v7345_v32 = vpop.f32.mrb[49].mxu1 }
 0x30e   :  { %v3222_v11 = vadd.f32 %v3221_v23, %v3220_v29  ;;  %8024 = vst [vmem:[#allocation26_spill] sm:$0xff] %v7343_v17  ;;  %8025 = vst [vmem:[#allocation27_spill] sm:$0xff] %v7345_v32  ;;  %v3191_v31 = vadd.f32 %v3190_v37, %v3189_v35  ;;  %v3205_v58 = vadd.f32 %v3204_v41, %v3203_v39  ;;  %v2567_v55 = vpop.f32.mrb[50].mxu0  ;;  %v2608_v33 = vpop.f32.mrb[50].mxu1 }
 0x30f   :  { %v3151_v25 = vmul.f32 %v7334_v57, %v7334_v57  ;;  %v3153_v47 = vmul.f32 %v7337_v54, %v7337_v54  ;;  %v3402_v21 = vmul.f32 0.5, %v3184_v56  ;;  %v3404_v53 = vmul.f32 0.5, %v3198_v2  ;;  %v2568_v22 = vpop.f32.mrb[51].mxu0  ;;  %v2609_v29 = vpop.f32.mrb[51].mxu1 }
 0x310   :  { %v3209_v19 = vrot.slane %v3208_v40, 2  ;;  %v3223_v44 = vrot.slane %v3222_v11, 2  ;;  %v3403_v16 = vmul.f32 0.5, %v3191_v31  ;;  %v3405_v42 = vmul.f32 0.5, %v3205_v58 }
 0x311   :  { %v3213_v6 = vsel %vm2857_vm2, %v3151_v25, 0.0  ;;  %v3227_v35 = vsel %vm2857_vm2, %v3153_v47, 0.0  ;;  %v3434_v39 = vadd.f32 1e-05, %v3402_v21  ;;  %v3436_v23 = vadd.f32 1e-05, %v3404_v53 }
 0x312   :  { %v3210_v37 = vadd.f32 %v3209_v19, %v3208_v40  ;;  %v3224_v41 = vadd.f32 %v3223_v44, %v3222_v11  ;;  %v3435_v32 = vadd.f32 1e-05, %v3403_v16  ;;  %v3437_v17 = vadd.f32 1e-05, %v3405_v42 }
 0x313   :  { %v3214_v55 = vrot.slane %v3213_v6, 4  ;;  %v3228_v33 = vrot.slane %v3227_v35, 4  ;;  %4770 = vrsqrt.f32 %v3434_v39  ;;  %v7355_v22 = vadd.f32 %v7281_v26, %v7077_v1 }
 0x314   :  { %v3211_v56 = vrot.slane %v3210_v37, 1  ;;  %v3225_v2 = vrot.slane %v3224_v41, 1  ;;  %4772 = vrsqrt.f32 %v3436_v23  ;;  %v7359_v25 = vadd.f32 %v7283_v30, %v7088_v4  ;;  %v7361_v53 = vpop.f32.mrb[52].mxu0  ;;  %v7363_v40 = vpop.f32.mrb[52].mxu1 }
 0x315   :  { %v3215_v31 = vadd.f32 %v3214_v55, %v3213_v6  ;;  %v3229_v58 = vadd.f32 %v3228_v33, %v3227_v35  ;;  %4774 = vrsqrt.f32 %v3435_v32  ;;  %v2914_v21 = vsel %vm2857_vm2, %v7355_v22, 0.0  ;;  %v7367_v19 = vpop.f32.mrb[53].mxu0  ;;  %v7369_v26 = vpop.f32.mrb[53].mxu1 }
 0x316   :  { %v3212_v11 = vadd.f32 %v3211_v56, %v3210_v37  ;;  %v3226_v47 = vadd.f32 %v3225_v2, %v3224_v41  ;;  %8026 = vst [vmem:[#allocation28_spill] sm:$0xff] %v7369_v26  ;;  %4776 = vrsqrt.f32 %v3437_v17  ;;  %v2915_v29 = vrot.slane %v2914_v21, 4  ;;  %v2649_v30 = vpop.f32.mrb[54].mxu0  ;;  %v2690_v4 = vpop.f32.mrb[54].mxu1 }
 0x317   :  { %v3216_v1 = vrot.slane %v3215_v31, 2  ;;  %v3230_v44 = vrot.slane %v3229_v58, 2  ;;  %v2928_v32 = vsel %vm2857_vm2, %v7359_v25, 0.0  ;;  %v7375_v6 = vadd.f32 %v7285_v24, %v7091_v59  ;;  %v2650_v35 = vpop.f32.mrb[55].mxu0  ;;  %v2691_v39 = vpop.f32.mrb[55].mxu1 }
 0x318   :  { %v3406_v16 = vmul.f32 0.5, %v3212_v11  ;;  %v3408_v42 = vmul.f32 0.5, %v3226_v47  ;;  %v2916_v41 = vadd.f32 %v2915_v29, %v2914_v21  ;;  %v2929_v17 = vrot.slane %v2928_v32, 4 }
 0x319   :  { %v3217_v23 = vadd.f32 %v3216_v1, %v3215_v31  ;;  %v3231_v37 = vadd.f32 %v3230_v44, %v3229_v58  ;;  %v2921_v56 = vsel %vm2857_vm2, %v7375_v6, 0.0  ;;  %v7381_v2 = vadd.f32 %v7287_v52, %v7094_v5 }
 0x31a   :  { %v3438_v55 = vadd.f32 1e-05, %v3406_v16  ;;  %v3440_v33 = vadd.f32 1e-05, %v3408_v42  ;;  %v2917_v30 = vrot.slane %v2916_v41, 2  ;;  %v2930_v59 = vadd.f32 %v2929_v17, %v2928_v32 }
 0x31b   :  { %v3218_v11 = vrot.slane %v3217_v23, 1  ;;  %v3232_v47 = vrot.slane %v3231_v37, 1  ;;  %v2922_v24 = vrot.slane %v2921_v56, 4  ;;  %v2935_v31 = vsel %vm2857_vm2, %v7381_v2, 0.0 }
 0x31c   :  { %4778 = vrsqrt.f32 %v3438_v55  ;;  %v7387_v58 = vadd.f32 %v7313_v61, %v7157_v48  ;;  %v2918_v44 = vadd.f32 %v2917_v30, %v2916_v41  ;;  %v7389_v29 = vpop.f32.mrb[56].mxu0  ;;  %v7391_v5 = vpop.f32.mrb[56].mxu1  ;;  %v2931_v4 = vrot.slane %v2930_v59, 2 }
 0x31d   :  { %4780 = vrsqrt.f32 %v3440_v33  ;;  %v3219_v21 = vadd.f32 %v3218_v11, %v3217_v23  ;;  %v3233_v1 = vadd.f32 %v3232_v47, %v3231_v37  ;;  %8027 = vst [vmem:[#allocation29_spill] sm:$0xff] %v7389_v29  ;;  %8028 = vst [vmem:[#allocation30_spill] sm:$0xff] %v7391_v5  ;;  %v4771_v52 = vpop.eup %4770  ;;  %v2923_v16 = vadd.f32 %v2922_v24, %v2921_v56  ;;  %v7397_v35 = vpop.f32.mrb[57].mxu0 }
 0x31e   :  { %v2936_v42 = vrot.slane %v2935_v31, 4  ;;  %v7395_v32 = vsel %vm2857_vm2, %v7387_v58, 0.0  ;;  %8029 = vst [vmem:[#allocation31_spill] sm:$0xff] %v7397_v35  ;;  %v7399_v48 = vpop.f32.mrb[57].mxu1  ;;  %v4773_v61 = vpop.eup %4772  ;;  %v3498_v39 = vmul.f32 %v4771_v52, %v7290_v18  ;;  %v2919_v41 = vrot.slane %v2918_v44, 1 }
 0x31f   :  { %8030 = vst [vmem:[#allocation32_spill] sm:$0xff] %v7399_v48  ;;  %v3407_v23 = vmul.f32 0.5, %v3219_v21  ;;  %v3409_v37 = vmul.f32 0.5, %v3233_v1  ;;  %v2731_v17 = vpop.f32.mrb[58].mxu0  ;;  %v2772_v55 = vpop.f32.mrb[58].mxu1  ;;  %v3500_v56 = vmul.f32 %v4773_v61, %v7293_v34  ;;  %v2932_v11 = vadd.f32 %v2931_v4, %v2930_v59 }
 0x320   :  { %v4775_v33 = vpop.eup %4774  ;;  %v2924_v47 = vrot.slane %v2923_v16, 2  ;;  %v2937_v30 = vadd.f32 %v2936_v42, %v2935_v31  ;;  %v2732_v24 = vpop.f32.mrb[59].mxu0  ;;  %v3818_v35 = vmul.f32 %v7085_v3, %v3498_v39  ;;  %v2920_v52 = vadd.f32 %v2919_v41, %v2918_v44 }
 0x321   :  { %v2773_v5 = vpop.f32.mrb[59].mxu1  ;;  %v4777_v29 = vpop.eup %4776  ;;  %v3499_v48 = vmul.f32 %v4775_v33, %v7296_v36  ;;  %v3439_v26 = vadd.f32 1e-05, %v3407_v23  ;;  %v3441_v18 = vadd.f32 1e-05, %v3409_v37  ;;  %v3820_v21 = vmul.f32 %v7103_v8, %v3500_v56 }
 0x322   :  { %v3501_v1 = vmul.f32 %v4777_v29, %v7299_v62  ;;  %v2933_v17 = vrot.slane %v2932_v11, 1  ;;  %v4138_v34 = vadd.f32 %v7100_v7, %v3818_v35  ;;  %v2925_v31 = vadd.f32 %v2924_v47, %v2923_v16 }
 0x323   :  { %v3819_v59 = vmul.f32 %v7109_v9, %v3499_v48  ;;  %4782 = vrsqrt.f32 %v3439_v26  ;;  %v4140_v5 = vadd.f32 %v7106_v63, %v3820_v21  ;;  %v3090_v36 = vmul.f32 0.5, %v2920_v52 }
 0x324   :  { %v3821_v3 = vmul.f32 %v7115_v12, %v3501_v1  ;;  %4784 = vrsqrt.f32 %v3441_v18  ;;  %v4170_v4 = vmax.f32 %v4138_v34, 0.0  ;;  %v2934_v8 = vadd.f32 %v2933_v17, %v2932_v11  ;;  %v7416_v26 = vpop.f32.mrb[60].mxu0  ;;  %v7428_v47 = vpop.f32.mrb[60].mxu1 }
 0x325   :  { %v4139_v42 = vadd.f32 %v7112_v10, %v3819_v59  ;;  %v2926_v61 = vrot.slane %v2925_v31, 1  ;;  %v4172_v44 = vmax.f32 %v4140_v5, 0.0  ;;  %v7414_v7 = vsub.f32 %v7355_v22, %v3090_v36 }
 0x326   :  { %v4779_v62 = vpop.eup %4778  ;;  %v4141_v29 = vadd.f32 %v7125_v20, %v3821_v3  ;;  %v2938_v9 = vrot.slane %v2937_v30, 2  ;;  %v3092_v35 = vmul.f32 0.5, %v2934_v8  ;;  %v2943_v59 = vrot.slane %v7395_v32, 4 }
 0x327   :  { %v4781_v63 = vpop.eup %4780  ;;  %v4171_v16 = vmax.f32 %v4139_v42, 0.0  ;;  %v3502_v12 = vmul.f32 %v4779_v62, %v7322_v14  ;;  %v2927_v48 = vadd.f32 %v2926_v61, %v2925_v31  ;;  %v3154_v23 = vmul.f32 %v7414_v7, %v7414_v7 }
 0x328   :  { %v4173_v39 = vmax.f32 %v4141_v29, 0.0  ;;  %v3504_v10 = vmul.f32 %v4781_v63, %v7325_v27  ;;  %v2939_v37 = vadd.f32 %v2938_v9, %v2937_v30  ;;  %v7424_v41 = vsub.f32 %v7359_v25, %v3092_v35 }
 0x329   :  { %v4234_v20 = vcombine.low %v4170_v4, %v4171_v16  ;;  %v3822_v22 = vmul.f32 %v7152_v60, %v3502_v12  ;;  %v3091_v55 = vmul.f32 0.5, %v2927_v48  ;;  %v3234_v14 = vsel %vm2857_vm2, %v3154_v23, 0.0 }
 0x32a   :  { %v4235_v33 = vcombine.low %v4172_v44, %v4173_v39  ;;  %v3824_v56 = vmul.f32 %v7165_v45, %v3504_v10  ;;  %v2940_v11 = vrot.slane %v2939_v37, 1  ;;  %v3235_v30 = vrot.slane %v3234_v14, 4 }
 0x32b   :  { %v4242_v27 = vrot.slane %v4234_v20, %v5023_v13  ;;  %v4142_v24 = vadd.f32 %v7162_v28, %v3822_v22  ;;  %v3156_v60 = vmul.f32 %v7424_v41, %v7424_v41  ;;  %v7437_v21 = vsub.f32 %v7375_v6, %v3091_v55 }
 0x32c   :  { %v4249_v25 = vrot.slane %v4235_v33, %v5023_v13  ;;  %v4144_v18 = vadd.f32 %v7173_v38, %v3824_v56  ;;  %v2941_v45 = vadd.f32 %v2940_v11, %v2939_v37  ;;  %v3236_v17 = vadd.f32 %v3235_v30, %v3234_v14 }
 0x32d   :  { %v4783_v1 = vpop.eup %4782  ;;  %v4174_v52 = vmax.f32 %v4142_v24, 0.0  ;;  %v3248_v34 = vsel %vm2857_vm2, %v3156_v60, 0.0  ;;  %v3155_v6 = vmul.f32 %v7437_v21, %v7437_v21  ;;  %v2944_v62 = vadd.f32 %v2943_v59, %v7395_v32 }
 0x32e   :  { %v4785_v28 = vpop.eup %4784  ;;  %v4250_v31 = vcombine.low %v4242_v27, %v4249_v25  ;;  %v4176_v5 = vmax.f32 %v4144_v18, 0.0  ;;  %v3503_v3 = vmul.f32 %v4783_v1, %v7334_v57  ;;  %v3249_v36 = vrot.slane %v3248_v34, 4 }
 0x32f   :  { %v3505_v4 = vmul.f32 %v4785_v28, %v7337_v54  ;;  %v3237_v38 = vrot.slane %v3236_v17, 2  ;;  %v3093_v42 = vmul.f32 0.5, %v2941_v45  ;;  %v7452_v57 = vadd.f32 %v7315_v46, %v7170_v0  ;;  %v7465_v46 = vpop.f32.mrb[61].mxu0  ;;  %v7470_v28 = vpop.f32.mrb[61].mxu1 }
 0x330   :  { %4378 = vst [vmem:[%s7984_s5] sm:$0xff] %v4250_v31  ;;  %v3823_v8 = vmul.f32 %v7176_v49, %v3503_v3  ;;  %v3250_v61 = vadd.f32 %v3249_v36, %v3248_v34  ;;  %v3241_v29 = vsel %vm2857_vm2, %v3155_v6, 0.0  ;;  %v2945_v49 = vrot.slane %v2944_v62, 2  ;;  %v2813_v23 = vpop.f32.mrb[62].mxu0  ;;  %v8031_v36 = vld [vmem:[#allocation10_spill] sm:$0xff] }
 0x331   :  { %v3825_v54 = vmul.f32 %v7182_v50, %v3505_v4  ;;  %v3238_v44 = vadd.f32 %v3237_v38, %v3236_v17  ;;  %v7457_v9 = vsub.f32 %v7381_v2, %v3093_v42  ;;  %v3242_v12 = vrot.slane %v3241_v29, 4  ;;  %v2854_v38 = vpop.f32.mrb[62].mxu1 }
 0x332   :  { %v4143_v63 = vadd.f32 %v7179_v43, %v3823_v8  ;;  %v3251_v16 = vrot.slane %v3250_v61, 2  ;;  %v2956_v50 = vsel %vm2857_vm2, %v7452_v57, 0.0  ;;  %v2946_v10 = vadd.f32 %v2945_v49, %v2944_v62  ;;  %v8033_v49 = vld [vmem:[#allocation11_spill] sm:$0xff]  ;;  %v8043_v38 = vld [vmem:[#allocation8_spill] sm:$0xff] }
 0x333   :  { %v4145_v35 = vadd.f32 %v7185_v51, %v3825_v54  ;;  %v3239_v32 = vrot.slane %v3238_v44, 1  ;;  %v3157_v0 = vmul.f32 %v7457_v9, %v7457_v9  ;;  %v3243_v2 = vadd.f32 %v3242_v12, %v3241_v29  ;;  %v2814_v51 = vpop.f32.mrb[63].mxu0 }
 0x334   :  { %v4175_v48 = vmax.f32 %v4143_v63, 0.0  ;;  %v3252_v39 = vadd.f32 %v3251_v16, %v3250_v61  ;;  %v2957_v22 = vrot.slane %v2956_v50, 4  ;;  %v2947_v24 = vrot.slane %v2946_v10, 1  ;;  %v2855_v61 = vpop.f32.mrb[63].mxu1 }
 0x335   :  { %v4177_v43 = vmax.f32 %v4145_v35, 0.0  ;;  %v3240_v37 = vadd.f32 %v3239_v32, %v3238_v44  ;;  %v3255_v20 = vsel %vm2857_vm2, %v3157_v0, 0.0  ;;  %v3244_v56 = vrot.slane %v3243_v2, 2  ;;  %v8034_v35 = vld [vmem:[#allocation24_spill] sm:$0xff] }
 0x336   :  { %v4251_v55 = vcombine.low %v4174_v52, %v4175_v48  ;;  %v3253_v33 = vrot.slane %v3252_v39, 1  ;;  %v3256_v14 = vrot.slane %v3255_v20, 4  ;;  %v2958_v30 = vadd.f32 %v2957_v22, %v2956_v50  ;;  %v8035_v48 = vld [vmem:[#allocation12_spill] sm:$0xff] }
 0x337   :  { %v4252_v11 = vcombine.low %v4176_v5, %v4177_v43  ;;  %v3410_v27 = vmul.f32 0.5, %v3240_v37  ;;  %v3245_v18 = vadd.f32 %v3244_v56, %v3243_v2  ;;  %v2948_v34 = vadd.f32 %v2947_v24, %v2946_v10  ;;  %v8032_v5 = vld [vmem:[#allocation23_spill] sm:$0xff] }
 0x338   :  { %v4259_v60 = vrot.slane %v4251_v55, %v5023_v13  ;;  %v3254_v25 = vadd.f32 %v3253_v33, %v3252_v39  ;;  %v3257_v45 = vadd.f32 %v3256_v14, %v3255_v20  ;;  %v2959_v59 = vrot.slane %v2958_v30, 2 }
 0x339   :  { %v4266_v1 = vrot.slane %v4252_v11, %v5023_v13  ;;  %v3442_v17 = vadd.f32 1e-05, %v3410_v27  ;;  %v3246_v31 = vrot.slane %v3245_v18, 1  ;;  %v7474_v4 = vadd.f32 %v8032_v5, %v8031_v36  ;;  %v8042_v5 = vld [vmem:[#allocation3_spill] sm:$0xff] }
 0x33a   :  { %v3412_v52 = vmul.f32 0.5, %v3254_v25  ;;  %v3258_v3 = vrot.slane %v3257_v45, 2  ;;  %v3094_v42 = vmul.f32 0.5, %v2948_v34  ;;  %v2960_v8 = vadd.f32 %v2959_v59, %v2958_v30  ;;  %v8037_v25 = vld [vmem:[#allocation9_spill] sm:$0xff] }
 0x33b   :  { %v4267_v6 = vcombine.low %v4259_v60, %v4266_v1  ;;  %4786 = vrsqrt.f32 %v3442_v17  ;;  %v3247_v54 = vadd.f32 %v3246_v31, %v3245_v18  ;;  %v2949_v29 = vsel %vm2857_vm2, %v7474_v4, 0.0  ;;  %v8036_v60 = vld [vmem:[#allocation2_spill] sm:$0xff]  ;;  %v8038_v18 = vld [vmem:[#allocation5_spill] sm:$0xff] }
 0x33c   :  { %v3444_v62 = vadd.f32 1e-05, %v3412_v52  ;;  %v3259_v44 = vadd.f32 %v3258_v3, %v3257_v45  ;;  %v7482_v63 = vsub.f32 %v7387_v58, %v3094_v42  ;;  %v2961_v16 = vrot.slane %v2960_v8, 1  ;;  %v8040_v52 = vld [vmem:[#allocation14_spill] sm:$0xff]  ;;  %v8041_v31 = vld [vmem:[#allocation25_spill] sm:$0xff] }
 0x33d   :  { %4379 = vst [vmem:[%s7984_s5 + $0x8] sm:$0xff] %v4267_v6  ;;  %v2950_v12 = vrot.slane %v2949_v29, 4  ;;  %v7486_v32 = vadd.f32 %v8034_v35, %v8033_v49  ;;  %v3411_v0 = vmul.f32 0.5, %v3247_v54  ;;  %v7490_v39 = vadd.f32 %v7339_v15, %v8035_v48  ;;  %v8044_v35 = vld [vmem:[#allocation13_spill] sm:$0xff] }
 0x33e   :  { %4788 = vrsqrt.f32 %v3444_v62  ;;  %v3260_v50 = vrot.slane %v3259_v44, 1  ;;  %v3158_v2 = vmul.f32 %v7482_v63, %v7482_v63  ;;  %v2962_v10 = vadd.f32 %v2961_v16, %v2960_v8 }
 0x33f   :  { %v2951_v23 = vadd.f32 %v2950_v12, %v2949_v29  ;;  %v2963_v58 = vsel %vm2857_vm2, %v7486_v32, 0.0  ;;  %v3443_v43 = vadd.f32 1e-05, %v3411_v0  ;;  %v2970_v22 = vsel %vm2857_vm2, %v7490_v39, 0.0 }
 0x340   :  { %v3261_v37 = vadd.f32 %v3260_v50, %v3259_v44  ;;  %v2964_v20 = vrot.slane %v2963_v58, 4  ;;  %v3262_v51 = vsel %vm2857_vm2, %v3158_v2, 0.0  ;;  %v3096_v55 = vmul.f32 0.5, %v2962_v10 }
 0x341   :  { %v2952_v33 = vrot.slane %v2951_v23, 2  ;;  %v2971_v15 = vrot.slane %v2970_v22, 4  ;;  %4790 = vrsqrt.f32 %v3443_v43  ;;  %v3263_v14 = vrot.slane %v3262_v51, 4  ;;  %v8045_v43 = vld [vmem:[#allocation15_spill] sm:$0xff] }
 0x342   :  { %v3413_v56 = vmul.f32 0.5, %v3261_v37  ;;  %v2965_v11 = vadd.f32 %v2964_v20, %v2963_v58  ;;  %v7500_v27 = vsub.f32 %v7452_v57, %v3096_v55  ;;  %v8039_v45 = vrot.slane %v8037_v25, %v8038_v18  ;;  %v8046_v55 = vld [vmem:[#allocation16_spill] sm:$0xff] }
 0x343   :  { %v2953_v24 = vadd.f32 %v2952_v33, %v2951_v23  ;;  %v2972_v30 = vadd.f32 %v2971_v15, %v2970_v22  ;;  %v3264_v34 = vadd.f32 %v3263_v14, %v3262_v51  ;;  %v7510_v3 = vadd.f32 %v8041_v31, %v8040_v52 }
 0x344   :  { %v7506_v1 = vrot.slane %v8039_v45, %v8036_v60  ;;  %v3445_v17 = vadd.f32 1e-05, %v3413_v56  ;;  %v2966_v59 = vrot.slane %v2965_v11, 2  ;;  %v3581_v57 = vrot.slane %v8043_v38, %v8042_v5 }
 0x345   :  { %v4787_v36 = vpop.eup %4786  ;;  %v3160_v6 = vmul.f32 %v7500_v27, %v7500_v27  ;;  %v2954_v42 = vrot.slane %v2953_v24, 1  ;;  %v2973_v8 = vrot.slane %v2972_v30, 2  ;;  %v3265_v62 = vrot.slane %v3264_v34, 2 }
 0x346   :  { %v3506_v61 = vmul.f32 %v4787_v36, %v7414_v7  ;;  %4792 = vrsqrt.f32 %v3445_v17  ;;  %v2967_v54 = vadd.f32 %v2966_v59, %v2965_v11  ;;  %v2984_v12 = vsel %vm2857_vm2, %v7510_v3, 0.0  ;;  %v8048_v17 = vld [vmem:[#allocation18_spill] sm:$0xff] }
 0x347   :  { %v3276_v44 = vsel %vm2857_vm2, %v3160_v6, 0.0  ;;  %v2955_v29 = vadd.f32 %v2954_v42, %v2953_v24  ;;  %v2974_v16 = vadd.f32 %v2973_v8, %v2972_v30  ;;  %v3266_v50 = vadd.f32 %v3265_v62, %v3264_v34  ;;  %v8047_v30 = vld [vmem:[#allocation4_spill] sm:$0xff] }
 0x348   :  { %v4789_v49 = vpop.eup %4788  ;;  %v3826_v0 = vmul.f32 %v8044_v35, %v3506_v61  ;;  %v3277_v48 = vrot.slane %v3276_v44, 4  ;;  %v2968_v2 = vrot.slane %v2967_v54, 1  ;;  %v2985_v58 = vrot.slane %v2984_v12, 4  ;;  %v8049_v61 = vld [vmem:[#allocation19_spill] sm:$0xff]  ;;  %v8050_v35 = vld [vmem:[#allocation20_spill] sm:$0xff] }
 0x349   :  { %v3508_v10 = vmul.f32 %v4789_v49, %v7424_v41  ;;  %v3095_v23 = vmul.f32 0.5, %v2955_v29  ;;  %v2975_v7 = vrot.slane %v2974_v16, 1  ;;  %v3267_v20 = vrot.slane %v3266_v50, 1 }
 0x34a   :  { %v4146_v37 = vadd.f32 %v8045_v43, %v3826_v0  ;;  %v3278_v22 = vadd.f32 %v3277_v48, %v3276_v44  ;;  %v2969_v51 = vadd.f32 %v2968_v2, %v2967_v54  ;;  %v2986_v14 = vadd.f32 %v2985_v58, %v2984_v12  ;;  %v8051_v58 = vld [vmem:[#allocation21_spill] sm:$0xff] }
 0x34b   :  { %v3828_v33 = vmul.f32 %v8046_v55, %v3508_v10  ;;  %v7525_v15 = vsub.f32 %v7474_v4, %v3095_v23  ;;  %v2976_v56 = vadd.f32 %v2975_v7, %v2974_v16  ;;  %v4791_v11 = vpop.eup %4790  ;;  %v3268_v24 = vadd.f32 %v3267_v20, %v3266_v50 }
 0x34c   :  { %v3901_v41 = vrot.slane %v8043_v38, %v8047_v30  ;;  %v3279_v25 = vrot.slane %v3278_v22, 2  ;;  %v3097_v45 = vmul.f32 0.5, %v2969_v51  ;;  %v3507_v59 = vmul.f32 %v4791_v11, %v7437_v21  ;;  %v7568_v38 = vld [vmem:[%s7983_s4 + $0x50] sm:$0x77] }
 0x34d   :  { %v4148_v34 = vadd.f32 %v8048_v17, %v3828_v33  ;;  %v3159_v52 = vmul.f32 %v7525_v15, %v7525_v15  ;;  %v3098_v31 = vmul.f32 0.5, %v2976_v56  ;;  %v3414_v36 = vmul.f32 0.5, %v3268_v24  ;;  %v8052_v56 = vld [vmem:[#allocation22_spill] sm:$0xff] }
 0x34e   :  { %v3280_v4 = vadd.f32 %v3279_v25, %v3278_v22  ;;  %v7534_v6 = vsub.f32 %v7486_v32, %v3097_v45  ;;  %v2987_v42 = vrot.slane %v2986_v14, 2  ;;  %v4178_v8 = vmax.f32 %v4146_v37, 0.0 }
 0x34f   :  { %v3827_v62 = vmul.f32 %v8049_v61, %v3507_v59  ;;  %v3269_v54 = vsel %vm2857_vm2, %v3159_v52, 0.0  ;;  %v7539_v44 = vsub.f32 %v7490_v39, %v3098_v31  ;;  %v3446_v21 = vadd.f32 1e-05, %v3414_v36  ;;  %v7560_v52 = vld [vmem:[%s7983_s4 + $0x38] sm:$0x77] }
 0x350   :  { %v4793_v29 = vpop.eup %4792  ;;  %v3281_v16 = vrot.slane %v3280_v4, 1  ;;  %v3270_v12 = vrot.slane %v3269_v54, 4  ;;  %v3161_v49 = vmul.f32 %v7534_v6, %v7534_v6  ;;  %v2988_v48 = vadd.f32 %v2987_v42, %v2986_v14 }
 0x351   :  { %v4147_v0 = vadd.f32 %v8050_v35, %v3827_v62  ;;  %v3509_v32 = vmul.f32 %v4793_v29, %v7457_v9  ;;  %v3162_v50 = vmul.f32 %v7539_v44, %v7539_v44  ;;  %v4180_v2 = vmax.f32 %v4148_v34, 0.0  ;;  %v8054_v29 = vld [vmem:[#allocation26_spill] sm:$0xff] }
 0x352   :  { %v3282_v10 = vadd.f32 %v3281_v16, %v3280_v4  ;;  %v3271_v23 = vadd.f32 %v3270_v12, %v3269_v54  ;;  %v3283_v39 = vsel %vm2857_vm2, %v3161_v49, 0.0  ;;  %v2989_v33 = vrot.slane %v2988_v48, 1  ;;  %v8053_v54 = vld [vmem:[#allocation17_spill] sm:$0xff] }
 0x353   :  { %v4179_v7 = vmax.f32 %v4147_v0, 0.0  ;;  %v3829_v43 = vmul.f32 %v8051_v58, %v3509_v32  ;;  %v3284_v37 = vrot.slane %v3283_v39, 4  ;;  %v3290_v20 = vsel %vm2857_vm2, %v3162_v50, 0.0  ;;  %v7585_v0 = vld [vmem:[%s7983_s4 + $0x58] sm:$0x77] }
 0x354   :  { %v3416_v22 = vmul.f32 0.5, %v3282_v10  ;;  %v3272_v51 = vrot.slane %v3271_v23, 2  ;;  %v3291_v55 = vrot.slane %v3290_v20, 4  ;;  %4794 = vrsqrt.f32 %v3446_v21 }
 0x355   :  { %v4268_v9 = vcombine.low %v4178_v8, %v4179_v7  ;;  %v4149_v11 = vadd.f32 %v8052_v56, %v3829_v43  ;;  %v3285_v14 = vadd.f32 %v3284_v37, %v3283_v39  ;;  %v2990_v17 = vadd.f32 %v2989_v33, %v2988_v48 }
 0x356   :  { %v3448_v24 = vadd.f32 1e-05, %v3416_v22  ;;  %v3273_v25 = vadd.f32 %v3272_v51, %v3271_v23  ;;  %v3292_v45 = vadd.f32 %v3291_v55, %v3290_v20  ;;  %v7555_v59 = vrot.slane %v3581_v57, %v8042_v5 }
 0x357   :  { %v4181_v34 = vmax.f32 %v4149_v11, 0.0  ;;  %v3589_v31 = vrot.slane %v7560_v52, %v8042_v5  ;;  %v3286_v36 = vrot.slane %v3285_v14, 2  ;;  %v4276_v4 = vrot.slane %v4268_v9, %v5023_v13 }
 0x358   :  { %4796 = vrsqrt.f32 %v3448_v24  ;;  %v3274_v42 = vrot.slane %v3273_v25, 1  ;;  %v3100_v8 = vmul.f32 0.5, %v2990_v17  ;;  %v3293_v62 = vrot.slane %v3292_v45, 2  ;;  %v8055_v24 = vld [vmem:[#allocation6_spill] sm:$0xff]  ;;  %v8056_v17 = vld [vmem:[#allocation27_spill] sm:$0xff] }
 0x359   :  { %v4269_v57 = vcombine.low %v4180_v2, %v4181_v34  ;;  %v3287_v61 = vadd.f32 %v3286_v36, %v3285_v14  ;;  %v7572_v21 = vadd.f32 %v8054_v29, %v8053_v54  ;;  %v7575_v16 = vrot.slane %v3901_v41, %v8047_v30  ;;  %v4835_v14 = vld [vmem:[%s7983_s4 + $0x30] sm:$0x77] }
 0x35a   :  { %v3909_v12 = vrot.slane %v7560_v52, %v8047_v30  ;;  %v3275_v49 = vadd.f32 %v3274_v42, %v3273_v25  ;;  %v7580_v35 = vsub.f32 %v7510_v3, %v3100_v8  ;;  %v1992_v41 = vrot.slane %v7568_v38, %v8036_v60 }
 0x35b   :  { %v4283_v32 = vrot.slane %v4269_v57, %v5023_v13  ;;  %v3288_v50 = vrot.slane %v3287_v61, 1  ;;  %v2977_v48 = vsel %vm2857_vm2, %v7572_v21, 0.0  ;;  %v3749_v2 = vrot.slane %v3589_v31, %v8042_v5  ;;  %v8057_v57 = vld [vmem:[#allocation7_spill] sm:$0xff] }
 0x35c   :  { %v3415_v10 = vmul.f32 0.5, %v3275_v49  ;;  %v3164_v3 = vmul.f32 %v7580_v35, %v7580_v35  ;;  %v2978_v23 = vrot.slane %v2977_v48, 4  ;;  %v3294_v58 = vadd.f32 %v3293_v62, %v3292_v45 }
 0x35d   :  { %v4284_v39 = vcombine.low %v4276_v4, %v4283_v32  ;;  %v3289_v7 = vadd.f32 %v3288_v50, %v3287_v61  ;;  %v2000_v43 = vrot.slane %v7585_v0, %v8036_v60  ;;  %v4069_v37 = vrot.slane %v3909_v12, %v8047_v30 }
 0x35e   :  { %v3447_v20 = vadd.f32 1e-05, %v3415_v10  ;;  %v3304_v22 = vsel %vm2857_vm2, %v3164_v3, 0.0  ;;  %v2979_v51 = vadd.f32 %v2978_v23, %v2977_v48  ;;  %v4795_v55 = vpop.eup %4794  ;;  %v2152_v56 = vrot.slane %v1992_v41, %v8036_v60 }
 0x35f   :  { %4380 = vst [vmem:[%s7984_s5 + $0x10] sm:$0xff] %v4284_v39  ;;  %v3417_v33 = vmul.f32 0.5, %v3289_v7  ;;  %v3305_v9 = vrot.slane %v3304_v22, 4  ;;  %v1996_v11 = vrot.slane %v7568_v38, %v8038_v18  ;;  %v3585_v25 = vrot.slane %v4835_v14, %v8055_v24 }
 0x360   :  { %4798 = vrsqrt.f32 %v3447_v20  ;;  %v2980_v45 = vrot.slane %v2979_v51, 2  ;;  %v7611_v34 = vadd.f32 %v8056_v17, %v7506_v1  ;;  %v3295_v36 = vrot.slane %v3294_v58, 1 }
 0x361   :  { %v3449_v31 = vadd.f32 1e-05, %v3417_v33  ;;  %v3306_v4 = vadd.f32 %v3305_v9, %v3304_v22  ;;  %v2160_v42 = vrot.slane %v2000_v43, %v8036_v60  ;;  %v3905_v61 = vrot.slane %v4835_v14, %v8057_v57 }
 0x362   :  { %v4797_v8 = vpop.eup %4796  ;;  %v3593_v62 = vrot.slane %v7560_v52, %v8055_v24  ;;  %v2981_v54 = vadd.f32 %v2980_v45, %v2979_v51  ;;  %v2991_v29 = vsel %vm2857_vm2, %v7611_v34, 0.0  ;;  %v3510_v12 = vmul.f32 %v4795_v55, %v7482_v63 }
 0x363   :  { %v3512_v1 = vmul.f32 %v4797_v8, %v7500_v27  ;;  %4800 = vrsqrt.f32 %v3449_v31  ;;  %v3307_v49 = vrot.slane %v3306_v4, 2  ;;  %v3745_v32 = vrot.slane %v3585_v25, %v8042_v5 }
 0x364   :  { %v2982_v50 = vrot.slane %v2981_v54, 1  ;;  %v2992_v48 = vrot.slane %v2991_v29, 4  ;;  %v2156_v41 = vrot.slane %v1996_v11, %v8036_v60  ;;  %v3913_v10 = vrot.slane %v7560_v52, %v8057_v57 }
 0x365   :  { %v3296_v3 = vadd.f32 %v3295_v36, %v3294_v58  ;;  %v3308_v23 = vadd.f32 %v3307_v49, %v3306_v4  ;;  %v7626_v39 = vadd.f32 %v7361_v53, %v2152_v56  ;;  %v4065_v63 = vrot.slane %v3905_v61, %v8047_v30  ;;  %v7649_v4 = vld [vmem:[%s7983_s4 + $0x40] sm:$0x77] }
 0x366   :  { %v3753_v27 = vrot.slane %v3593_v62, %v8042_v5  ;;  %v2983_v7 = vadd.f32 %v2982_v50, %v2981_v54  ;;  %v2993_v43 = vadd.f32 %v2992_v48, %v2991_v29  ;;  %v3830_v20 = vmul.f32 %v7555_v59, %v3510_v12 }
 0x367   :  { %v3832_v22 = vmul.f32 %v3749_v2, %v3512_v1  ;;  %v2998_v51 = vsel %vm2857_vm2, %v7626_v39, 0.0  ;;  %v7634_v55 = vadd.f32 %v7363_v40, %v2160_v42  ;;  %v2004_v53 = vrot.slane %v7585_v0, %v8038_v18 }
 0x368   :  { %v3099_v52 = vmul.f32 0.5, %v2983_v7  ;;  %v2994_v58 = vrot.slane %v2993_v43, 2  ;;  %v2999_v33 = vrot.slane %v2998_v51, 4  ;;  %v4073_v9 = vrot.slane %v3913_v10, %v8047_v30 }
 0x369   :  { %v3418_v56 = vmul.f32 0.5, %v3296_v3  ;;  %v3309_v11 = vrot.slane %v3308_v23, 1  ;;  %v3012_v59 = vsel %vm2857_vm2, %v7634_v55, 0.0  ;;  %v4150_v17 = vadd.f32 %v7575_v16, %v3830_v20 }
 0x36a   :  { %v4799_v2 = vpop.eup %4798  ;;  %v7642_v14 = vsub.f32 %v7572_v21, %v3099_v52  ;;  %v2995_v25 = vadd.f32 %v2994_v58, %v2993_v43  ;;  %v3000_v40 = vadd.f32 %v2999_v33, %v2998_v51  ;;  %v3013_v45 = vrot.slane %v3012_v59, 4 }
 0x36b   :  { %v4152_v31 = vadd.f32 %v4069_v37, %v3832_v22  ;;  %v3511_v36 = vmul.f32 %v4799_v2, %v7525_v15  ;;  %v3597_v42 = vrot.slane %v7649_v4, %v8042_v5  ;;  %v3450_v16 = vadd.f32 1e-05, %v3418_v56 }
 0x36c   :  { %v3163_v21 = vmul.f32 %v7642_v14, %v7642_v14  ;;  %v2996_v8 = vrot.slane %v2995_v25, 1  ;;  %v3001_v61 = vrot.slane %v3000_v40, 2  ;;  %v3014_v62 = vadd.f32 %v3013_v45, %v3012_v59 }
 0x36d   :  { %v4801_v54 = vpop.eup %4800  ;;  %v3831_v29 = vmul.f32 %v3745_v32, %v3511_v36  ;;  %v3917_v15 = vrot.slane %v7649_v4, %v8047_v30  ;;  %v3310_v37 = vadd.f32 %v3309_v11, %v3308_v23  ;;  %v4182_v48 = vmax.f32 %v4150_v17, 0.0 }
 0x36e   :  { %v3513_v12 = vmul.f32 %v4801_v54, %v7534_v6  ;;  %v3297_v1 = vsel %vm2857_vm2, %v3163_v21, 0.0  ;;  %v2997_v49 = vadd.f32 %v2996_v8, %v2995_v25  ;;  %v3002_v50 = vadd.f32 %v3001_v61, %v3000_v40 }
 0x36f   :  { %v4184_v10 = vmax.f32 %v4152_v31, 0.0  ;;  %v4151_v3 = vadd.f32 %v4065_v63, %v3831_v29  ;;  %v3298_v7 = vrot.slane %v3297_v1, 4  ;;  %v3015_v51 = vrot.slane %v3014_v62, 2 }
 0x370   :  { %v3833_v43 = vmul.f32 %v3753_v27, %v3513_v12  ;;  %v3101_v20 = vmul.f32 0.5, %v2997_v49  ;;  %v3003_v22 = vrot.slane %v3002_v50, 1  ;;  %v3420_v52 = vmul.f32 0.5, %v3310_v37 }
 0x371   :  { %v4183_v32 = vmax.f32 %v4151_v3, 0.0  ;;  %v3299_v58 = vadd.f32 %v3298_v7, %v3297_v1  ;;  %v7660_v33 = vadd.f32 %v7367_v19, %v2156_v41  ;;  %v3016_v11 = vadd.f32 %v3015_v51, %v3014_v62  ;;  %v8058_v51 = vld [vmem:[#allocation28_spill] sm:$0xff] }
 0x372   :  { %v4153_v23 = vadd.f32 %v4073_v9, %v3833_v43  ;;  %v7663_v6 = vsub.f32 %v7611_v34, %v3101_v20  ;;  %v3004_v56 = vadd.f32 %v3003_v22, %v3002_v50  ;;  %4802 = vrsqrt.f32 %v3450_v16 }
 0x373   :  { %v4285_v59 = vcombine.low %v4182_v48, %v4183_v32  ;;  %v3300_v63 = vrot.slane %v3299_v58, 2  ;;  %v3005_v27 = vsel %vm2857_vm2, %v7660_v33, 0.0  ;;  %v3017_v45 = vrot.slane %v3016_v11, 1 }
 0x374   :  { %v4185_v2 = vmax.f32 %v4153_v23, 0.0  ;;  %v3165_v25 = vmul.f32 %v7663_v6, %v7663_v6  ;;  %v3102_v40 = vmul.f32 0.5, %v3004_v56  ;;  %v3452_v41 = vadd.f32 1e-05, %v3420_v52 }
 0x375   :  { %v4293_v19 = vrot.slane %v4285_v59, %v5023_v13  ;;  %v3301_v9 = vadd.f32 %v3300_v63, %v3299_v58  ;;  %v3006_v34 = vrot.slane %v3005_v27, 4  ;;  %v3018_v21 = vadd.f32 %v3017_v45, %v3016_v11 }
 0x376   :  { %v4286_v17 = vcombine.low %v4184_v10, %v4185_v2  ;;  %v3311_v31 = vsel %vm2857_vm2, %v3165_v25, 0.0  ;;  %v7672_v36 = vsub.f32 %v7626_v39, %v3102_v40  ;;  %v2164_v54 = vrot.slane %v2004_v53, %v8036_v60 }
 0x377   :  { %v3302_v8 = vrot.slane %v3301_v9, 1  ;;  %v3312_v61 = vrot.slane %v3311_v31, 4  ;;  %v3007_v62 = vadd.f32 %v3006_v34, %v3005_v27  ;;  %v3757_v16 = vrot.slane %v3597_v42, %v8042_v5 }
 0x378   :  { %v4300_v29 = vrot.slane %v4286_v17, %v5023_v13  ;;  %v3166_v37 = vmul.f32 %v7672_v36, %v7672_v36  ;;  %v3104_v12 = vmul.f32 0.5, %v3018_v21  ;;  %v7683_v39 = vrot.slane %v3917_v15, %v8047_v30  ;;  %v7695_v15 = vld [vmem:[%s7983_s4 + $0x48] sm:$0x77] }
 0x379   :  { %v3303_v1 = vadd.f32 %v3302_v8, %v3301_v9  ;;  %v3313_v49 = vadd.f32 %v3312_v61, %v3311_v31  ;;  %v3008_v50 = vrot.slane %v3007_v62, 2  ;;  %4804 = vrsqrt.f32 %v3452_v41 }
 0x37a   :  { %v4301_v48 = vcombine.low %v4293_v19, %v4300_v29  ;;  %v3318_v10 = vsel %vm2857_vm2, %v3166_v37, 0.0  ;;  %v7687_v53 = vsub.f32 %v7634_v55, %v3104_v12  ;;  %v3605_v20 = vrot.slane %v7695_v15, %v8042_v5  ;;  %v7716_v19 = vld [vmem:[%s7983_s4 + $0x60] sm:$0x77] }
 0x37b   :  { %v3419_v3 = vmul.f32 0.5, %v3303_v1  ;;  %v3314_v7 = vrot.slane %v3313_v49, 2  ;;  %v3319_v42 = vrot.slane %v3318_v10, 4  ;;  %v3009_v43 = vadd.f32 %v3008_v50, %v3007_v62  ;;  %v7730_v50 = vld [vmem:[%s7983_s4 + $0x68] sm:$0x77] }
 0x37c   :  { %4381 = vst [vmem:[%s7984_s5 + $0x18] sm:$0xff] %v4301_v48  ;;  %v3925_v55 = vrot.slane %v7695_v15, %v8047_v30  ;;  %v3168_v22 = vmul.f32 %v7687_v53, %v7687_v53  ;;  %v7704_v32 = vadd.f32 %v8058_v51, %v2164_v54  ;;  %v4803_v52 = vpop.eup %4802  ;;  %v3601_v59 = vrot.slane %v7649_v4, %v8055_v24 }
 0x37d   :  { %v3451_v58 = vadd.f32 1e-05, %v3419_v3  ;;  %v3315_v23 = vadd.f32 %v3314_v7, %v3313_v49  ;;  %v3320_v56 = vadd.f32 %v3319_v42, %v3318_v10  ;;  %v3010_v11 = vrot.slane %v3009_v43, 1 }
 0x37e   :  { %v3921_v63 = vrot.slane %v7649_v4, %v8057_v57  ;;  %v3332_v27 = vsel %vm2857_vm2, %v3168_v22, 0.0  ;;  %v3019_v2 = vsel %vm2857_vm2, %v7704_v32, 0.0  ;;  %v3765_v41 = vrot.slane %v3605_v20, %v8042_v5 }
 0x37f   :  { %4806 = vrsqrt.f32 %v3451_v58  ;;  %v3316_v25 = vrot.slane %v3315_v23, 1  ;;  %v3321_v40 = vrot.slane %v3320_v56, 2  ;;  %v3333_v45 = vrot.slane %v3332_v27, 4 }
 0x380   :  { %v7720_v9 = vrot.slane %v3925_v55, %v8047_v30  ;;  %v3011_v4 = vadd.f32 %v3010_v11, %v3009_v43  ;;  %v3020_v34 = vrot.slane %v3019_v2, 4  ;;  %v3514_v17 = vmul.f32 %v4803_v52, %v7539_v44  ;;  %v8059_v52 = vld [vmem:[#allocation29_spill] sm:$0xff] }
 0x381   :  { %v3317_v31 = vadd.f32 %v3316_v25, %v3315_v23  ;;  %v3322_v21 = vadd.f32 %v3321_v40, %v3320_v56  ;;  %v3334_v8 = vadd.f32 %v3333_v45, %v3332_v27  ;;  %v3761_v61 = vrot.slane %v3601_v59, %v8042_v5 }
 0x382   :  { %v3103_v62 = vmul.f32 0.5, %v3011_v4  ;;  %v3021_v54 = vadd.f32 %v3020_v34, %v3019_v2  ;;  %v2008_v29 = vrot.slane %v7716_v19, %v8036_v60  ;;  %v4081_v37 = vrot.slane %v3921_v63, %v8047_v30 }
 0x383   :  { %v3421_v12 = vmul.f32 0.5, %v3317_v31  ;;  %v3323_v1 = vrot.slane %v3322_v21, 1  ;;  %v3335_v49 = vrot.slane %v3334_v8, 2  ;;  %v4805_v44 = vpop.eup %4804  ;;  %v3609_v48 = vrot.slane %v7695_v15, %v8055_v24  ;;  %v8060_v31 = vld [vmem:[#allocation30_spill] sm:$0xff] }
 0x384   :  { %v7735_v10 = vsub.f32 %v7660_v33, %v3103_v62  ;;  %v3022_v3 = vrot.slane %v3021_v54, 2  ;;  %v2168_v7 = vrot.slane %v2008_v29, %v8036_v60  ;;  %v3834_v42 = vmul.f32 %v3757_v16, %v3514_v17 }
 0x385   :  { %v3453_v43 = vadd.f32 1e-05, %v3421_v12  ;;  %v3324_v20 = vadd.f32 %v3323_v1, %v3322_v21  ;;  %v3336_v55 = vadd.f32 %v3335_v49, %v3334_v8  ;;  %v2016_v23 = vrot.slane %v7730_v50, %v8036_v60 }
 0x386   :  { %v3167_v22 = vmul.f32 %v7735_v10, %v7735_v10  ;;  %v3023_v51 = vadd.f32 %v3022_v3, %v3021_v54  ;;  %v7741_v58 = vadd.f32 %v8059_v52, %v2168_v7  ;;  %v3516_v33 = vmul.f32 %v4805_v44, %v7580_v35 }
 0x387   :  { %4808 = vrsqrt.f32 %v3453_v43  ;;  %v3422_v56 = vmul.f32 0.5, %v3324_v20  ;;  %v3337_v11 = vrot.slane %v3336_v55, 1  ;;  %v2176_v27 = vrot.slane %v2016_v23, %v8036_v60 }
 0x388   :  { %v3325_v16 = vsel %vm2857_vm2, %v3167_v22, 0.0  ;;  %v3024_v59 = vrot.slane %v3023_v51, 1  ;;  %v3026_v63 = vsel %vm2857_vm2, %v7741_v58, 0.0  ;;  %v3929_v25 = vrot.slane %v7695_v15, %v8057_v57 }
 0x389   :  { %v4807_v2 = vpop.eup %4806  ;;  %v3454_v40 = vadd.f32 1e-05, %v3422_v56  ;;  %v3326_v45 = vrot.slane %v3325_v16, 4  ;;  %v3027_v4 = vrot.slane %v3026_v63, 4  ;;  %v4154_v35 = vadd.f32 %v7683_v39, %v3834_v42 }
 0x38a   :  { %v3515_v34 = vmul.f32 %v4807_v2, %v7642_v14  ;;  %v3025_v17 = vadd.f32 %v3024_v59, %v3023_v51  ;;  %v7755_v21 = vadd.f32 %v8060_v31, %v2176_v27  ;;  %v3836_v8 = vmul.f32 %v3765_v41, %v3516_v33 }
 0x38b   :  { %v3769_v62 = vrot.slane %v3609_v48, %v8042_v5  ;;  %v3327_v54 = vadd.f32 %v3326_v45, %v3325_v16  ;;  %v3028_v29 = vadd.f32 %v3027_v4, %v3026_v63  ;;  %v3338_v1 = vadd.f32 %v3337_v11, %v3336_v55  ;;  %v8061_v63 = vld [vmem:[#allocation31_spill] sm:$0xff] }
 0x38c   :  { %v3835_v12 = vmul.f32 %v3761_v61, %v3515_v34  ;;  %v3105_v49 = vmul.f32 0.5, %v3025_v17  ;;  %v3040_v15 = vsel %vm2857_vm2, %v7755_v21, 0.0  ;;  %4810 = vrsqrt.f32 %v3454_v40 }
 0x38d   :  { %v3328_v44 = vrot.slane %v3327_v54, 2  ;;  %v3029_v39 = vrot.slane %v3028_v29, 2  ;;  %v3041_v3 = vrot.slane %v3040_v15, 4  ;;  %v4186_v14 = vmax.f32 %v4154_v35, 0.0 }
 0x38e   :  { %v4155_v7 = vadd.f32 %v4081_v37, %v3835_v12  ;;  %v7761_v42 = vsub.f32 %v7704_v32, %v3105_v49  ;;  %v2012_v41 = vrot.slane %v7716_v19, %v8038_v18  ;;  %v4089_v48 = vrot.slane %v3929_v25, %v8047_v30 }
 0x38f   :  { %v3329_v61 = vadd.f32 %v3328_v44, %v3327_v54  ;;  %v3030_v43 = vadd.f32 %v3029_v39, %v3028_v29  ;;  %v3042_v20 = vadd.f32 %v3041_v3, %v3040_v15  ;;  %v3424_v22 = vmul.f32 0.5, %v3338_v1 }
 0x390   :  { %v4187_v55 = vmax.f32 %v4155_v7, 0.0  ;;  %v3169_v51 = vmul.f32 %v7761_v42, %v7761_v42  ;;  %v2172_v52 = vrot.slane %v2012_v41, %v8036_v60  ;;  %v4156_v37 = vadd.f32 %v7720_v9, %v3836_v8 }
 0x391   :  { %v4809_v23 = vpop.eup %4808  ;;  %v3330_v32 = vrot.slane %v3329_v61, 1  ;;  %v3031_v33 = vrot.slane %v3030_v43, 1  ;;  %v3043_v56 = vrot.slane %v3042_v20, 2  ;;  %v3613_v35 = vrot.slane %v7568_v38, %v8042_v5 }
 0x392   :  { %v4302_v11 = vcombine.low %v4186_v14, %v4187_v55  ;;  %v3517_v16 = vmul.f32 %v4809_v23, %v7663_v6  ;;  %v3339_v59 = vsel %vm2857_vm2, %v3169_v51, 0.0  ;;  %v7773_v27 = vadd.f32 %v8061_v63, %v2172_v52 }
 0x393   :  { %v3331_v2 = vadd.f32 %v3330_v32, %v3329_v61  ;;  %v3340_v25 = vrot.slane %v3339_v59, 4  ;;  %v3032_v40 = vadd.f32 %v3031_v33, %v3030_v43  ;;  %v3044_v45 = vadd.f32 %v3043_v56, %v3042_v20 }
 0x394   :  { %v3837_v4 = vmul.f32 %v3769_v62, %v3517_v16  ;;  %v3456_v9 = vadd.f32 1e-05, %v3424_v22  ;;  %v3033_v34 = vsel %vm2857_vm2, %v7773_v27, 0.0  ;;  %v4188_v54 = vmax.f32 %v4156_v37, 0.0 }
 0x395   :  { %v3423_v17 = vmul.f32 0.5, %v3331_v2  ;;  %v3341_v31 = vadd.f32 %v3340_v25, %v3339_v59  ;;  %v3106_v6 = vmul.f32 0.5, %v3032_v40  ;;  %v3045_v8 = vrot.slane %v3044_v45, 1 }
 0x396   :  { %v4157_v29 = vadd.f32 %v4089_v48, %v3837_v4  ;;  %v3933_v12 = vrot.slane %v7568_v38, %v8047_v30  ;;  %v3034_v1 = vrot.slane %v3033_v34, 4  ;;  %v4811_v49 = vpop.eup %4810  ;;  %v3773_v14 = vrot.slane %v3613_v35, %v8042_v5  ;;  %v8062_v35 = vld [vmem:[#allocation32_spill] sm:$0xff] }
 0x397   :  { %v3455_v15 = vadd.f32 1e-05, %v3423_v17  ;;  %v3342_v62 = vrot.slane %v3341_v31, 2  ;;  %v7782_v44 = vsub.f32 %v7741_v58, %v3106_v6  ;;  %v3046_v39 = vadd.f32 %v3045_v8, %v3044_v45 }
 0x398   :  { %v4189_v3 = vmax.f32 %v4157_v29, 0.0  ;;  %4812 = vrsqrt.f32 %v3456_v9  ;;  %v3035_v7 = vadd.f32 %v3034_v1, %v3033_v34  ;;  %v4310_v43 = vrot.slane %v4302_v11, %v5023_v13  ;;  %v7811_v34 = vld [vmem:[%s7983_s4 + $0x70] sm:$0x77] }
 0x399   :  { %4814 = vrsqrt.f32 %v3455_v15  ;;  %v3343_v41 = vadd.f32 %v3342_v62, %v3341_v31  ;;  %v3170_v48 = vmul.f32 %v7782_v44, %v7782_v44  ;;  %v3108_v61 = vmul.f32 0.5, %v3046_v39 }
 0x39a   :  { %v4303_v20 = vcombine.low %v4188_v54, %v4189_v3  ;;  %v3518_v55 = vmul.f32 %v4811_v49, %v7672_v36  ;;  %v3036_v22 = vrot.slane %v3035_v7, 2  ;;  %v2020_v23 = vrot.slane %v7730_v50, %v8038_v18 }
 0x39b   :  { %v3344_v58 = vrot.slane %v3343_v41, 1  ;;  %v3346_v51 = vsel %vm2857_vm2, %v3170_v48, 0.0  ;;  %v7791_v52 = vsub.f32 %v7755_v21, %v3108_v61  ;;  %v4093_v32 = vrot.slane %v3933_v12, %v8047_v30 }
 0x39c   :  { %v4317_v37 = vrot.slane %v4303_v20, %v5023_v13  ;;  %v3617_v33 = vrot.slane %v7568_v38, %v8055_v24  ;;  %v3347_v56 = vrot.slane %v3346_v51, 4  ;;  %v3037_v16 = vadd.f32 %v3036_v22, %v3035_v7 }
 0x39d   :  { %v3345_v11 = vadd.f32 %v3344_v58, %v3343_v41  ;;  %v3172_v36 = vmul.f32 %v7791_v52, %v7791_v52  ;;  %v2180_v59 = vrot.slane %v2020_v23, %v8036_v60  ;;  %v3838_v63 = vmul.f32 %v3773_v14, %v3518_v55  ;;  %v7830_v55 = vld [vmem:[%s7983_s4 + $0x78] sm:$0x77] }
 0x39e   :  { %v4318_v21 = vcombine.low %v4310_v43, %v4317_v37  ;;  %v3937_v2 = vrot.slane %v7568_v38, %v8057_v57  ;;  %v3348_v25 = vadd.f32 %v3347_v56, %v3346_v51  ;;  %v3038_v4 = vrot.slane %v3037_v16, 1 }
 0x39f   :  { %v3425_v40 = vmul.f32 0.5, %v3345_v11  ;;  %v3360_v45 = vsel %vm2857_vm2, %v3172_v36, 0.0  ;;  %v7806_v9 = vadd.f32 %v8062_v35, %v2180_v59  ;;  %v3621_v38 = vrot.slane %v7585_v0, %v8042_v5 }
 0x3a0   :  { %4382 = vst [vmem:[%s7984_s5 + $0x20] sm:$0xff] %v4318_v21  ;;  %v3941_v17 = vrot.slane %v7585_v0, %v8047_v30  ;;  %v3349_v31 = vrot.slane %v3348_v25, 2  ;;  %v3361_v6 = vrot.slane %v3360_v45, 4  ;;  %v3777_v8 = vrot.slane %v3617_v33, %v8042_v5 }
 0x3a1   :  { %v3457_v54 = vadd.f32 1e-05, %v3425_v40  ;;  %v3039_v29 = vadd.f32 %v3038_v4, %v3037_v16  ;;  %v3047_v12 = vsel %vm2857_vm2, %v7806_v9, 0.0  ;;  %v2024_v39 = vrot.slane %v7811_v34, %v8036_v60 }
 0x3a2   :  { %v4813_v1 = vpop.eup %4812  ;;  %v3350_v49 = vadd.f32 %v3349_v31, %v3348_v25  ;;  %v3362_v15 = vadd.f32 %v3361_v6, %v3360_v45  ;;  %v3048_v62 = vrot.slane %v3047_v12, 4  ;;  %v4158_v14 = vadd.f32 %v4093_v32, %v3838_v63 }
 0x3a3   :  { %v4815_v3 = vpop.eup %4814  ;;  %v4097_v7 = vrot.slane %v3937_v2, %v8047_v30  ;;  %4816 = vrsqrt.f32 %v3457_v54  ;;  %v3107_v41 = vmul.f32 0.5, %v3039_v29  ;;  %v3781_v22 = vrot.slane %v3621_v38, %v8042_v5 }
 0x3a4   :  { %v3519_v48 = vmul.f32 %v4815_v3, %v7735_v10  ;;  %v3351_v61 = vrot.slane %v3350_v49, 1  ;;  %v3363_v43 = vrot.slane %v3362_v15, 2  ;;  %v3049_v20 = vadd.f32 %v3048_v62, %v3047_v12 }
 0x3a5   :  { %v3625_v58 = vrot.slane %v7585_v0, %v8055_v24  ;;  %v7836_v51 = vsub.f32 %v7773_v27, %v3107_v41  ;;  %v2184_v23 = vrot.slane %v2024_v39, %v8036_v60  ;;  %v3520_v10 = vmul.f32 %v4813_v1, %v7687_v53 }
 0x3a6   :  { %v3839_v37 = vmul.f32 %v3777_v8, %v3519_v48  ;;  %v3352_v32 = vadd.f32 %v3351_v61, %v3350_v49  ;;  %v3050_v33 = vrot.slane %v3049_v20, 2  ;;  %v3364_v56 = vadd.f32 %v3363_v43, %v3362_v15 }
 0x3a7   :  { %v3171_v11 = vmul.f32 %v7836_v51, %v7836_v51  ;;  %v7843_v36 = vadd.f32 %v7416_v26, %v2184_v23  ;;  %v2032_v16 = vrot.slane %v7830_v55, %v8036_v60  ;;  %v4190_v59 = vmax.f32 %v4158_v14, 0.0 }
 0x3a8   :  { %v4159_v27 = vadd.f32 %v4097_v7, %v3839_v37  ;;  %v3426_v21 = vmul.f32 0.5, %v3352_v32  ;;  %v3051_v63 = vadd.f32 %v3050_v33, %v3049_v20  ;;  %v4101_v2 = vrot.slane %v3941_v17, %v8047_v30 }
 0x3a9   :  { %v3353_v53 = vsel %vm2857_vm2, %v3171_v11, 0.0  ;;  %v3054_v25 = vsel %vm2857_vm2, %v7843_v36, 0.0  ;;  %v2192_v40 = vrot.slane %v2032_v16, %v8036_v60  ;;  %v3840_v45 = vmul.f32 %v3781_v22, %v3520_v10 }
 0x3aa   :  { %v4191_v4 = vmax.f32 %v4159_v27, 0.0  ;;  %v3945_v26 = vrot.slane %v7585_v0, %v8057_v57  ;;  %v3354_v35 = vrot.slane %v3353_v53, 4  ;;  %v3365_v38 = vrot.slane %v3364_v56, 1 }
 0x3ab   :  { %v3052_v31 = vrot.slane %v3051_v63, 1  ;;  %v3055_v6 = vrot.slane %v3054_v25, 4  ;;  %v7855_v8 = vadd.f32 %v7428_v47, %v2192_v40  ;;  %v3785_v54 = vrot.slane %v3625_v58, %v8042_v5 }
 0x3ac   :  { %v4319_v17 = vcombine.low %v4190_v59, %v4191_v4  ;;  %v3458_v29 = vadd.f32 1e-05, %v3426_v21  ;;  %v3355_v12 = vadd.f32 %v3354_v35, %v3353_v53  ;;  %v4160_v39 = vadd.f32 %v4101_v2, %v3840_v45 }
 0x3ad   :  { %v4817_v1 = vpop.eup %4816  ;;  %v3053_v49 = vadd.f32 %v3052_v31, %v3051_v63  ;;  %v3056_v15 = vadd.f32 %v3055_v6, %v3054_v25  ;;  %v3068_v62 = vsel %vm2857_vm2, %v7855_v8, 0.0  ;;  %v4105_v3 = vrot.slane %v3945_v26, %v8047_v30 }
 0x3ae   :  { %v3521_v0 = vmul.f32 %v4817_v1, %v7761_v42  ;;  %v3356_v14 = vrot.slane %v3355_v12, 2  ;;  %v3366_v7 = vadd.f32 %v3365_v38, %v3364_v56  ;;  %v3069_v48 = vrot.slane %v3068_v62, 4 }
 0x3af   :  { %v3109_v47 = vmul.f32 0.5, %v3053_v49  ;;  %v3057_v41 = vrot.slane %v3056_v15, 2  ;;  %4818 = vrsqrt.f32 %v3458_v29  ;;  %v2028_v20 = vrot.slane %v7811_v34, %v8038_v18 }
 0x3b0   :  { %v3841_v61 = vmul.f32 %v3785_v54, %v3521_v0  ;;  %v3357_v43 = vadd.f32 %v3356_v14, %v3355_v12  ;;  %v3629_v22 = vrot.slane %v7716_v19, %v8042_v5  ;;  %v3070_v23 = vadd.f32 %v3069_v48, %v3068_v62 }
 0x3b1   :  { %v7867_v58 = vsub.f32 %v7806_v9, %v3109_v47  ;;  %v3058_v42 = vadd.f32 %v3057_v41, %v3056_v15  ;;  %v4192_v10 = vmax.f32 %v4160_v39, 0.0  ;;  %v2188_v33 = vrot.slane %v2028_v20, %v8036_v60 }
 0x3b2   :  { %v4161_v37 = vadd.f32 %v4105_v3, %v3841_v61  ;;  %v3358_v32 = vrot.slane %v3357_v43, 1  ;;  %v3428_v56 = vmul.f32 0.5, %v3366_v7  ;;  %v3071_v59 = vrot.slane %v3070_v23, 2 }
 0x3b3   :  { %v3173_v11 = vmul.f32 %v7867_v58, %v7867_v58  ;;  %v3059_v16 = vrot.slane %v3058_v42, 1  ;;  %v4327_v27 = vrot.slane %v4319_v17, %v5023_v13  ;;  %v7874_v9 = vadd.f32 %v7465_v46, %v2188_v33 }
 0x3b4   :  { %v4193_v21 = vmax.f32 %v4161_v37, 0.0  ;;  %v3359_v63 = vadd.f32 %v3358_v32, %v3357_v43  ;;  %v3072_v25 = vadd.f32 %v3071_v59, %v3070_v23  ;;  %v2036_v40 = vrot.slane %v7830_v55, %v8038_v18 }
 0x3b5   :  { %v3367_v2 = vsel %vm2857_vm2, %v3173_v11, 0.0  ;;  %v3060_v53 = vadd.f32 %v3059_v16, %v3058_v42  ;;  %v3061_v35 = vsel %vm2857_vm2, %v7874_v9, 0.0  ;;  %v3460_v38 = vadd.f32 1e-05, %v3428_v56 }
 0x3b6   :  { %v4320_v45 = vcombine.low %v4192_v10, %v4193_v21  ;;  %v3427_v4 = vmul.f32 0.5, %v3359_v63  ;;  %v3368_v26 = vrot.slane %v3367_v2, 4  ;;  %v3073_v6 = vrot.slane %v3072_v25, 1 }
 0x3b7   :  { %v3110_v31 = vmul.f32 0.5, %v3060_v53  ;;  %v3062_v17 = vrot.slane %v3061_v35, 4  ;;  %v2196_v12 = vrot.slane %v2036_v40, %v8036_v60  ;;  %v3789_v60 = vrot.slane %v3629_v22, %v8042_v5 }
 0x3b8   :  { %v4334_v46 = vrot.slane %v4320_v45, %v5023_v13  ;;  %v3459_v54 = vadd.f32 1e-05, %v3427_v4  ;;  %v3369_v29 = vadd.f32 %v3368_v26, %v3367_v2  ;;  %v3074_v18 = vadd.f32 %v3073_v6, %v3072_v25 }
 0x3b9   :  { %v7884_v1 = vsub.f32 %v7843_v36, %v3110_v31  ;;  %v3063_v49 = vadd.f32 %v3062_v17, %v3061_v35  ;;  %v4819_v15 = vpop.eup %4818  ;;  %v7887_v0 = vadd.f32 %v7470_v28, %v2196_v12  ;;  %v3949_v28 = vrot.slane %v7716_v19, %v8047_v30 }
 0x3ba   :  { %v4335_v62 = vcombine.low %v4327_v27, %v4334_v46  ;;  %4820 = vrsqrt.f32 %v3459_v54  ;;  %v3370_v39 = vrot.slane %v3369_v29, 2  ;;  %v3112_v14 = vmul.f32 0.5, %v3074_v18 }
 0x3bb   :  { %4822 = vrsqrt.f32 %v3460_v38  ;;  %v3174_v3 = vmul.f32 %v7884_v1, %v7884_v1  ;;  %v3064_v7 = vrot.slane %v3063_v49, 2  ;;  %v3075_v47 = vsel %vm2857_vm2, %v7887_v0, 0.0 }
 0x3bc   :  { %4383 = vst [vmem:[%s7984_s5 + $0x28] sm:$0xff] %v4335_v62  ;;  %v3371_v36 = vadd.f32 %v3370_v39, %v3369_v29  ;;  %v3522_v41 = vmul.f32 %v4819_v15, %v7782_v44  ;;  %v7902_v61 = vsub.f32 %v7855_v8, %v3112_v14  ;;  %v3076_v23 = vrot.slane %v3075_v47, 4 }
 0x3bd   :  { %v3374_v48 = vsel %vm2857_vm2, %v3174_v3, 0.0  ;;  %v3065_v42 = vadd.f32 %v3064_v7, %v3063_v49  ;;  %v3633_v22 = vrot.slane %v7716_v19, %v8055_v24  ;;  %v4109_v11 = vrot.slane %v3949_v28, %v8047_v30 }
 0x3be   :  { %v3372_v43 = vrot.slane %v3371_v36, 1  ;;  %v3375_v20 = vrot.slane %v3374_v48, 4  ;;  %v3176_v10 = vmul.f32 %v7902_v61, %v7902_v61  ;;  %v3077_v33 = vadd.f32 %v3076_v23, %v3075_v47 }
 0x3bf   :  { %v3066_v32 = vrot.slane %v3065_v42, 1  ;;  %v3842_v56 = vmul.f32 %v3789_v60, %v3522_v41  ;;  %v3953_v8 = vrot.slane %v7716_v19, %v8057_v57  ;;  %v3637_v2 = vrot.slane %v7730_v50, %v8042_v5 }
 0x3c0   :  { %v3373_v37 = vadd.f32 %v3372_v43, %v3371_v36  ;;  %v3376_v44 = vadd.f32 %v3375_v20, %v3374_v48  ;;  %v3388_v16 = vsel %vm2857_vm2, %v3176_v10, 0.0  ;;  %v3793_v53 = vrot.slane %v3633_v22, %v8042_v5 }
 0x3c1   :  { %v3389_v21 = vrot.slane %v3388_v16, 4  ;;  %v3067_v63 = vadd.f32 %v3066_v32, %v3065_v42  ;;  %v3078_v25 = vrot.slane %v3077_v33, 2  ;;  %v4162_v31 = vadd.f32 %v4109_v11, %v3842_v56 }
 0x3c2   :  { %v3429_v59 = vmul.f32 0.5, %v3373_v37  ;;  %v3377_v27 = vrot.slane %v3376_v44, 2  ;;  %v4113_v6 = vrot.slane %v3953_v8, %v8047_v30  ;;  %v3797_v12 = vrot.slane %v3637_v2, %v8042_v5 }
 0x3c3   :  { %v3390_v26 = vadd.f32 %v3389_v21, %v3388_v16  ;;  %v3111_v35 = vmul.f32 0.5, %v3067_v63  ;;  %v3079_v17 = vadd.f32 %v3078_v25, %v3077_v33  ;;  %v3957_v18 = vrot.slane %v7730_v50, %v8047_v30 }
 0x3c4   :  { %v4821_v40 = vpop.eup %4820  ;;  %v3461_v45 = vadd.f32 1e-05, %v3429_v59  ;;  %v3378_v4 = vadd.f32 %v3377_v27, %v3376_v44  ;;  %v4194_v14 = vmax.f32 %v4162_v31, 0.0  ;;  %v3641_v28 = vrot.slane %v7730_v50, %v8055_v24 }
 0x3c5   :  { %v4823_v38 = vpop.eup %4822  ;;  %v3523_v19 = vmul.f32 %v4821_v40, %v7836_v51  ;;  %v3391_v54 = vrot.slane %v3390_v26, 2  ;;  %v7918_v29 = vsub.f32 %v7874_v9, %v3111_v35  ;;  %v3080_v15 = vrot.slane %v3079_v17, 1 }
 0x3c6   :  { %4824 = vrsqrt.f32 %v3461_v45  ;;  %v3379_v46 = vrot.slane %v3378_v4, 1  ;;  %v3524_v62 = vmul.f32 %v4823_v38, %v7791_v52  ;;  %v4117_v52 = vrot.slane %v3957_v18, %v8047_v30 }
 0x3c7   :  { %v3843_v49 = vmul.f32 %v3793_v53, %v3523_v19  ;;  %v3392_v51 = vadd.f32 %v3391_v54, %v3390_v26  ;;  %v3175_v3 = vmul.f32 %v7918_v29, %v7918_v29  ;;  %v3081_v36 = vadd.f32 %v3080_v15, %v3079_v17 }
 0x3c8   :  { %v3380_v39 = vadd.f32 %v3379_v46, %v3378_v4  ;;  %v3844_v20 = vmul.f32 %v3797_v12, %v3524_v62  ;;  %v3961_v42 = vrot.slane %v7730_v50, %v8057_v57  ;;  %v3801_v32 = vrot.slane %v3641_v28, %v8042_v5 }
 0x3c9   :  { %v4163_v60 = vadd.f32 %v4113_v6, %v3843_v49  ;;  %v3393_v9 = vrot.slane %v3392_v51, 1  ;;  %v3381_v47 = vsel %vm2857_vm2, %v3175_v3, 0.0  ;;  %v3113_v43 = vmul.f32 0.5, %v3081_v36 }
 0x3ca   :  { %v3430_v7 = vmul.f32 0.5, %v3380_v39  ;;  %v3382_v48 = vrot.slane %v3381_v47, 4  ;;  %v4164_v8 = vadd.f32 %v4117_v52, %v3844_v20  ;;  %v4121_v16 = vrot.slane %v3961_v42, %v8047_v30 }
 0x3cb   :  { %v4195_v41 = vmax.f32 %v4163_v60, 0.0  ;;  %v3394_v23 = vadd.f32 %v3393_v9, %v3392_v51  ;;  %v7933_v44 = vsub.f32 %v7887_v0, %v3113_v43  ;;  %v3645_v17 = vrot.slane %v7811_v34, %v8042_v5 }
 0x3cc   :  { %v3462_v10 = vadd.f32 1e-05, %v3430_v7  ;;  %v3383_v37 = vadd.f32 %v3382_v48, %v3381_v47  ;;  %v4196_v40 = vmax.f32 %v4164_v8, 0.0  ;;  %v3965_v39 = vrot.slane %v7811_v34, %v8047_v30 }
 0x3cd   :  { %v4336_v22 = vcombine.low %v4194_v14, %v4195_v41  ;;  %v3177_v56 = vmul.f32 %v7933_v44, %v7933_v44  ;;  %v3432_v59 = vmul.f32 0.5, %v3394_v23  ;;  %v3805_v62 = vrot.slane %v3645_v17, %v8042_v5 }
 0x3ce   :  { %v3384_v33 = vrot.slane %v3383_v37, 2  ;;  %4826 = vrsqrt.f32 %v3462_v10  ;;  %v3649_v3 = vrot.slane %v7811_v34, %v8055_v24  ;;  %v3653_v60 = vrot.slane %v7830_v55, %v8042_v5 }
 0x3cf   :  { %v3395_v21 = vsel %vm2857_vm2, %v3177_v56, 0.0  ;;  %v3464_v53 = vadd.f32 1e-05, %v3432_v59  ;;  %v4344_v19 = vrot.slane %v4336_v22, %v5023_v13  ;;  %v3969_v9 = vrot.slane %v7811_v34, %v8057_v57 }
 0x3d0   :  { %v4825_v11 = vpop.eup %4824  ;;  %v3385_v27 = vadd.f32 %v3384_v33, %v3383_v37  ;;  %v3396_v63 = vrot.slane %v3395_v21, 4  ;;  %v3809_v47 = vrot.slane %v3649_v3, %v8042_v5  ;;  %v3813_v48 = vrot.slane %v3653_v60, %v8042_v5 }
 0x3d1   :  { %v3525_v50 = vmul.f32 %v4825_v11, %v7867_v58  ;;  %4828 = vrsqrt.f32 %v3464_v53  ;;  %v3973_v43 = vrot.slane %v7830_v55, %v8047_v30  ;;  %v4129_v42 = vrot.slane %v3969_v9, %v8047_v30 }
 0x3d2   :  { %v3386_v2 = vrot.slane %v3385_v27, 1  ;;  %v3397_v25 = vadd.f32 %v3396_v63, %v3395_v21  ;;  %v3657_v23 = vrot.slane %v7830_v55, %v8055_v24 }
 0x3d3   :  { %v3845_v0 = vmul.f32 %v3801_v32, %v3525_v50  ;;  %v4133_v10 = vrot.slane %v3973_v43, %v8047_v30 }
 0x3d4   :  { %v3387_v4 = vadd.f32 %v3386_v2, %v3385_v27  ;;  %v3398_v26 = vrot.slane %v3397_v25, 2  ;;  %v3817_v33 = vrot.slane %v3657_v23, %v8042_v5 }
 0x3d5   :  { %v4165_v45 = vadd.f32 %v4121_v16, %v3845_v0 }
 0x3d6   :  { %v3431_v38 = vmul.f32 0.5, %v3387_v4  ;;  %v3399_v31 = vadd.f32 %v3398_v26, %v3397_v25 }
 0x3d7   :  { %v4197_v35 = vmax.f32 %v4165_v45, 0.0 }
 0x3d8   :  { %v3463_v6 = vadd.f32 1e-05, %v3431_v38  ;;  %v3400_v46 = vrot.slane %v3399_v31, 1  ;;  %v4827_v54 = vpop.eup %4826 }
 0x3d9   :  { %v4337_v58 = vcombine.low %v4196_v40, %v4197_v35  ;;  %v3526_v15 = vmul.f32 %v4827_v54, %v7884_v1  ;;  %v4125_v1 = vrot.slane %v3965_v39, %v8047_v30 }
 0x3da   :  { %4830 = vrsqrt.f32 %v3463_v6  ;;  %v3401_v18 = vadd.f32 %v3400_v46, %v3399_v31 }
 0x3db   :  { %v4351_v12 = vrot.slane %v4337_v58, %v5023_v13  ;;  %v4829_v36 = vpop.eup %4828  ;;  %v3846_v7 = vmul.f32 %v3805_v62, %v3526_v15 }
 0x3dc   :  { %v3433_v51 = vmul.f32 0.5, %v3401_v18  ;;  %v3528_v28 = vmul.f32 %v4829_v36, %v7902_v61  ;;  %v3977_v61 = vrot.slane %v7830_v55, %v8057_v57 }
 0x3dd   :  { %v4352_v49 = vcombine.low %v4344_v19, %v4351_v12  ;;  %v4166_v20 = vadd.f32 %v4125_v1, %v3846_v7 }
 0x3de   :  { %v3465_v14 = vadd.f32 1e-05, %v3433_v51  ;;  %v3848_v22 = vmul.f32 %v3813_v48, %v3528_v28  ;;  %v4137_v16 = vrot.slane %v3977_v61, %v8047_v30 }
 0x3df   :  { %4384 = vst [vmem:[%s7984_s5 + $0x30] sm:$0xff] %v4352_v49  ;;  %v4198_v37 = vmax.f32 %v4166_v20, 0.0 }
 0x3e0   :  { %4832 = vrsqrt.f32 %v3465_v14  ;;  %v4168_v8 = vadd.f32 %v4133_v10, %v3848_v22 }
 0x3e2   :  { %v4200_v50 = vmax.f32 %v4168_v8, 0.0 }
 0x3e4   :  { %v4831_v41 = vpop.eup %4830 }
 0x3e5   :  { %v3527_v52 = vmul.f32 %v4831_v41, %v7918_v29 }
 0x3e7   :  { %v3847_v34 = vmul.f32 %v3809_v47, %v3527_v52 }
 0x3e9   :  { %v4167_v32 = vadd.f32 %v4129_v42, %v3847_v34 }
 0x3ea   :  { %v4833_v56 = vpop.eup %4832 }
 0x3eb   :  { %v4199_v11 = vmax.f32 %v4167_v32, 0.0  ;;  %v3529_v29 = vmul.f32 %v4833_v56, %v7933_v44 }
 0x3ed   :  { %v4353_v59 = vcombine.low %v4198_v37, %v4199_v11  ;;  %v3849_v24 = vmul.f32 %v3817_v33, %v3529_v29 }
 0x3ef   :  { %v4169_v27 = vadd.f32 %v4137_v16, %v3849_v24  ;;  %v4361_v63 = vrot.slane %v4353_v59, %v5023_v13 }
 0x3f1   :  { %v4201_v21 = vmax.f32 %v4169_v27, 0.0 }
 0x3f3   :  { %v4354_v0 = vcombine.low %v4200_v50, %v4201_v21 }
 0x3f5   :  { %v4368_v57 = vrot.slane %v4354_v0, %v5023_v13 }
 0x3f7   :  { %v4369_v55 = vcombine.low %v4361_v63, %v4368_v57 }
 0x3f9   :  { %4385 = vst [vmem:[%s7984_s5 + $0x38] sm:$0xff] %v4369_v55 }

// kernel: began_discriminator_forward.5
= control target key start
LH: loop header
LB: loop body
LE: loop exit
PB: predicated region body
PF: predicated region fallthrough
CT: control target
= control target key end

     0   :  { %s1006_s12 = smov 0   ;;  %s1008_s13 = smov 0   ;;  %s1522_s0 = inlined_call_operand.vmem [shape: f32[4,576], index: 0, kind: input, shape index: {}]   ;;  %s1523_s1 = inlined_call_operand.vmem [shape: f32[576,512], index: 1, kind: input, shape index: {}]   ;;  %s1524_s2 = inlined_call_operand.vmem [shape: f32[4,1], index: 2, kind: input, shape index: {}]   ;;  %s1525_s3 = inlined_call_operand.vmem [shape: f32[4,512], index: 3, kind: output, shape index: {}]  }
   0x1   :  { %s1010_s14 = smov 0  }
   0x2 LB: > { %s910_s15 = sadd.s32 4294967295, %s983_s14   ;;  %s1023_s16 = sadd.s32 1, %s983_s14   ;;  %s983_s14 = sphi %s1010_s14, %s1528_s14   ;;  %s979_s13 = sphi %s1008_s13, %s1527_s13   ;;  %s975_s12 = sphi %s1006_s12, %s1526_s12  }
   0x3   : > { %s38_s17 = ssub.s32 %s983_s14, %s1023_s16  ;;  %s41_s18 = sadd.s32 1, %s979_s13 }
   0x4   : > { %p39_p0 = scmp.eq.s32.totalorder %s38_s17, 0  ;;  %p48_p1 = scmp.ne.s32.totalorder %s979_s13, %s975_s12 }
   0x5   : > { %p49_p2 = scmp.eq.s32.totalorder %s983_s14, 0  ;;  %p913_p4 = scmp.ge.s32.totalorder %s983_s14, 2 }
   0x6   : > { %s1032_s19 = scalar_select %p39_p0, %s979_s13, %s41_s18  }
   0x7   : > { %p50_p3 = por %p49_p2, %p48_p1  ;;  %127 = sbr.rel (%p913_p4) target bundleno = 90 (0x5a), region = 24 }
   0xe   : > { %130 = sbr.rel (!%p50_p3) target bundleno = 90 (0x5a), region = 28  ;;  %s132_s20 = sand.u32 (%p50_p3), 1, %s979_s13  }
   0xf   : > { %s922_s21 = sshll.u32 (%p50_p3), %s983_s14, 4  ;;  %s931_s22 = smul.u32 (%p50_p3), 1152, %s132_s20 }
  0x10   : > { %s1040_s25 = scalar_lea.vmem (%p50_p3), %s1523_s1, %s922_s21 }
  0x11   : > { %v150_v0 = vld [vmem:[%s1040_s25] sm:$0xff] (%p50_p3)  ;;  %v152_v1 = vld [vmem:[%s1040_s25 + $0x8] sm:$0xff] (%p50_p3)  ;;  %s1048_s26 = scalar_lea.vmem (%p50_p3), [#allocation2], %s931_s22 }
  0x12   : > { %v154_v2 = vld [vmem:[%s1040_s25 + $0x20] sm:$0xff] (%p50_p3)  ;;  %v156_v3 = vld [vmem:[%s1040_s25 + $0x28] sm:$0xff] (%p50_p3)  ;;  %151 = vst [vmem:[%s1048_s26] sm:$0xff] (%p50_p3), %v150_v0  ;;  %153 = vst [vmem:[%s1048_s26 + $0x8] sm:$0xff] (%p50_p3), %v152_v1 }
  0x13   : > { %v158_v4 = vld [vmem:[%s1040_s25 + $0x40] sm:$0xff] (%p50_p3)  ;;  %v160_v5 = vld [vmem:[%s1040_s25 + $0x48] sm:$0xff] (%p50_p3)  ;;  %155 = vst [vmem:[%s1048_s26 + $0x10] sm:$0xff] (%p50_p3), %v154_v2  ;;  %157 = vst [vmem:[%s1048_s26 + $0x18] sm:$0xff] (%p50_p3), %v156_v3 }
  0x14   : > { %159 = vst [vmem:[%s1048_s26 + $0x20] sm:$0xff] (%p50_p3), %v158_v4  ;;  %161 = vst [vmem:[%s1048_s26 + $0x28] sm:$0xff] (%p50_p3), %v160_v5  ;;  %v162_v6 = vld [vmem:[%s1040_s25 + $0x60] sm:$0xff] (%p50_p3)  ;;  %v164_v7 = vld [vmem:[%s1040_s25 + $0x68] sm:$0xff] (%p50_p3) }
  0x15   : > { %v166_v8 = vld [vmem:[%s1040_s25 + $0x80] sm:$0xff]  ;;  %163 = vst [vmem:[%s1048_s26 + $0x30] sm:$0xff] %v162_v6  ;;  %165 = vst [vmem:[%s1048_s26 + $0x38] sm:$0xff] %v164_v7  ;;  %v168_v9 = vld [vmem:[%s1040_s25 + $0x88] sm:$0xff] }
  0x16   : > { %167 = vst [vmem:[%s1048_s26 + $0x40] sm:$0xff] %v166_v8  ;;  %v170_v10 = vld [vmem:[%s1040_s25 + $0xa0] sm:$0xff]  ;;  %v172_v11 = vld [vmem:[%s1040_s25 + $0xa8] sm:$0xff]  ;;  %169 = vst [vmem:[%s1048_s26 + $0x48] sm:$0xff] %v168_v9 }
  0x17   : > { %171 = vst [vmem:[%s1048_s26 + $0x50] sm:$0xff] %v170_v10  ;;  %173 = vst [vmem:[%s1048_s26 + $0x58] sm:$0xff] %v172_v11  ;;  %v174_v12 = vld [vmem:[%s1040_s25 + $0xc0] sm:$0xff]  ;;  %v176_v13 = vld [vmem:[%s1040_s25 + $0xc8] sm:$0xff] }
  0x18   : > { %v178_v14 = vld [vmem:[%s1040_s25 + $0xe0] sm:$0xff]  ;;  %175 = vst [vmem:[%s1048_s26 + $0x60] sm:$0xff] %v174_v12  ;;  %177 = vst [vmem:[%s1048_s26 + $0x68] sm:$0xff] %v176_v13  ;;  %v180_v15 = vld [vmem:[%s1040_s25 + $0xe8] sm:$0xff] }
  0x19   : > { %179 = vst [vmem:[%s1048_s26 + $0x70] sm:$0xff] %v178_v14  ;;  %v182_v16 = vld [vmem:[%s1040_s25 + $0x100] sm:$0xff]  ;;  %v184_v17 = vld [vmem:[%s1040_s25 + $0x108] sm:$0xff]  ;;  %181 = vst [vmem:[%s1048_s26 + $0x78] sm:$0xff] %v180_v15 }
  0x1a   : > { %183 = vst [vmem:[%s1048_s26 + $0x80] sm:$0xff] %v182_v16  ;;  %185 = vst [vmem:[%s1048_s26 + $0x88] sm:$0xff] %v184_v17  ;;  %v186_v18 = vld [vmem:[%s1040_s25 + $0x120] sm:$0xff]  ;;  %v188_v19 = vld [vmem:[%s1040_s25 + $0x128] sm:$0xff] }
  0x1b   : > { %v190_v20 = vld [vmem:[%s1040_s25 + $0x140] sm:$0xff]  ;;  %187 = vst [vmem:[%s1048_s26 + $0x90] sm:$0xff] %v186_v18  ;;  %189 = vst [vmem:[%s1048_s26 + $0x98] sm:$0xff] %v188_v19  ;;  %v192_v21 = vld [vmem:[%s1040_s25 + $0x148] sm:$0xff] }
  0x1c   : > { %191 = vst [vmem:[%s1048_s26 + $0xa0] sm:$0xff] %v190_v20  ;;  %v194_v22 = vld [vmem:[%s1040_s25 + $0x160] sm:$0xff]  ;;  %v196_v23 = vld [vmem:[%s1040_s25 + $0x168] sm:$0xff]  ;;  %193 = vst [vmem:[%s1048_s26 + $0xa8] sm:$0xff] %v192_v21 }
  0x1d   : > { %195 = vst [vmem:[%s1048_s26 + $0xb0] sm:$0xff] %v194_v22  ;;  %197 = vst [vmem:[%s1048_s26 + $0xb8] sm:$0xff] %v196_v23  ;;  %v198_v24 = vld [vmem:[%s1040_s25 + $0x180] sm:$0xff]  ;;  %v200_v25 = vld [vmem:[%s1040_s25 + $0x188] sm:$0xff] }
  0x1e   : > { %v202_v26 = vld [vmem:[%s1040_s25 + $0x1a0] sm:$0xff]  ;;  %199 = vst [vmem:[%s1048_s26 + $0xc0] sm:$0xff] %v198_v24  ;;  %201 = vst [vmem:[%s1048_s26 + $0xc8] sm:$0xff] %v200_v25  ;;  %v204_v27 = vld [vmem:[%s1040_s25 + $0x1a8] sm:$0xff] }
  0x1f   : > { %203 = vst [vmem:[%s1048_s26 + $0xd0] sm:$0xff] %v202_v26  ;;  %v206_v28 = vld [vmem:[%s1040_s25 + $0x1c0] sm:$0xff]  ;;  %v208_v29 = vld [vmem:[%s1040_s25 + $0x1c8] sm:$0xff]  ;;  %205 = vst [vmem:[%s1048_s26 + $0xd8] sm:$0xff] %v204_v27 }
  0x20   : > { %207 = vst [vmem:[%s1048_s26 + $0xe0] sm:$0xff] %v206_v28  ;;  %209 = vst [vmem:[%s1048_s26 + $0xe8] sm:$0xff] %v208_v29  ;;  %v210_v30 = vld [vmem:[%s1040_s25 + $0x1e0] sm:$0xff]  ;;  %v212_v31 = vld [vmem:[%s1040_s25 + $0x1e8] sm:$0xff] }
  0x21   : > { %v214_v32 = vld [vmem:[%s1040_s25 + $0x200] sm:$0xff]  ;;  %211 = vst [vmem:[%s1048_s26 + $0xf0] sm:$0xff] %v210_v30  ;;  %213 = vst [vmem:[%s1048_s26 + $0xf8] sm:$0xff] %v212_v31  ;;  %v216_v33 = vld [vmem:[%s1040_s25 + $0x208] sm:$0xff] }
  0x22   : > { %215 = vst [vmem:[%s1048_s26 + $0x100] sm:$0xff] %v214_v32  ;;  %v218_v34 = vld [vmem:[%s1040_s25 + $0x220] sm:$0xff]  ;;  %v220_v35 = vld [vmem:[%s1040_s25 + $0x228] sm:$0xff]  ;;  %217 = vst [vmem:[%s1048_s26 + $0x108] sm:$0xff] %v216_v33 }
  0x23   : > { %219 = vst [vmem:[%s1048_s26 + $0x110] sm:$0xff] %v218_v34  ;;  %221 = vst [vmem:[%s1048_s26 + $0x118] sm:$0xff] %v220_v35  ;;  %v222_v36 = vld [vmem:[%s1040_s25 + $0x240] sm:$0xff]  ;;  %v224_v37 = vld [vmem:[%s1040_s25 + $0x248] sm:$0xff] }
  0x24   : > { %v226_v38 = vld [vmem:[%s1040_s25 + $0x260] sm:$0xff]  ;;  %223 = vst [vmem:[%s1048_s26 + $0x120] sm:$0xff] %v222_v36  ;;  %225 = vst [vmem:[%s1048_s26 + $0x128] sm:$0xff] %v224_v37  ;;  %v228_v39 = vld [vmem:[%s1040_s25 + $0x268] sm:$0xff] }
  0x25   : > { %227 = vst [vmem:[%s1048_s26 + $0x130] sm:$0xff] %v226_v38  ;;  %v230_v40 = vld [vmem:[%s1040_s25 + $0x280] sm:$0xff]  ;;  %v232_v41 = vld [vmem:[%s1040_s25 + $0x288] sm:$0xff]  ;;  %229 = vst [vmem:[%s1048_s26 + $0x138] sm:$0xff] %v228_v39 }
  0x26   : > { %231 = vst [vmem:[%s1048_s26 + $0x140] sm:$0xff] %v230_v40  ;;  %233 = vst [vmem:[%s1048_s26 + $0x148] sm:$0xff] %v232_v41  ;;  %v234_v42 = vld [vmem:[%s1040_s25 + $0x2a0] sm:$0xff]  ;;  %v236_v43 = vld [vmem:[%s1040_s25 + $0x2a8] sm:$0xff] }
  0x27   : > { %v238_v44 = vld [vmem:[%s1040_s25 + $0x2c0] sm:$0xff]  ;;  %235 = vst [vmem:[%s1048_s26 + $0x150] sm:$0xff] %v234_v42  ;;  %237 = vst [vmem:[%s1048_s26 + $0x158] sm:$0xff] %v236_v43  ;;  %v240_v45 = vld [vmem:[%s1040_s25 + $0x2c8] sm:$0xff] }
  0x28   : > { %239 = vst [vmem:[%s1048_s26 + $0x160] sm:$0xff] %v238_v44  ;;  %v242_v46 = vld [vmem:[%s1040_s25 + $0x2e0] sm:$0xff]  ;;  %v244_v47 = vld [vmem:[%s1040_s25 + $0x2e8] sm:$0xff]  ;;  %241 = vst [vmem:[%s1048_s26 + $0x168] sm:$0xff] %v240_v45 }
  0x29   : > { %243 = vst [vmem:[%s1048_s26 + $0x170] sm:$0xff] %v242_v46  ;;  %245 = vst [vmem:[%s1048_s26 + $0x178] sm:$0xff] %v244_v47  ;;  %v246_v48 = vld [vmem:[%s1040_s25 + $0x300] sm:$0xff]  ;;  %v248_v49 = vld [vmem:[%s1040_s25 + $0x308] sm:$0xff] }
  0x2a   : > { %v250_v50 = vld [vmem:[%s1040_s25 + $0x320] sm:$0xff]  ;;  %247 = vst [vmem:[%s1048_s26 + $0x180] sm:$0xff] %v246_v48  ;;  %249 = vst [vmem:[%s1048_s26 + $0x188] sm:$0xff] %v248_v49  ;;  %v252_v51 = vld [vmem:[%s1040_s25 + $0x328] sm:$0xff] }
  0x2b   : > { %251 = vst [vmem:[%s1048_s26 + $0x190] sm:$0xff] %v250_v50  ;;  %v254_v52 = vld [vmem:[%s1040_s25 + $0x340] sm:$0xff]  ;;  %v256_v53 = vld [vmem:[%s1040_s25 + $0x348] sm:$0xff]  ;;  %253 = vst [vmem:[%s1048_s26 + $0x198] sm:$0xff] %v252_v51 }
  0x2c   : > { %255 = vst [vmem:[%s1048_s26 + $0x1a0] sm:$0xff] %v254_v52  ;;  %257 = vst [vmem:[%s1048_s26 + $0x1a8] sm:$0xff] %v256_v53  ;;  %v258_v54 = vld [vmem:[%s1040_s25 + $0x360] sm:$0xff]  ;;  %v260_v55 = vld [vmem:[%s1040_s25 + $0x368] sm:$0xff] }
  0x2d   : > { %v262_v56 = vld [vmem:[%s1040_s25 + $0x380] sm:$0xff]  ;;  %259 = vst [vmem:[%s1048_s26 + $0x1b0] sm:$0xff] %v258_v54  ;;  %261 = vst [vmem:[%s1048_s26 + $0x1b8] sm:$0xff] %v260_v55  ;;  %v264_v57 = vld [vmem:[%s1040_s25 + $0x388] sm:$0xff] }
  0x2e   : > { %263 = vst [vmem:[%s1048_s26 + $0x1c0] sm:$0xff] %v262_v56  ;;  %v266_v58 = vld [vmem:[%s1040_s25 + $0x3a0] sm:$0xff]  ;;  %v268_v59 = vld [vmem:[%s1040_s25 + $0x3a8] sm:$0xff]  ;;  %265 = vst [vmem:[%s1048_s26 + $0x1c8] sm:$0xff] %v264_v57 }
  0x2f   : > { %267 = vst [vmem:[%s1048_s26 + $0x1d0] sm:$0xff] %v266_v58  ;;  %269 = vst [vmem:[%s1048_s26 + $0x1d8] sm:$0xff] %v268_v59  ;;  %v270_v60 = vld [vmem:[%s1040_s25 + $0x3c0] sm:$0xff]  ;;  %v272_v61 = vld [vmem:[%s1040_s25 + $0x3c8] sm:$0xff] }
  0x30   : > { %v274_v62 = vld [vmem:[%s1040_s25 + $0x3e0] sm:$0xff]  ;;  %271 = vst [vmem:[%s1048_s26 + $0x1e0] sm:$0xff] %v270_v60  ;;  %273 = vst [vmem:[%s1048_s26 + $0x1e8] sm:$0xff] %v272_v61  ;;  %v276_v63 = vld [vmem:[%s1040_s25 + $0x3e8] sm:$0xff] }
  0x31   : > { %275 = vst [vmem:[%s1048_s26 + $0x1f0] sm:$0xff] %v274_v62  ;;  %v278_v0 = vld [vmem:[%s1040_s25 + $0x400] sm:$0xff]  ;;  %v280_v1 = vld [vmem:[%s1040_s25 + $0x408] sm:$0xff]  ;;  %277 = vst [vmem:[%s1048_s26 + $0x1f8] sm:$0xff] %v276_v63 }
  0x32   : > { %279 = vst [vmem:[%s1048_s26 + $0x200] sm:$0xff] %v278_v0  ;;  %281 = vst [vmem:[%s1048_s26 + $0x208] sm:$0xff] %v280_v1  ;;  %v282_v2 = vld [vmem:[%s1040_s25 + $0x420] sm:$0xff]  ;;  %v284_v3 = vld [vmem:[%s1040_s25 + $0x428] sm:$0xff] }
  0x33   : > { %v286_v4 = vld [vmem:[%s1040_s25 + $0x440] sm:$0xff]  ;;  %283 = vst [vmem:[%s1048_s26 + $0x210] sm:$0xff] %v282_v2  ;;  %285 = vst [vmem:[%s1048_s26 + $0x218] sm:$0xff] %v284_v3  ;;  %v288_v5 = vld [vmem:[%s1040_s25 + $0x448] sm:$0xff] }
  0x34   : > { %287 = vst [vmem:[%s1048_s26 + $0x220] sm:$0xff] %v286_v4  ;;  %v290_v6 = vld [vmem:[%s1040_s25 + $0x460] sm:$0xff]  ;;  %v292_v7 = vld [vmem:[%s1040_s25 + $0x468] sm:$0xff]  ;;  %289 = vst [vmem:[%s1048_s26 + $0x228] sm:$0xff] %v288_v5 }
  0x35   : > { %291 = vst [vmem:[%s1048_s26 + $0x230] sm:$0xff] %v290_v6  ;;  %293 = vst [vmem:[%s1048_s26 + $0x238] sm:$0xff] %v292_v7  ;;  %v294_v8 = vld [vmem:[%s1040_s25 + $0x480] sm:$0xff]  ;;  %v296_v9 = vld [vmem:[%s1040_s25 + $0x488] sm:$0xff] }
  0x36   : > { %v298_v10 = vld [vmem:[%s1040_s25 + $0x4a0] sm:$0xff]  ;;  %295 = vst [vmem:[%s1048_s26 + $0x240] sm:$0xff] %v294_v8  ;;  %297 = vst [vmem:[%s1048_s26 + $0x248] sm:$0xff] %v296_v9  ;;  %v300_v11 = vld [vmem:[%s1040_s25 + $0x4a8] sm:$0xff] }
  0x37   : > { %299 = vst [vmem:[%s1048_s26 + $0x250] sm:$0xff] %v298_v10  ;;  %v302_v12 = vld [vmem:[%s1040_s25 + $0x4c0] sm:$0xff]  ;;  %v304_v13 = vld [vmem:[%s1040_s25 + $0x4c8] sm:$0xff]  ;;  %301 = vst [vmem:[%s1048_s26 + $0x258] sm:$0xff] %v300_v11 }
  0x38   : > { %303 = vst [vmem:[%s1048_s26 + $0x260] sm:$0xff] %v302_v12  ;;  %305 = vst [vmem:[%s1048_s26 + $0x268] sm:$0xff] %v304_v13  ;;  %v306_v14 = vld [vmem:[%s1040_s25 + $0x4e0] sm:$0xff]  ;;  %v308_v15 = vld [vmem:[%s1040_s25 + $0x4e8] sm:$0xff] }
  0x39   : > { %v310_v16 = vld [vmem:[%s1040_s25 + $0x500] sm:$0xff]  ;;  %307 = vst [vmem:[%s1048_s26 + $0x270] sm:$0xff] %v306_v14  ;;  %309 = vst [vmem:[%s1048_s26 + $0x278] sm:$0xff] %v308_v15  ;;  %v312_v17 = vld [vmem:[%s1040_s25 + $0x508] sm:$0xff] }
  0x3a   : > { %311 = vst [vmem:[%s1048_s26 + $0x280] sm:$0xff] %v310_v16  ;;  %v314_v18 = vld [vmem:[%s1040_s25 + $0x520] sm:$0xff]  ;;  %v316_v19 = vld [vmem:[%s1040_s25 + $0x528] sm:$0xff]  ;;  %313 = vst [vmem:[%s1048_s26 + $0x288] sm:$0xff] %v312_v17 }
  0x3b   : > { %315 = vst [vmem:[%s1048_s26 + $0x290] sm:$0xff] %v314_v18  ;;  %317 = vst [vmem:[%s1048_s26 + $0x298] sm:$0xff] %v316_v19  ;;  %v318_v20 = vld [vmem:[%s1040_s25 + $0x540] sm:$0xff]  ;;  %v320_v21 = vld [vmem:[%s1040_s25 + $0x548] sm:$0xff] }
  0x3c   : > { %v322_v22 = vld [vmem:[%s1040_s25 + $0x560] sm:$0xff]  ;;  %319 = vst [vmem:[%s1048_s26 + $0x2a0] sm:$0xff] %v318_v20  ;;  %321 = vst [vmem:[%s1048_s26 + $0x2a8] sm:$0xff] %v320_v21  ;;  %v324_v23 = vld [vmem:[%s1040_s25 + $0x568] sm:$0xff] }
  0x3d   : > { %323 = vst [vmem:[%s1048_s26 + $0x2b0] sm:$0xff] %v322_v22  ;;  %v326_v24 = vld [vmem:[%s1040_s25 + $0x580] sm:$0xff]  ;;  %v328_v25 = vld [vmem:[%s1040_s25 + $0x588] sm:$0xff]  ;;  %325 = vst [vmem:[%s1048_s26 + $0x2b8] sm:$0xff] %v324_v23 }
  0x3e   : > { %327 = vst [vmem:[%s1048_s26 + $0x2c0] sm:$0xff] %v326_v24  ;;  %329 = vst [vmem:[%s1048_s26 + $0x2c8] sm:$0xff] %v328_v25  ;;  %v330_v26 = vld [vmem:[%s1040_s25 + $0x5a0] sm:$0xff]  ;;  %v332_v27 = vld [vmem:[%s1040_s25 + $0x5a8] sm:$0xff] }
  0x3f   : > { %v334_v28 = vld [vmem:[%s1040_s25 + $0x5c0] sm:$0xff]  ;;  %331 = vst [vmem:[%s1048_s26 + $0x2d0] sm:$0xff] %v330_v26  ;;  %333 = vst [vmem:[%s1048_s26 + $0x2d8] sm:$0xff] %v332_v27  ;;  %v336_v29 = vld [vmem:[%s1040_s25 + $0x5c8] sm:$0xff] }
  0x40   : > { %335 = vst [vmem:[%s1048_s26 + $0x2e0] sm:$0xff] %v334_v28  ;;  %v338_v30 = vld [vmem:[%s1040_s25 + $0x5e0] sm:$0xff]  ;;  %v340_v31 = vld [vmem:[%s1040_s25 + $0x5e8] sm:$0xff]  ;;  %337 = vst [vmem:[%s1048_s26 + $0x2e8] sm:$0xff] %v336_v29 }
  0x41   : > { %339 = vst [vmem:[%s1048_s26 + $0x2f0] sm:$0xff] %v338_v30  ;;  %341 = vst [vmem:[%s1048_s26 + $0x2f8] sm:$0xff] %v340_v31  ;;  %v342_v32 = vld [vmem:[%s1040_s25 + $0x600] sm:$0xff]  ;;  %v344_v33 = vld [vmem:[%s1040_s25 + $0x608] sm:$0xff] }
  0x42   : > { %v346_v34 = vld [vmem:[%s1040_s25 + $0x620] sm:$0xff]  ;;  %343 = vst [vmem:[%s1048_s26 + $0x300] sm:$0xff] %v342_v32  ;;  %345 = vst [vmem:[%s1048_s26 + $0x308] sm:$0xff] %v344_v33  ;;  %v348_v35 = vld [vmem:[%s1040_s25 + $0x628] sm:$0xff] }
  0x43   : > { %347 = vst [vmem:[%s1048_s26 + $0x310] sm:$0xff] %v346_v34  ;;  %v350_v36 = vld [vmem:[%s1040_s25 + $0x640] sm:$0xff]  ;;  %v352_v37 = vld [vmem:[%s1040_s25 + $0x648] sm:$0xff]  ;;  %349 = vst [vmem:[%s1048_s26 + $0x318] sm:$0xff] %v348_v35 }
  0x44   : > { %351 = vst [vmem:[%s1048_s26 + $0x320] sm:$0xff] %v350_v36  ;;  %353 = vst [vmem:[%s1048_s26 + $0x328] sm:$0xff] %v352_v37  ;;  %v354_v38 = vld [vmem:[%s1040_s25 + $0x660] sm:$0xff]  ;;  %v356_v39 = vld [vmem:[%s1040_s25 + $0x668] sm:$0xff] }
  0x45   : > { %v358_v40 = vld [vmem:[%s1040_s25 + $0x680] sm:$0xff]  ;;  %355 = vst [vmem:[%s1048_s26 + $0x330] sm:$0xff] %v354_v38  ;;  %357 = vst [vmem:[%s1048_s26 + $0x338] sm:$0xff] %v356_v39  ;;  %v360_v41 = vld [vmem:[%s1040_s25 + $0x688] sm:$0xff] }
  0x46   : > { %359 = vst [vmem:[%s1048_s26 + $0x340] sm:$0xff] %v358_v40  ;;  %v362_v42 = vld [vmem:[%s1040_s25 + $0x6a0] sm:$0xff]  ;;  %v364_v43 = vld [vmem:[%s1040_s25 + $0x6a8] sm:$0xff]  ;;  %361 = vst [vmem:[%s1048_s26 + $0x348] sm:$0xff] %v360_v41 }
  0x47   : > { %363 = vst [vmem:[%s1048_s26 + $0x350] sm:$0xff] %v362_v42  ;;  %365 = vst [vmem:[%s1048_s26 + $0x358] sm:$0xff] %v364_v43  ;;  %v366_v44 = vld [vmem:[%s1040_s25 + $0x6c0] sm:$0xff]  ;;  %v368_v45 = vld [vmem:[%s1040_s25 + $0x6c8] sm:$0xff] }
  0x48   : > { %v370_v46 = vld [vmem:[%s1040_s25 + $0x6e0] sm:$0xff]  ;;  %367 = vst [vmem:[%s1048_s26 + $0x360] sm:$0xff] %v366_v44  ;;  %369 = vst [vmem:[%s1048_s26 + $0x368] sm:$0xff] %v368_v45  ;;  %v372_v47 = vld [vmem:[%s1040_s25 + $0x6e8] sm:$0xff] }
  0x49   : > { %371 = vst [vmem:[%s1048_s26 + $0x370] sm:$0xff] %v370_v46  ;;  %v374_v48 = vld [vmem:[%s1040_s25 + $0x700] sm:$0xff]  ;;  %v376_v49 = vld [vmem:[%s1040_s25 + $0x708] sm:$0xff]  ;;  %373 = vst [vmem:[%s1048_s26 + $0x378] sm:$0xff] %v372_v47 }
  0x4a   : > { %375 = vst [vmem:[%s1048_s26 + $0x380] sm:$0xff] %v374_v48  ;;  %377 = vst [vmem:[%s1048_s26 + $0x388] sm:$0xff] %v376_v49  ;;  %v378_v50 = vld [vmem:[%s1040_s25 + $0x720] sm:$0xff]  ;;  %v380_v51 = vld [vmem:[%s1040_s25 + $0x728] sm:$0xff] }
  0x4b   : > { %v382_v52 = vld [vmem:[%s1040_s25 + $0x740] sm:$0xff]  ;;  %379 = vst [vmem:[%s1048_s26 + $0x390] sm:$0xff] %v378_v50  ;;  %381 = vst [vmem:[%s1048_s26 + $0x398] sm:$0xff] %v380_v51  ;;  %v384_v53 = vld [vmem:[%s1040_s25 + $0x748] sm:$0xff] }
  0x4c   : > { %383 = vst [vmem:[%s1048_s26 + $0x3a0] sm:$0xff] %v382_v52  ;;  %v386_v54 = vld [vmem:[%s1040_s25 + $0x760] sm:$0xff]  ;;  %v388_v55 = vld [vmem:[%s1040_s25 + $0x768] sm:$0xff]  ;;  %385 = vst [vmem:[%s1048_s26 + $0x3a8] sm:$0xff] %v384_v53 }
  0x4d   : > { %387 = vst [vmem:[%s1048_s26 + $0x3b0] sm:$0xff] %v386_v54  ;;  %389 = vst [vmem:[%s1048_s26 + $0x3b8] sm:$0xff] %v388_v55  ;;  %v390_v56 = vld [vmem:[%s1040_s25 + $0x780] sm:$0xff]  ;;  %v392_v57 = vld [vmem:[%s1040_s25 + $0x788] sm:$0xff] }
  0x4e   : > { %v394_v58 = vld [vmem:[%s1040_s25 + $0x7a0] sm:$0xff]  ;;  %391 = vst [vmem:[%s1048_s26 + $0x3c0] sm:$0xff] %v390_v56  ;;  %393 = vst [vmem:[%s1048_s26 + $0x3c8] sm:$0xff] %v392_v57  ;;  %v396_v59 = vld [vmem:[%s1040_s25 + $0x7a8] sm:$0xff] }
  0x4f   : > { %395 = vst [vmem:[%s1048_s26 + $0x3d0] sm:$0xff] %v394_v58  ;;  %v398_v60 = vld [vmem:[%s1040_s25 + $0x7c0] sm:$0xff]  ;;  %v400_v61 = vld [vmem:[%s1040_s25 + $0x7c8] sm:$0xff]  ;;  %397 = vst [vmem:[%s1048_s26 + $0x3d8] sm:$0xff] %v396_v59 }
  0x50   : > { %399 = vst [vmem:[%s1048_s26 + $0x3e0] sm:$0xff] %v398_v60  ;;  %401 = vst [vmem:[%s1048_s26 + $0x3e8] sm:$0xff] %v400_v61  ;;  %v402_v62 = vld [vmem:[%s1040_s25 + $0x7e0] sm:$0xff]  ;;  %v404_v63 = vld [vmem:[%s1040_s25 + $0x7e8] sm:$0xff] }
  0x51   : > { %v406_v0 = vld [vmem:[%s1040_s25 + $0x800] sm:$0xff]  ;;  %403 = vst [vmem:[%s1048_s26 + $0x3f0] sm:$0xff] %v402_v62  ;;  %405 = vst [vmem:[%s1048_s26 + $0x3f8] sm:$0xff] %v404_v63  ;;  %v408_v1 = vld [vmem:[%s1040_s25 + $0x808] sm:$0xff] }
  0x52   : > { %407 = vst [vmem:[%s1048_s26 + $0x400] sm:$0xff] %v406_v0  ;;  %v410_v2 = vld [vmem:[%s1040_s25 + $0x820] sm:$0xff]  ;;  %v412_v3 = vld [vmem:[%s1040_s25 + $0x828] sm:$0xff]  ;;  %409 = vst [vmem:[%s1048_s26 + $0x408] sm:$0xff] %v408_v1 }
  0x53   : > { %411 = vst [vmem:[%s1048_s26 + $0x410] sm:$0xff] %v410_v2  ;;  %413 = vst [vmem:[%s1048_s26 + $0x418] sm:$0xff] %v412_v3  ;;  %v414_v4 = vld [vmem:[%s1040_s25 + $0x840] sm:$0xff]  ;;  %v416_v5 = vld [vmem:[%s1040_s25 + $0x848] sm:$0xff] }
  0x54   : > { %v418_v6 = vld [vmem:[%s1040_s25 + $0x860] sm:$0xff]  ;;  %415 = vst [vmem:[%s1048_s26 + $0x420] sm:$0xff] %v414_v4  ;;  %417 = vst [vmem:[%s1048_s26 + $0x428] sm:$0xff] %v416_v5  ;;  %v420_v7 = vld [vmem:[%s1040_s25 + $0x868] sm:$0xff] }
  0x55   : > { %419 = vst [vmem:[%s1048_s26 + $0x430] sm:$0xff] %v418_v6  ;;  %v422_v8 = vld [vmem:[%s1040_s25 + $0x880] sm:$0xff]  ;;  %v424_v9 = vld [vmem:[%s1040_s25 + $0x888] sm:$0xff]  ;;  %421 = vst [vmem:[%s1048_s26 + $0x438] sm:$0xff] %v420_v7 }
  0x56   : > { %423 = vst [vmem:[%s1048_s26 + $0x440] sm:$0xff] %v422_v8  ;;  %425 = vst [vmem:[%s1048_s26 + $0x448] sm:$0xff] %v424_v9  ;;  %v426_v10 = vld [vmem:[%s1040_s25 + $0x8a0] sm:$0xff]  ;;  %v428_v11 = vld [vmem:[%s1040_s25 + $0x8a8] sm:$0xff] }
  0x57   : > { %v430_v12 = vld [vmem:[%s1040_s25 + $0x8c0] sm:$0xff]  ;;  %427 = vst [vmem:[%s1048_s26 + $0x450] sm:$0xff] %v426_v10  ;;  %429 = vst [vmem:[%s1048_s26 + $0x458] sm:$0xff] %v428_v11  ;;  %v432_v13 = vld [vmem:[%s1040_s25 + $0x8c8] sm:$0xff] }
  0x58   : > { %431 = vst [vmem:[%s1048_s26 + $0x460] sm:$0xff] %v430_v12  ;;  %v434_v14 = vld [vmem:[%s1040_s25 + $0x8e0] sm:$0xff]  ;;  %v436_v15 = vld [vmem:[%s1040_s25 + $0x8e8] sm:$0xff]  ;;  %433 = vst [vmem:[%s1048_s26 + $0x468] sm:$0xff] %v432_v13 }
  0x59   : > { %435 = vst [vmem:[%s1048_s26 + $0x470] sm:$0xff] %v434_v14  ;;  %437 = vst [vmem:[%s1048_s26 + $0x478] sm:$0xff] %v436_v15 }
  0x5a PF: > { %p916_p5 = scmp.ge.s32.totalorder %s983_s14, 1  ;;  %p442_p6 = scmp.lt.s32.totalorder %s983_s14, 3 }
  0x5c   : > { %p443_p7 = pnand %p916_p5, %p442_p6 }
  0x5d   : > { %s449_s27 = sand.u32 (!%p443_p7), 1, %s975_s12   ;;  %v1338_v16 = vld [vmem:[%s1522_s0 + $0x8] sm:$0xff] (!%p443_p7)  ;;  %v1343_v17 = vld [vmem:[%s1522_s0] sm:$0xff] (!%p443_p7)  ;;  %v985_v20 = vmov (!%p443_p7), 0   ;;  %vm716_vm0 = vcmask (!%p443_p7), 523264   ;;  %s917_s11 = sshll.u32 (!%p443_p7), %s910_s15, 1 }
  0x5e   : > { %446 = sbr.rel (%p443_p7) target bundleno = 399 (0x18f), region = 51  ;;  %v486_v18 = vcombine.high (!%p443_p7), %v1338_v16, %v1338_v16  ;;  %v485_v19 = vcombine.high (!%p443_p7), %v1343_v17, %v1343_v17  ;;  %958 = vset.pattern.permute.xlu0 (!%p443_p7), %v985_v20  ;;  %v710_v21 = vld [vmem:[%s1524_s2] sm:$0xf] (!%p443_p7)  ;;  %p474_p8 = scmp.lt.s32.totalorder (!%p443_p7), %s917_s11, 3 }
  0x5f   : > { %s932_s5 = smul.u32 (!%p443_p7), 1152, %s449_s27  ;;  %713 = vperm.xlu0 (!%p443_p7), %958, %v710_v21  }
  0x60   : > { %v492_v22 = vpack.c.bf16 (!%p443_p7), %v486_v18, %v486_v18  ;;  %v490_v23 = vpack.c.bf16 (!%p443_p7), %v485_v19, %v485_v19 }
  0x61   : > { %s1353_s8 = scalar_lea.vmem (!%p443_p7), [#allocation2], %s932_s5 }
  0x62   : > { %v559_v24 = vld [vmem:[%s1353_s8 + $0x208] sm:$0xff] (!%p443_p7)  ;;  %v561_v25 = vld [vmem:[%s1353_s8 + $0x218] sm:$0xff] (!%p443_p7)  ;;  %v558_v26 = vld [vmem:[%s1353_s8 + $0x200] sm:$0xff] (!%p443_p7)  ;;  %793 = vmatprep.mubr.bf16.mxu0 (!%p443_p7), %v492_v22  ;;  %752 = vmatprep.mubr.bf16.mxu1 (!%p443_p7), %v490_v23 }
  0x63   : > { %v671_v27 = vpack.c.bf16 (!%p443_p7), %v561_v25, %v559_v24  ;;  %v560_v28 = vld [vmem:[%s1353_s8 + $0x210] sm:$0xff] (!%p443_p7)  ;;  %v563_v29 = vld [vmem:[%s1353_s8 + $0x228] sm:$0xff] (!%p443_p7)  ;;  %v565_v30 = vld [vmem:[%s1353_s8 + $0x238] sm:$0xff] (!%p443_p7) }
  0x64   : > { %v670_v31 = vpack.c.bf16 (!%p443_p7), %v560_v28, %v558_v26  ;;  %v673_v32 = vpack.c.bf16 (!%p443_p7), %v565_v30, %v563_v29  ;;  %v562_v33 = vld [vmem:[%s1353_s8 + $0x220] sm:$0xff] (!%p443_p7)  ;;  %v564_v34 = vld [vmem:[%s1353_s8 + $0x230] sm:$0xff] (!%p443_p7)  ;;  %v567_v35 = vld [vmem:[%s1353_s8 + $0x248] sm:$0xff] (!%p443_p7) }
  0x65   : > { %761 = vmatprep.subr.bf16.mxu0 %v671_v27  ;;  %v569_v36 = vld [vmem:[%s1353_s8 + $0x258] sm:$0xff]  ;;  %v672_v37 = vpack.c.bf16 %v564_v34, %v562_v33  ;;  %v495_v38 = vld [vmem:[%s1353_s8 + $0x8] sm:$0xff]  ;;  %v494_v40 = vld [vmem:[%s1353_s8] sm:$0xff]  ;;  %s1530_s11 = smov (!%p474_p8, %s917_s11), 3 }
  0x66   : > { %762 = vmatpush1.bf16.msra.mxu0 %v670_v31  ;;  %v497_v39 = vld [vmem:[%s1353_s8 + $0x18] sm:$0xff]  ;;  %v675_v41 = vpack.c.bf16 %v569_v36, %v567_v35  ;;  %v566_v42 = vld [vmem:[%s1353_s8 + $0x240] sm:$0xff]  ;;  %v568_v43 = vld [vmem:[%s1353_s8 + $0x250] sm:$0xff]  ;;  %s918_s12 = sshll.u32 %s1530_s11, 2 }
  0x67   : > { %763 = vmatprep.subr.bf16.mxu0 %v673_v32  ;;  %v639_v44 = vpack.c.bf16 %v497_v39, %v495_v38  ;;  %v496_v45 = vld [vmem:[%s1353_s8 + $0x10] sm:$0xff]  ;;  %v571_v47 = vld [vmem:[%s1353_s8 + $0x268] sm:$0xff]  ;;  %v573_v48 = vld [vmem:[%s1353_s8 + $0x278] sm:$0xff]  ;;  %v674_v53 = vpack.c.bf16 %v568_v43, %v566_v42  ;;  %s477_s20 = scalar_lea.vmem %s1525_s3, %s918_s12 }
  0x68   : > { %v638_v46 = vpack.c.bf16 %v496_v45, %v494_v40  ;;  %v499_v49 = vld [vmem:[%s1353_s8 + $0x28] sm:$0xff]  ;;  %v501_v50 = vld [vmem:[%s1353_s8 + $0x38] sm:$0xff]  ;;  %v498_v51 = vld [vmem:[%s1353_s8 + $0x20] sm:$0xff]  ;;  %v677_v58 = vpack.c.bf16 %v573_v48, %v571_v47 }
  0x69   : > { %720 = vmatprep.subr.bf16.mxu1 %v639_v44  ;;  %v500_v52 = vld [vmem:[%s1353_s8 + $0x30] sm:$0xff]  ;;  %v570_v54 = vld [vmem:[%s1353_s8 + $0x260] sm:$0xff]  ;;  %v641_v56 = vpack.c.bf16 %v501_v50, %v499_v49  ;;  %v575_v59 = vld [vmem:[%s1353_s8 + $0x288] sm:$0xff] }
  0x6a   : > { %764 = vmatpush1.bf16.msra.mxu0 %v672_v37  ;;  %721 = vmatpush1.bf16.msra.mxu1 %v638_v46  ;;  %v572_v55 = vld [vmem:[%s1353_s8 + $0x270] sm:$0xff]  ;;  %v640_v57 = vpack.c.bf16 %v500_v52, %v498_v51  ;;  %v503_v60 = vld [vmem:[%s1353_s8 + $0x48] sm:$0xff]  ;;  %v505_v61 = vld [vmem:[%s1353_s8 + $0x58] sm:$0xff] }
  0x6b   : > { %765 = vmatprep.subr.bf16.mxu0 %v675_v41  ;;  %722 = vmatprep.subr.bf16.mxu1 %v641_v56  ;;  %v577_v62 = vld [vmem:[%s1353_s8 + $0x298] sm:$0xff]  ;;  %v643_v63 = vpack.c.bf16 %v505_v61, %v503_v60  ;;  %v502_v0 = vld [vmem:[%s1353_s8 + $0x40] sm:$0xff]  ;;  %v504_v1 = vld [vmem:[%s1353_s8 + $0x50] sm:$0xff]  ;;  %v676_v2 = vpack.c.bf16 %v572_v55, %v570_v54 }
  0x6c   : > { %v574_v3 = vld [vmem:[%s1353_s8 + $0x280] sm:$0xff]  ;;  %v642_v4 = vpack.c.bf16 %v504_v1, %v502_v0  ;;  %v507_v5 = vld [vmem:[%s1353_s8 + $0x68] sm:$0xff]  ;;  %v509_v6 = vld [vmem:[%s1353_s8 + $0x78] sm:$0xff]  ;;  %v679_v7 = vpack.c.bf16 %v577_v62, %v575_v59 }
  0x6d   : > { %v576_v8 = vld [vmem:[%s1353_s8 + $0x290] sm:$0xff]  ;;  %v645_v9 = vpack.c.bf16 %v509_v6, %v507_v5  ;;  %v506_v10 = vld [vmem:[%s1353_s8 + $0x60] sm:$0xff]  ;;  %v579_v12 = vld [vmem:[%s1353_s8 + $0x2a8] sm:$0xff] }
  0x6e   : > { %766 = vmatpush1.bf16.msra.mxu0 %v674_v53  ;;  %723 = vmatpush1.bf16.msra.mxu1 %v640_v57  ;;  %v508_v11 = vld [vmem:[%s1353_s8 + $0x70] sm:$0xff]  ;;  %v581_v13 = vld [vmem:[%s1353_s8 + $0x2b8] sm:$0xff]  ;;  %v511_v14 = vld [vmem:[%s1353_s8 + $0x88] sm:$0xff]  ;;  %v678_v18 = vpack.c.bf16 %v576_v8, %v574_v3 }
  0x6f   : > { %767 = vmatprep.subr.bf16.mxu0 %v677_v58  ;;  %724 = vmatprep.subr.bf16.mxu1 %v643_v63  ;;  %v513_v15 = vld [vmem:[%s1353_s8 + $0x98] sm:$0xff]  ;;  %v578_v19 = vld [vmem:[%s1353_s8 + $0x2a0] sm:$0xff]  ;;  %v580_v21 = vld [vmem:[%s1353_s8 + $0x2b0] sm:$0xff]  ;;  %v644_v22 = vpack.c.bf16 %v508_v11, %v506_v10  ;;  %v681_v23 = vpack.c.bf16 %v581_v13, %v579_v12 }
  0x70   : > { %v583_v24 = vld [vmem:[%s1353_s8 + $0x2c8] sm:$0xff]  ;;  %v647_v25 = vpack.c.bf16 %v513_v15, %v511_v14  ;;  %v510_v26 = vld [vmem:[%s1353_s8 + $0x80] sm:$0xff]  ;;  %v512_v27 = vld [vmem:[%s1353_s8 + $0x90] sm:$0xff]  ;;  %v680_v31 = vpack.c.bf16 %v580_v21, %v578_v19 }
  0x71   : > { %v585_v28 = vld [vmem:[%s1353_s8 + $0x2d8] sm:$0xff]  ;;  %v515_v29 = vld [vmem:[%s1353_s8 + $0xa8] sm:$0xff]  ;;  %v582_v32 = vld [vmem:[%s1353_s8 + $0x2c0] sm:$0xff]  ;;  %v646_v34 = vpack.c.bf16 %v512_v27, %v510_v26 }
  0x72   : > { %768 = vmatpush1.bf16.msra.mxu0 %v676_v2  ;;  %725 = vmatpush1.bf16.msra.mxu1 %v642_v4  ;;  %v517_v30 = vld [vmem:[%s1353_s8 + $0xb8] sm:$0xff]  ;;  %v584_v33 = vld [vmem:[%s1353_s8 + $0x2d0] sm:$0xff]  ;;  %v683_v35 = vpack.c.bf16 %v585_v28, %v583_v24  ;;  %v587_v36 = vld [vmem:[%s1353_s8 + $0x2e8] sm:$0xff] }
  0x73   : > { %769 = vmatprep.subr.bf16.mxu0 %v679_v7  ;;  %726 = vmatprep.subr.bf16.mxu1 %v645_v9  ;;  %v649_v37 = vpack.c.bf16 %v517_v30, %v515_v29  ;;  %v514_v38 = vld [vmem:[%s1353_s8 + $0xa0] sm:$0xff]  ;;  %v516_v39 = vld [vmem:[%s1353_s8 + $0xb0] sm:$0xff]  ;;  %v589_v40 = vld [vmem:[%s1353_s8 + $0x2f8] sm:$0xff]  ;;  %v682_v43 = vpack.c.bf16 %v584_v33, %v582_v32 }
  0x74   : > { %v519_v41 = vld [vmem:[%s1353_s8 + $0xc8] sm:$0xff]  ;;  %v521_v42 = vld [vmem:[%s1353_s8 + $0xd8] sm:$0xff]  ;;  %v586_v44 = vld [vmem:[%s1353_s8 + $0x2e0] sm:$0xff]  ;;  %v648_v46 = vpack.c.bf16 %v516_v39, %v514_v38  ;;  %v685_v47 = vpack.c.bf16 %v589_v40, %v587_v36 }
  0x75   : > { %v588_v45 = vld [vmem:[%s1353_s8 + $0x2f0] sm:$0xff]  ;;  %v591_v48 = vld [vmem:[%s1353_s8 + $0x308] sm:$0xff]  ;;  %v651_v49 = vpack.c.bf16 %v521_v42, %v519_v41  ;;  %v518_v50 = vld [vmem:[%s1353_s8 + $0xc0] sm:$0xff] }
  0x76   : > { %770 = vmatpush1.bf16.msra.mxu0 %v678_v18  ;;  %727 = vmatpush1.bf16.msra.mxu1 %v644_v22  ;;  %v520_v51 = vld [vmem:[%s1353_s8 + $0xd0] sm:$0xff]  ;;  %v593_v52 = vld [vmem:[%s1353_s8 + $0x318] sm:$0xff]  ;;  %v523_v53 = vld [vmem:[%s1353_s8 + $0xe8] sm:$0xff]  ;;  %v684_v55 = vpack.c.bf16 %v588_v45, %v586_v44 }
  0x77   : > { %771 = vmatprep.subr.bf16.mxu0 %v681_v23  ;;  %728 = vmatprep.subr.bf16.mxu1 %v647_v25  ;;  %v525_v54 = vld [vmem:[%s1353_s8 + $0xf8] sm:$0xff]  ;;  %v590_v56 = vld [vmem:[%s1353_s8 + $0x300] sm:$0xff]  ;;  %v592_v57 = vld [vmem:[%s1353_s8 + $0x310] sm:$0xff]  ;;  %v650_v58 = vpack.c.bf16 %v520_v51, %v518_v50  ;;  %v687_v59 = vpack.c.bf16 %v593_v52, %v591_v48 }
  0x78   : > { %v595_v60 = vld [vmem:[%s1353_s8 + $0x328] sm:$0xff]  ;;  %v653_v61 = vpack.c.bf16 %v525_v54, %v523_v53  ;;  %v522_v62 = vld [vmem:[%s1353_s8 + $0xe0] sm:$0xff]  ;;  %v524_v63 = vld [vmem:[%s1353_s8 + $0xf0] sm:$0xff]  ;;  %v686_v3 = vpack.c.bf16 %v592_v57, %v590_v56 }
  0x79   : > { %v597_v0 = vld [vmem:[%s1353_s8 + $0x338] sm:$0xff]  ;;  %v527_v1 = vld [vmem:[%s1353_s8 + $0x108] sm:$0xff]  ;;  %v594_v4 = vld [vmem:[%s1353_s8 + $0x320] sm:$0xff]  ;;  %v652_v6 = vpack.c.bf16 %v524_v63, %v522_v62 }
  0x7a   : > { %772 = vmatpush1.bf16.msra.mxu0 %v680_v31  ;;  %729 = vmatpush1.bf16.msra.mxu1 %v646_v34  ;;  %v529_v2 = vld [vmem:[%s1353_s8 + $0x118] sm:$0xff]  ;;  %v596_v5 = vld [vmem:[%s1353_s8 + $0x330] sm:$0xff]  ;;  %v689_v7 = vpack.c.bf16 %v597_v0, %v595_v60  ;;  %v599_v8 = vld [vmem:[%s1353_s8 + $0x348] sm:$0xff] }
  0x7b   : > { %773 = vmatprep.subr.bf16.mxu0 %v683_v35  ;;  %730 = vmatprep.subr.bf16.mxu1 %v649_v37  ;;  %v655_v9 = vpack.c.bf16 %v529_v2, %v527_v1  ;;  %v526_v10 = vld [vmem:[%s1353_s8 + $0x100] sm:$0xff]  ;;  %v528_v11 = vld [vmem:[%s1353_s8 + $0x110] sm:$0xff]  ;;  %v601_v12 = vld [vmem:[%s1353_s8 + $0x358] sm:$0xff]  ;;  %v688_v15 = vpack.c.bf16 %v596_v5, %v594_v4 }
  0x7c   : > { %v531_v13 = vld [vmem:[%s1353_s8 + $0x128] sm:$0xff]  ;;  %v533_v14 = vld [vmem:[%s1353_s8 + $0x138] sm:$0xff]  ;;  %v598_v18 = vld [vmem:[%s1353_s8 + $0x340] sm:$0xff]  ;;  %v654_v21 = vpack.c.bf16 %v528_v11, %v526_v10  ;;  %v691_v22 = vpack.c.bf16 %v601_v12, %v599_v8 }
  0x7d   : > { %v600_v19 = vld [vmem:[%s1353_s8 + $0x350] sm:$0xff]  ;;  %v603_v23 = vld [vmem:[%s1353_s8 + $0x368] sm:$0xff]  ;;  %v657_v24 = vpack.c.bf16 %v533_v14, %v531_v13  ;;  %v530_v25 = vld [vmem:[%s1353_s8 + $0x120] sm:$0xff] }
  0x7e   : > { %774 = vmatpush1.bf16.msra.mxu0 %v682_v43  ;;  %731 = vmatpush1.bf16.msra.mxu1 %v648_v46  ;;  %v532_v26 = vld [vmem:[%s1353_s8 + $0x130] sm:$0xff]  ;;  %v605_v27 = vld [vmem:[%s1353_s8 + $0x378] sm:$0xff]  ;;  %v535_v28 = vld [vmem:[%s1353_s8 + $0x148] sm:$0xff]  ;;  %v690_v30 = vpack.c.bf16 %v600_v19, %v598_v18 }
  0x7f   : > { %775 = vmatprep.subr.bf16.mxu0 %v685_v47  ;;  %732 = vmatprep.subr.bf16.mxu1 %v651_v49  ;;  %v537_v29 = vld [vmem:[%s1353_s8 + $0x158] sm:$0xff]  ;;  %v602_v31 = vld [vmem:[%s1353_s8 + $0x360] sm:$0xff]  ;;  %v604_v32 = vld [vmem:[%s1353_s8 + $0x370] sm:$0xff]  ;;  %v656_v33 = vpack.c.bf16 %v532_v26, %v530_v25  ;;  %v693_v34 = vpack.c.bf16 %v605_v27, %v603_v23 }
  0x80   : > { %v607_v35 = vld [vmem:[%s1353_s8 + $0x388] sm:$0xff]  ;;  %v659_v36 = vpack.c.bf16 %v537_v29, %v535_v28  ;;  %v534_v37 = vld [vmem:[%s1353_s8 + $0x140] sm:$0xff]  ;;  %v536_v38 = vld [vmem:[%s1353_s8 + $0x150] sm:$0xff]  ;;  %v692_v42 = vpack.c.bf16 %v604_v32, %v602_v31 }
  0x81   : > { %v609_v39 = vld [vmem:[%s1353_s8 + $0x398] sm:$0xff]  ;;  %v539_v40 = vld [vmem:[%s1353_s8 + $0x168] sm:$0xff]  ;;  %v606_v43 = vld [vmem:[%s1353_s8 + $0x380] sm:$0xff]  ;;  %v658_v45 = vpack.c.bf16 %v536_v38, %v534_v37 }
  0x82   : > { %776 = vmatpush1.bf16.msra.mxu0 %v684_v55  ;;  %733 = vmatpush1.bf16.msra.mxu1 %v650_v58  ;;  %v541_v41 = vld [vmem:[%s1353_s8 + $0x178] sm:$0xff]  ;;  %v608_v44 = vld [vmem:[%s1353_s8 + $0x390] sm:$0xff]  ;;  %v695_v46 = vpack.c.bf16 %v609_v39, %v607_v35  ;;  %v611_v47 = vld [vmem:[%s1353_s8 + $0x3a8] sm:$0xff]  ;;  %v491_v39 = vpack.c.bf16 %v1338_v16, %v1338_v16 }
  0x83   : > { %777 = vmatprep.subr.bf16.mxu0 %v687_v59  ;;  %734 = vmatprep.subr.bf16.mxu1 %v653_v61  ;;  %v661_v48 = vpack.c.bf16 %v541_v41, %v539_v40  ;;  %v538_v49 = vld [vmem:[%s1353_s8 + $0x160] sm:$0xff]  ;;  %v540_v50 = vld [vmem:[%s1353_s8 + $0x170] sm:$0xff]  ;;  %v613_v51 = vld [vmem:[%s1353_s8 + $0x3b8] sm:$0xff]  ;;  %v694_v54 = vpack.c.bf16 %v608_v44, %v606_v43 }
  0x84   : > { %v543_v52 = vld [vmem:[%s1353_s8 + $0x188] sm:$0xff]  ;;  %v545_v53 = vld [vmem:[%s1353_s8 + $0x198] sm:$0xff]  ;;  %v610_v55 = vld [vmem:[%s1353_s8 + $0x3a0] sm:$0xff]  ;;  %v660_v57 = vpack.c.bf16 %v540_v50, %v538_v49  ;;  %v697_v58 = vpack.c.bf16 %v613_v51, %v611_v47  ;;  %v489_v47 = vpack.c.bf16 %v1343_v17, %v1343_v17 }
  0x85   : > { %v612_v56 = vld [vmem:[%s1353_s8 + $0x3b0] sm:$0xff]  ;;  %v615_v59 = vld [vmem:[%s1353_s8 + $0x3c8] sm:$0xff]  ;;  %v663_v60 = vpack.c.bf16 %v545_v53, %v543_v52  ;;  %v542_v61 = vld [vmem:[%s1353_s8 + $0x180] sm:$0xff] }
  0x86   : > { %778 = vmatpush1.bf16.msra.mxu0 %v686_v3  ;;  %735 = vmatpush1.bf16.msra.mxu1 %v652_v6  ;;  %v544_v62 = vld [vmem:[%s1353_s8 + $0x190] sm:$0xff]  ;;  %v617_v63 = vld [vmem:[%s1353_s8 + $0x3d8] sm:$0xff]  ;;  %v547_v0 = vld [vmem:[%s1353_s8 + $0x1a8] sm:$0xff]  ;;  %v696_v2 = vpack.c.bf16 %v612_v56, %v610_v55 }
  0x87   : > { %779 = vmatprep.subr.bf16.mxu0 %v689_v7  ;;  %736 = vmatprep.subr.bf16.mxu1 %v655_v9  ;;  %v549_v1 = vld [vmem:[%s1353_s8 + $0x1b8] sm:$0xff]  ;;  %v614_v3 = vld [vmem:[%s1353_s8 + $0x3c0] sm:$0xff]  ;;  %v616_v4 = vld [vmem:[%s1353_s8 + $0x3d0] sm:$0xff]  ;;  %v662_v5 = vpack.c.bf16 %v544_v62, %v542_v61  ;;  %v699_v6 = vpack.c.bf16 %v617_v63, %v615_v59 }
  0x88   : > { %v619_v7 = vld [vmem:[%s1353_s8 + $0x3e8] sm:$0xff]  ;;  %v665_v8 = vpack.c.bf16 %v549_v1, %v547_v0  ;;  %v546_v9 = vld [vmem:[%s1353_s8 + $0x1a0] sm:$0xff]  ;;  %v548_v10 = vld [vmem:[%s1353_s8 + $0x1b0] sm:$0xff]  ;;  %v698_v14 = vpack.c.bf16 %v616_v4, %v614_v3 }
  0x89   : > { %v621_v11 = vld [vmem:[%s1353_s8 + $0x3f8] sm:$0xff]  ;;  %v551_v12 = vld [vmem:[%s1353_s8 + $0x1c8] sm:$0xff]  ;;  %v620_v18 = vld [vmem:[%s1353_s8 + $0x3f0] sm:$0xff]  ;;  %v664_v19 = vpack.c.bf16 %v548_v10, %v546_v9 }
  0x8a   : > { %780 = vmatpush1.bf16.msra.mxu0 %v688_v15  ;;  %737 = vmatpush1.bf16.msra.mxu1 %v654_v21  ;;  %v553_v13 = vld [vmem:[%s1353_s8 + $0x1d8] sm:$0xff]  ;;  %v618_v15 = vld [vmem:[%s1353_s8 + $0x3e0] sm:$0xff]  ;;  %v701_v21 = vpack.c.bf16 %v621_v11, %v619_v7  ;;  %v552_v25 = vld [vmem:[%s1353_s8 + $0x1d0] sm:$0xff] }
  0x8b   : > { %781 = vmatprep.subr.bf16.mxu0 %v691_v22  ;;  %738 = vmatprep.subr.bf16.mxu1 %v657_v24  ;;  %v623_v22 = vld [vmem:[%s1353_s8 + $0x408] sm:$0xff]  ;;  %v667_v23 = vpack.c.bf16 %v553_v13, %v551_v12  ;;  %v550_v24 = vld [vmem:[%s1353_s8 + $0x1c0] sm:$0xff]  ;;  %v625_v26 = vld [vmem:[%s1353_s8 + $0x418] sm:$0xff]  ;;  %v700_v29 = vpack.c.bf16 %v620_v18, %v618_v15 }
  0x8c   : > { %v555_v27 = vld [vmem:[%s1353_s8 + $0x1e8] sm:$0xff]  ;;  %v557_v28 = vld [vmem:[%s1353_s8 + $0x1f8] sm:$0xff]  ;;  %v666_v31 = vpack.c.bf16 %v552_v25, %v550_v24  ;;  %v703_v32 = vpack.c.bf16 %v625_v26, %v623_v22  ;;  %v554_v35 = vld [vmem:[%s1353_s8 + $0x1e0] sm:$0xff] }
  0x8d   : > { %v627_v37 = vld [vmem:[%s1353_s8 + $0x428] sm:$0xff]  ;;  %v629_v38 = vld [vmem:[%s1353_s8 + $0x438] sm:$0xff]  ;;  %v626_v43 = vld [vmem:[%s1353_s8 + $0x420] sm:$0xff] }
  0x8e   : > { %782 = vmatpush1.bf16.msra.mxu0 %v690_v30  ;;  %739 = vmatpush1.bf16.msra.mxu1 %v656_v33  ;;  %v622_v30 = vld [vmem:[%s1353_s8 + $0x400] sm:$0xff]  ;;  %v624_v33 = vld [vmem:[%s1353_s8 + $0x410] sm:$0xff]  ;;  %v635_v51 = vld [vmem:[%s1353_s8 + $0x468] sm:$0xff] }
  0x8f   : > { %783 = vmatprep.subr.bf16.mxu0 %v693_v34  ;;  %740 = vmatprep.subr.bf16.mxu1 %v659_v36  ;;  %v669_v34 = vpack.c.bf16 %v557_v28, %v555_v27  ;;  %v556_v36 = vld [vmem:[%s1353_s8 + $0x1f0] sm:$0xff]  ;;  %v702_v40 = vpack.c.bf16 %v624_v33, %v622_v30  ;;  %v630_v49 = vld [vmem:[%s1353_s8 + $0x440] sm:$0xff]  ;;  %v637_v52 = vld [vmem:[%s1353_s8 + $0x478] sm:$0xff] }
  0x90   : > { %v668_v41 = vpack.c.bf16 %v556_v36, %v554_v35  ;;  %v628_v44 = vld [vmem:[%s1353_s8 + $0x430] sm:$0xff]  ;;  %v634_v17 = vld [vmem:[%s1353_s8 + $0x460] sm:$0xff] }
  0x91   : > { %v704_v16 = vpack.c.bf16 %v628_v44, %v626_v43  ;;  %v632_v50 = vld [vmem:[%s1353_s8 + $0x450] sm:$0xff] }
  0x92   : > { %784 = vmatpush1.bf16.msra.mxu0 %v692_v42  ;;  %741 = vmatpush1.bf16.msra.mxu1 %v658_v45  ;;  %v705_v42 = vpack.c.bf16 %v629_v38, %v627_v37  ;;  %v631_v45 = vld [vmem:[%s1353_s8 + $0x448] sm:$0xff]  ;;  %v706_v53 = vpack.c.bf16 %v632_v50, %v630_v49  ;;  %v636_v55 = vld [vmem:[%s1353_s8 + $0x470] sm:$0xff] }
  0x93   : > { %785 = vmatprep.subr.bf16.mxu0 %v695_v46  ;;  %742 = vmatprep.subr.bf16.mxu1 %v661_v48  ;;  %v633_v46 = vld [vmem:[%s1353_s8 + $0x458] sm:$0xff]  ;;  %v708_v56 = vpack.c.bf16 %v636_v55, %v634_v17 }
  0x94   : > { %v707_v48 = vpack.c.bf16 %v633_v46, %v631_v45 }
  0x96   : > { %786 = vmatpush1.bf16.msra.mxu0 %v694_v54  ;;  %743 = vmatpush1.bf16.msra.mxu1 %v660_v57  ;;  %v709_v54 = vpack.c.bf16 %v637_v52, %v635_v51  ;;  %v482_v57 = vld [vmem:[%s1522_s0 + $0x10] sm:$0xf] }
  0x97   : > { %787 = vmatprep.subr.bf16.mxu0 %v697_v58  ;;  %744 = vmatprep.subr.bf16.mxu1 %v663_v60  ;;  %v493_v58 = vpack.c.bf16 %v482_v57, %v482_v57 }
  0x9a   : > { %788 = vmatpush1.bf16.msra.mxu0 %v696_v2  ;;  %745 = vmatpush1.bf16.msra.mxu1 %v662_v5 }
  0x9b   : > { %789 = vmatprep.subr.bf16.mxu0 %v699_v6  ;;  %746 = vmatprep.subr.bf16.mxu1 %v665_v8 }
  0x9e   : > { %790 = vmatpush1.bf16.msra.mxu0 %v698_v14  ;;  %747 = vmatpush1.bf16.msra.mxu1 %v664_v19 }
  0x9f   : > { %791 = vmatprep.subr.bf16.mxu0 %v701_v21  ;;  %748 = vmatprep.subr.bf16.mxu1 %v667_v23 }
  0xa2   : > { %792 = vmatpush1.bf16.msra.mxu0 %v700_v29  ;;  %749 = vmatpush1.bf16.msra.mxu1 %v666_v31 }
  0xa3   : > { %802 = vmatprep.subr.bf16.mxu0 %v703_v32  ;;  %750 = vmatprep.subr.bf16.mxu1 %v669_v34 }
  0xa5   : > { %794 = vmatmul.mubr.bf16.vlgmr.msra.gmra.mrb[0].mxu0 %v491_v39 }
  0xa6   : > { %803 = vmatpush1.bf16.msra.mxu0 %v702_v40  ;;  %751 = vmatpush1.bf16.msra.mxu1 %v668_v41 }
  0xa7   : > { %804 = vmatprep.subr.bf16.mxu0 %v705_v42  ;;  %834 = vmatprep.mubr.bf16.mxu0 %v985_v20 }
  0xa9   : > { %753 = vmatmul.mubr.bf16.vlgmr.msra.gmra.mrb[0].mxu1 %v489_v47 }
  0xaa   : > { %805 = vmatpush1.bf16.msra.mxu0 %v704_v16 }
  0xab   : > { %806 = vmatprep.subr.bf16.mxu0 %v707_v48 }
  0xae   : > { %807 = vmatpush1.bf16.msra.mxu0 %v706_v53 }
  0xaf   : > { %808 = vmatprep.subr.bf16.mxu0 %v709_v54 }
  0xb2   : > { %809 = vmatpush1.bf16.msra.mxu0 %v708_v56 }
  0xb5   : > { %919 = vmatmul.mubr.msk.bf16.vlgmr.msra.gmra.mrb[0].mxu0 %vm716_vm0, %v493_v58 }
  0xde   : > { %v714_v62 = vpop.permute.xlu0 %713 }
 0x17c   : > { %v754_v20 = vpop.f32.mrb[0].mxu1 }
 0x17d   : > { %v756_v59 = vpop.f32.mrb[1].mxu1  ;;  %v755_v63 = vadd.f32 %v754_v20, %v714_v62 }
 0x17e   : > { %v758_v60 = vpop.f32.mrb[2].mxu1  ;;  %v757_v0 = vadd.f32 %v756_v59, %v714_v62 }
 0x17f   : > { %v759_v61 = vpop.f32.mrb[3].mxu1 }
 0x188   : > { %v836_v1 = vpop.f32.mrb[0].mxu0 }
 0x189   : > { %v924_v2 = vadd.f32 %v836_v1, %v755_v63  ;;  %v838_v3 = vpop.f32.mrb[1].mxu0 }
 0x18a   : > { %v926_v4 = vadd.f32 %v838_v3, %v757_v0  ;;  %v840_v5 = vpop.f32.mrb[2].mxu0 }
 0x18b   : > { %v841_v6 = vpop.f32.mrb[3].mxu0 }
 0x18c   : > { %v845_v7 = vcombine.low %v924_v2, %v926_v4 }
 0x18e   : > { %847 = vst [vmem:[%s477_s20] sm:$0xff] %v845_v7 }
 0x18f PF: > { %p10_p9 = scmp.ge.s32.totalorder %s1023_s16, 4   ;;  %s1526_s12 = smov %s979_s13 }
 0x190   : > { %s1527_s13 = smov %s1032_s19  ;;  %s1528_s14 = smov %s1023_s16 }
 0x191   :  { %12 = sbr.rel (!%p10_p9) target bundleno = 2 (0x2), region = 90 }

</bundles_post_ra>
